<compile_context>
chip_gen: v5e
topology: v5e:2x2
jax: 0.10.0
libtpu: 0.0.40
codegen_flags: <defaults>
</compile_context>

<pallas_src>
from functools import partial

import numpy as np
import jax
import jax.numpy as jnp
from jax.experimental import pallas as pl
from jax.experimental.pallas import tpu as pltpu


# ---------------------------------------------------------------------------
# Pallas kernel
# ---------------------------------------------------------------------------
def _spatial_attention_kernel(x_ref, wb_ref, o_ref, pad_ref, *, Bt, D, HW, K, P):
    # x_ref  : (Bt, C, D, HW)            Bt batch elements, lane-dense spatial
    # wb_ref : (K, 2*HW, HW)             banded conv weights (kh/kw + channel folded)
    # o_ref  : (Bt, D, HW)               sigmoid(conv) output slabs
    # pad_ref: (Bt*(D+2P), 2*HW) f32     per-batch D-padded [avg | max] scratch
    Pd = D + 2 * P

    x = x_ref[...].astype(jnp.float32)          # (Bt, C, D, HW)
    avg = jnp.mean(x, axis=1)                   # channel mean  (Bt, D, HW)
    mx = jnp.max(x, axis=1)                     # channel max   (Bt, D, HW)

    halo = jnp.zeros((P, 2 * HW), jnp.float32)
    for b in range(Bt):
        base = b * Pd
        # zero only the P-wide D-halo rows (interior is fully overwritten)
        pad_ref[base:base + P, :] = halo
        pad_ref[base + P + D:base + Pd, :] = halo
        # interior: avg in lanes [0, HW), max in lanes [HW, 2*HW)
        pad_ref[base + P:base + P + D, 0:HW] = avg[b]
        pad_ref[base + P:base + P + D, HW:2 * HW] = mx[b]

    # 3-D conv as K matmuls: for each kd, a contiguous leading-dim slice of the
    # padded scratch is contracted against the (2*HW, HW) banded weight on the
    # MXU.  Rows b*Pd + d (d < D) of acc are the valid outputs for batch b; the
    # trailing 2P rows of each batch block are ignored garbage.
    Rout = Bt * Pd - 2 * P
    acc = jnp.zeros((Rout, HW), jnp.float32)
    for kd in range(K):
        acc = acc + jnp.dot(pad_ref[kd:kd + Rout, :], wb_ref[kd],
                            preferred_element_type=jnp.float32)

    y = jax.nn.sigmoid(acc)
    for b in range(Bt):
        o_ref[b] = y[b * Pd:b * Pd + D].astype(o_ref.dtype)


# ---------------------------------------------------------------------------
# Weight transform: fold the kh/kw taps (with H/W zero padding) and the two
# input channels of the Conv3d(2, 1, K) weight into banded (2*HW, HW) matrices,
# one per kd.
# ---------------------------------------------------------------------------
def build_banded_conv_weight(weight, H, W):
    """weight: (1, 2, K, K, K) torch Conv3d layout (O, I, kD, kH, kW).

    Returns wb: (K, 2*HW, HW) with
      wb[kd, c*HW + (h_in*W + w_in), h_out*W + w_out] = weight[0, c, kd, kh, kw]
    where h_in = h_out + kh - P, w_in = w_out + kw - P (in-range only); absent
    band entries encode the H/W zero padding.
    """
    w = np.asarray(weight, dtype=np.float32)[0]          # (2, K, K, K) = (c, kd, kh, kw)
    K = w.shape[-1]
    P = K // 2
    HW = H * W
    wb = np.zeros((K, 2 * HW, HW), np.float32)
    for kh in range(K):
        h_out = np.arange(max(0, P - kh), min(H, H + P - kh))
        h_in = h_out + kh - P
        for kw in range(K):
            w_out = np.arange(max(0, P - kw), min(W, W + P - kw))
            w_in = w_out + kw - P
            rows = (h_in[:, None] * W + w_in[None, :]).ravel()
            cols = (h_out[:, None] * W + w_out[None, :]).ravel()
            wb[:, rows, cols] += w[0, :, kh, kw][:, None]       # avg channel
            wb[:, HW + rows, cols] += w[1, :, kh, kw][:, None]  # max channel
    return jnp.asarray(wb)


# ---------------------------------------------------------------------------
# Forward wrapper
# ---------------------------------------------------------------------------
def spatial_attention_forward(x, banded_w, kernel_size=7, block_b=None):
    B, C, D, H, W = x.shape
    K = kernel_size
    P = K // 2
    HW = H * W
    assert banded_w.shape == (K, 2 * HW, HW)

    if block_b is None:
        # Amortize ~0.35us/step pipeline overhead while keeping >=2 grid steps
        # when B > 1 (feeds both TensorCores on v7x megacore).
        block_b = max(1, min(8, B // 2)) if B > 1 else 1
    while B % block_b:
        block_b -= 1
    grid_b = B // block_b

    x_flat = x.reshape(B, C, D, HW)  # free contiguous reshape; lane-dense

    kernel = partial(_spatial_attention_kernel, Bt=block_b, D=D, HW=HW, K=K, P=P)
    out = pl.pallas_call(
        kernel,
        grid=(grid_b,),
        out_shape=jax.ShapeDtypeStruct((B, D, HW), x.dtype),
        in_specs=[
            pl.BlockSpec((block_b, C, D, HW), lambda i: (i, 0, 0, 0)),
            pl.BlockSpec((K, 2 * HW, HW), lambda i: (0, 0, 0)),  # resident weights
        ],
        out_specs=pl.BlockSpec((block_b, D, HW), lambda i: (i, 0, 0)),
        scratch_shapes=[
            pltpu.VMEM((block_b * (D + 2 * P), 2 * HW), jnp.float32),
        ],
        compiler_params=pltpu.CompilerParams(
            dimension_semantics=("parallel",)),
    )(x_flat, banded_w)
    # Free (contiguous) reshape back to the module's output layout.
    return out.reshape(B, 1, D, H, W)


# ---------------------------------------------------------------------------
# Pure-JAX reference (matches the PyTorch module)
# ---------------------------------------------------------------------------
def spatial_attention_reference(x, weight):
    avg = jnp.mean(x, axis=1, keepdims=True)
    mx = jnp.max(x, axis=1, keepdims=True)
    xin = jnp.concatenate([avg, mx], axis=1)             # (B, 2, D, H, W)
    P = weight.shape[-1] // 2
    y = jax.lax.conv_general_dilated(
        xin, weight,
        window_strides=(1, 1, 1),
        padding=[(P, P)] * 3,
        dimension_numbers=("NCDHW", "OIDHW", "NCDHW"),
        precision=jax.lax.Precision.HIGHEST,
    )
    return jax.nn.sigmoid(y)


# ---------------------------------------------------------------------------
if __name__ == "__main__":
    B, C, D, H, W = 2, 4, 8, 16, 16
    K = 7  # kernel_size=7 -> padding=3 (module default)

    key = jax.random.PRNGKey(0)
    kx, kw_key = jax.random.split(key)
    x = jax.random.normal(kx, (B, C, D, H, W), jnp.float32)
    # Conv3d(2, 1, 7, bias=False) weight, torch layout (O, I, kD, kH, kW)
    fan_in = 2 * K ** 3
    weight = jax.random.normal(kw_key, (1, 2, K, K, K), jnp.float32) / np.sqrt(fan_in)

    banded_w = build_banded_conv_weight(weight, H, W)

    out = spatial_attention_forward(x, banded_w, kernel_size=K)
    out = jax.block_until_ready(out)

    ref = spatial_attention_reference(x, weight)
    assert out.shape == (B, 1, D, H, W)
    assert jnp.allclose(out, ref, atol=3e-5, rtol=3e-5), "mismatch vs reference"

    print("KERNEL_OK")
</pallas_src>

<mosaic_0001>
module attributes {stable_mosaic.version = 11 : i64} {
  func.func @_spatial_attention_kernel(%arg0: i32, %arg1: memref<1x4x8x256xf32, #tpu.memory_space<vmem>>, %arg2: memref<7x512x256xf32, #tpu.memory_space<vmem>>, %arg3: memref<1x8x256xf32, #tpu.memory_space<vmem>>, %arg4: memref<14x512xf32, #tpu.memory_space<vmem>>) attributes {dimension_semantics = [#tpu.dimension_semantics<parallel>], iteration_bounds = array<i64: 2>, scalar_prefetch = 0 : i64, scratch_operands = 1 : i64, tpu.core_type = #tpu.core_type<tc>, window_params = [{transform_indices = @transform_0, window_bounds = array<i64: 1, 4, 8, 256>}, {pipeline_mode = #tpu.pipeline_mode<synchronous>, transform_indices = @transform_1, window_bounds = array<i64: 7, 512, 256>}, {transform_indices = @transform_2, window_bounds = array<i64: 1, 8, 256>}]} {
    %c0 = arith.constant 0 : index
    %c0_0 = arith.constant 0 : index
    %c0_1 = arith.constant 0 : index
    %c0_2 = arith.constant 0 : index
    %0 = vector.load %arg1[%c0, %c0_0, %c0_1, %c0_2] : memref<1x4x8x256xf32, #tpu.memory_space<vmem>>, vector<1x4x8x256xf32>
    %cst = arith.constant dense<0.000000e+00> : vector<1x8x256xf32>
    %1 = vector.multi_reduction <add>, %0, %cst [1] : vector<1x4x8x256xf32> to vector<1x8x256xf32>
    %cst_3 = arith.constant 4.000000e+00 : f32
    %2 = vector.broadcast %cst_3 : f32 to vector<1x8x256xf32>
    %3 = arith.divf %1, %2 : vector<1x8x256xf32>
    %cst_4 = arith.constant dense<0xFF800000> : vector<1x8x256xf32>
    %4 = vector.multi_reduction <maximumf>, %0, %cst_4 [1] : vector<1x4x8x256xf32> to vector<1x8x256xf32>
    %cst_5 = arith.constant 0.000000e+00 : f32
    %5 = vector.broadcast %cst_5 : f32 to vector<3x512xf32>
    %c0_6 = arith.constant 0 : index
    %c0_7 = arith.constant 0 : index
    %6 = vector.load %arg4[%c0_6, %c0_7] : memref<14x512xf32, #tpu.memory_space<vmem>>, vector<3x512xf32>
    tpu.vector_store %arg4[%c0_6, %c0_7], %5 {strides = array<i32>} : memref<14x512xf32, #tpu.memory_space<vmem>>, vector<3x512xf32>,
    %c11 = arith.constant 11 : index
    %c0_8 = arith.constant 0 : index
    %7 = vector.load %arg4[%c11, %c0_8] : memref<14x512xf32, #tpu.memory_space<vmem>>, vector<3x512xf32>
    tpu.vector_store %arg4[%c11, %c0_8], %5 {strides = array<i32>} : memref<14x512xf32, #tpu.memory_space<vmem>>, vector<3x512xf32>,
    %8 = vector.shape_cast %3 : vector<1x8x256xf32> to vector<8x256xf32>
    %c3 = arith.constant 3 : index
    %c0_9 = arith.constant 0 : index
    %9 = vector.load %arg4[%c3, %c0_9] : memref<14x512xf32, #tpu.memory_space<vmem>>, vector<8x256xf32>
    tpu.vector_store %arg4[%c3, %c0_9], %8 {strides = array<i32>} : memref<14x512xf32, #tpu.memory_space<vmem>>, vector<8x256xf32>,
    %10 = vector.shape_cast %4 : vector<1x8x256xf32> to vector<8x256xf32>
    %c3_10 = arith.constant 3 : index
    %c256 = arith.constant 256 : index
    %11 = vector.load %arg4[%c3_10, %c256] : memref<14x512xf32, #tpu.memory_space<vmem>>, vector<8x256xf32>
    tpu.vector_store %arg4[%c3_10, %c256], %10 {strides = array<i32>} : memref<14x512xf32, #tpu.memory_space<vmem>>, vector<8x256xf32>,
    %cst_11 = arith.constant 0.000000e+00 : f32
    %12 = vector.broadcast %cst_11 : f32 to vector<8x256xf32>
    %c0_12 = arith.constant 0 : index
    %c0_13 = arith.constant 0 : index
    %13 = vector.load %arg4[%c0_12, %c0_13] : memref<14x512xf32, #tpu.memory_space<vmem>>, vector<8x512xf32>
    %c0_14 = arith.constant 0 : index
    %c0_15 = arith.constant 0 : index
    %c0_16 = arith.constant 0 : index
    %14 = vector.load %arg2[%c0_14, %c0_15, %c0_16] : memref<7x512x256xf32, #tpu.memory_space<vmem>>, vector<1x512x256xf32>
    %15 = vector.shape_cast %14 : vector<1x512x256xf32> to vector<512x256xf32>
    %cst_17 = arith.constant dense<0.000000e+00> : vector<8x256xf32>
    %16 = tpu.matmul %13, %15, %cst_17 {dimension_numbers = #tpu.dot_dimension_numbers<[1], [0], [0], [1], [0, 0, 1, 1], [], []>} : vector<8x512xf32>, vector<512x256xf32>, vector<8x256xf32> -> vector<8x256xf32>
    %17 = arith.addf %12, %16 : vector<8x256xf32>
    %c1 = arith.constant 1 : index
    %c0_18 = arith.constant 0 : index
    %18 = vector.load %arg4[%c1, %c0_18] : memref<14x512xf32, #tpu.memory_space<vmem>>, vector<8x512xf32>
    %c1_19 = arith.constant 1 : index
    %c0_20 = arith.constant 0 : index
    %c0_21 = arith.constant 0 : index
    %19 = vector.load %arg2[%c1_19, %c0_20, %c0_21] : memref<7x512x256xf32, #tpu.memory_space<vmem>>, vector<1x512x256xf32>
    %20 = vector.shape_cast %19 : vector<1x512x256xf32> to vector<512x256xf32>
    %cst_22 = arith.constant dense<0.000000e+00> : vector<8x256xf32>
    %21 = tpu.matmul %18, %20, %cst_22 {dimension_numbers = #tpu.dot_dimension_numbers<[1], [0], [0], [1], [0, 0, 1, 1], [], []>} : vector<8x512xf32>, vector<512x256xf32>, vector<8x256xf32> -> vector<8x256xf32>
    %22 = arith.addf %17, %21 : vector<8x256xf32>
    %c2 = arith.constant 2 : index
    %c0_23 = arith.constant 0 : index
    %23 = vector.load %arg4[%c2, %c0_23] : memref<14x512xf32, #tpu.memory_space<vmem>>, vector<8x512xf32>
    %c2_24 = arith.constant 2 : index
    %c0_25 = arith.constant 0 : index
    %c0_26 = arith.constant 0 : index
    %24 = vector.load %arg2[%c2_24, %c0_25, %c0_26] : memref<7x512x256xf32, #tpu.memory_space<vmem>>, vector<1x512x256xf32>
    %25 = vector.shape_cast %24 : vector<1x512x256xf32> to vector<512x256xf32>
    %cst_27 = arith.constant dense<0.000000e+00> : vector<8x256xf32>
    %26 = tpu.matmul %23, %25, %cst_27 {dimension_numbers = #tpu.dot_dimension_numbers<[1], [0], [0], [1], [0, 0, 1, 1], [], []>} : vector<8x512xf32>, vector<512x256xf32>, vector<8x256xf32> -> vector<8x256xf32>
    %27 = arith.addf %22, %26 : vector<8x256xf32>
    %c3_28 = arith.constant 3 : index
    %c0_29 = arith.constant 0 : index
    %28 = vector.load %arg4[%c3_28, %c0_29] : memref<14x512xf32, #tpu.memory_space<vmem>>, vector<8x512xf32>
    %c3_30 = arith.constant 3 : index
    %c0_31 = arith.constant 0 : index
    %c0_32 = arith.constant 0 : index
    %29 = vector.load %arg2[%c3_30, %c0_31, %c0_32] : memref<7x512x256xf32, #tpu.memory_space<vmem>>, vector<1x512x256xf32>
    %30 = vector.shape_cast %29 : vector<1x512x256xf32> to vector<512x256xf32>
    %cst_33 = arith.constant dense<0.000000e+00> : vector<8x256xf32>
    %31 = tpu.matmul %28, %30, %cst_33 {dimension_numbers = #tpu.dot_dimension_numbers<[1], [0], [0], [1], [0, 0, 1, 1], [], []>} : vector<8x512xf32>, vector<512x256xf32>, vector<8x256xf32> -> vector<8x256xf32>
    %32 = arith.addf %27, %31 : vector<8x256xf32>
    %c4 = arith.constant 4 : index
    %c0_34 = arith.constant 0 : index
    %33 = vector.load %arg4[%c4, %c0_34] : memref<14x512xf32, #tpu.memory_space<vmem>>, vector<8x512xf32>
    %c4_35 = arith.constant 4 : index
    %c0_36 = arith.constant 0 : index
    %c0_37 = arith.constant 0 : index
    %34 = vector.load %arg2[%c4_35, %c0_36, %c0_37] : memref<7x512x256xf32, #tpu.memory_space<vmem>>, vector<1x512x256xf32>
    %35 = vector.shape_cast %34 : vector<1x512x256xf32> to vector<512x256xf32>
    %cst_38 = arith.constant dense<0.000000e+00> : vector<8x256xf32>
    %36 = tpu.matmul %33, %35, %cst_38 {dimension_numbers = #tpu.dot_dimension_numbers<[1], [0], [0], [1], [0, 0, 1, 1], [], []>} : vector<8x512xf32>, vector<512x256xf32>, vector<8x256xf32> -> vector<8x256xf32>
    %37 = arith.addf %32, %36 : vector<8x256xf32>
    %c5 = arith.constant 5 : index
    %c0_39 = arith.constant 0 : index
    %38 = vector.load %arg4[%c5, %c0_39] : memref<14x512xf32, #tpu.memory_space<vmem>>, vector<8x512xf32>
    %c5_40 = arith.constant 5 : index
    %c0_41 = arith.constant 0 : index
    %c0_42 = arith.constant 0 : index
    %39 = vector.load %arg2[%c5_40, %c0_41, %c0_42] : memref<7x512x256xf32, #tpu.memory_space<vmem>>, vector<1x512x256xf32>
    %40 = vector.shape_cast %39 : vector<1x512x256xf32> to vector<512x256xf32>
    %cst_43 = arith.constant dense<0.000000e+00> : vector<8x256xf32>
    %41 = tpu.matmul %38, %40, %cst_43 {dimension_numbers = #tpu.dot_dimension_numbers<[1], [0], [0], [1], [0, 0, 1, 1], [], []>} : vector<8x512xf32>, vector<512x256xf32>, vector<8x256xf32> -> vector<8x256xf32>
    %42 = arith.addf %37, %41 : vector<8x256xf32>
    %c6 = arith.constant 6 : index
    %c0_44 = arith.constant 0 : index
    %43 = vector.load %arg4[%c6, %c0_44] : memref<14x512xf32, #tpu.memory_space<vmem>>, vector<8x512xf32>
    %c6_45 = arith.constant 6 : index
    %c0_46 = arith.constant 0 : index
    %c0_47 = arith.constant 0 : index
    %44 = vector.load %arg2[%c6_45, %c0_46, %c0_47] : memref<7x512x256xf32, #tpu.memory_space<vmem>>, vector<1x512x256xf32>
    %45 = vector.shape_cast %44 : vector<1x512x256xf32> to vector<512x256xf32>
    %cst_48 = arith.constant dense<0.000000e+00> : vector<8x256xf32>
    %46 = tpu.matmul %43, %45, %cst_48 {dimension_numbers = #tpu.dot_dimension_numbers<[1], [0], [0], [1], [0, 0, 1, 1], [], []>} : vector<8x512xf32>, vector<512x256xf32>, vector<8x256xf32> -> vector<8x256xf32>
    %47 = arith.addf %42, %46 : vector<8x256xf32>
    %48 = arith.negf %47 : vector<8x256xf32>
    %49 = math.exp %48 : vector<8x256xf32>
    %cst_49 = arith.constant 1.000000e+00 : f32
    %50 = vector.broadcast %cst_49 : f32 to vector<8x256xf32>
    %51 = arith.addf %50, %49 : vector<8x256xf32>
    %52 = arith.divf %50, %51 : vector<8x256xf32>
    %c0_50 = arith.constant 0 : index
    %c0_51 = arith.constant 0 : index
    %c0_52 = arith.constant 0 : index
    %53 = vector.load %arg3[%c0_50, %c0_51, %c0_52] : memref<1x8x256xf32, #tpu.memory_space<vmem>>, vector<1x8x256xf32>
    %54 = vector.shape_cast %53 : vector<1x8x256xf32> to vector<8x256xf32>
    %55 = vector.shape_cast %52 : vector<8x256xf32> to vector<1x8x256xf32>
    tpu.vector_store %arg3[%c0_50, %c0_51, %c0_52], %55 {strides = array<i32>} : memref<1x8x256xf32, #tpu.memory_space<vmem>>, vector<1x8x256xf32>,
    return
  }
  func.func @transform_0(%arg0: i32) -> (i32, i32, i32, i32) {
    %c0_i32 = arith.constant 0 : i32
    %c0_i32_0 = arith.constant 0 : i32
    %c0_i32_1 = arith.constant 0 : i32
    %c0_i32_2 = arith.constant 0 : i32
    return %arg0, %c0_i32, %c0_i32_0, %c0_i32_1 : i32, i32, i32, i32
  }
  func.func @transform_1(%arg0: i32) -> (i32, i32, i32) {
    %c0_i32 = arith.constant 0 : i32
    %c0_i32_0 = arith.constant 0 : i32
    %c0_i32_1 = arith.constant 0 : i32
    %c0_i32_2 = arith.constant 0 : i32
    return %c0_i32, %c0_i32_0, %c0_i32_1 : i32, i32, i32
  }
  func.func @transform_2(%arg0: i32) -> (i32, i32, i32) {
    %c0_i32 = arith.constant 0 : i32
    %c0_i32_0 = arith.constant 0 : i32
    %c0_i32_1 = arith.constant 0 : i32
    return %arg0, %c0_i32, %c0_i32_0 : i32, i32, i32
  }
}

</mosaic_0001>

<bundles_post_ra>
// kernel: tpu_custom_call.1
= control target key start
LH: loop header
LB: loop body
LE: loop exit
PB: predicated region body
PF: predicated region fallthrough
CT: control target
= control target key end

     0   :  { %7 = vsyncpa [#allocation4], 0  ;;  %s3194_s0 = inlined_call_operand.hbm [shape: f32[2,4,8,256], index: 0, kind: input, shape index: {}]   ;;  %s3195_s1 = inlined_call_operand.hbm [shape: f32[7,512,256], index: 1, kind: input, shape index: {}]   ;;  %s3196_s2 = inlined_call_operand.hbm [shape: f32[2,8,256], index: 2, kind: output, shape index: {}]  }
   0x1   :  { %9 = vsyncpa [#allocation4 + $0x1], 0 }
   0x2   :  { %10 = vsyncpa [#allocation7], 0 }
   0x3   :  { %11 = vsyncpa [#allocation5], 0 }
   0x4   :  { %13 = vsyncpa [#allocation5 + $0x1], 0  ;;  %s2852_s9 = smov 0   ;;  %s2854_s10 = smov 0  }
   0x5   :  { %s2856_s11 = smov 0   ;;  %s2858_s12 = smov 0  }
   0x6 LB: > { %s2873_s13 = sadd.s32 4294967295, %s2830_s12   ;;  %s2609_s14 = sadd.s32 4294967294, %s2830_s12   ;;  %s2830_s12 = sphi %s2858_s12, %s3206_s12   ;;  %s2826_s11 = sphi %s2856_s11, %s3205_s11   ;;  %s2822_s10 = sphi %s2854_s10, %s3204_s10   ;;  %s2818_s9 = sphi %s2852_s9, %s3203_s9  }
   0x7   : > { %p39_p0 = scmp.ne.s32.totalorder %s2822_s10, %s2818_s9  ;;  %p40_p1 = scmp.eq.s32.totalorder %s2873_s13, 0 }
   0x8   : > { %p84_p2 = scmp.eq.s32.totalorder %s2873_s13, 1  ;;  %p90_p3 = scmp.eq.s32.totalorder %s2609_s14, 1 }
   0x9   : > { %p2882_p4 = por %p40_p1, %p39_p0  ;;  %p2610_p5 = scmp.ge.s32.totalorder %s2830_s12, 1 }
   0xa   : > { %p2887_p6 = por %p90_p3, %p39_p0  ;;  %p97_p7 = scmp.lt.s32.totalorder %s2830_s12, 3 }
   0xb   : > { %s108_s19 = sshll.u32 %s3195_s1, 4  ;;  %s2832_s21 = smov [#allocation6]   ;;  %s109_s19 = int_to_ptr.hbm [resolvable:$true] %s108_s19 }
   0xc   : > { %p2895_p8 = pnand %p2610_p5, %p97_p7  ;;  %s110_s22 = sshll.u32 %s2832_s21, 4  ;;  %s111_s22 = int_to_ptr.vmem [resolvable:$true] %s110_s22 }
   0xd   : > { %s2905_s23 = sadd.s32 1, %s2830_s12   ;;  %s2833_s24 = smov 256  }
   0xe   : > { %p2637_p9 = pneg %p2895_p8  ;;  %s2834_s25 = smov 16  }
   0xf   : > { %s23_s26 = ssub.s32 %s2830_s12, %s2905_s23  ;;  %s26_s27 = sadd.s32 1, %s2826_s11 }
  0x10   : > { %p2638_p10 = pnand %p2637_p9, %p40_p1  ;;  %p24_p12 = scmp.eq.s32.totalorder %s23_s26, 0 }
  0x11   : > { %p33_p13 = scmp.ne.s32.totalorder %s2826_s11, %s2822_s10  ;;  %p34_p0 = scmp.eq.s32.totalorder %s2830_s12, 0 }
  0x12   : > { %2640 = dma.hbm_to_vmem [thread:$0]  (!%p2638_p10), %s109_s19, 114688, %s111_s22, [#allocation7], %s2833_s24, %s2833_s24, %s2834_s25  }
  0x13   : > { %s2917_s28 = scalar_select %p24_p12, %s2826_s11, %s26_s27  }
  0x14   : > { %p2921_p3 = por %p84_p2, %p33_p13  ;;  %p2650_p5 = scmp.lt.s32.totalorder %s2830_s12, 2 }
  0x15   : > { %s124_s30 = sand.u32 1, %s2826_s11   ;;  %s2627_s3 = sshll.u32 %s2830_s12, 6 }
  0x16   : > { %p35_p7 = por %p34_p0, %p33_p13  ;;  %s2613_s4 = sshll.u32 %s124_s30, 6 }
  0x17   : > { %s133_s7 = scalar_lea.hbm %s3194_s0, %s2627_s3  ;;  %s128_s14 = scalar_lea.vmem [#allocation3], %s2613_s4 }
  0x18   : > { %s134_s8 = sshll.u32 %s133_s7, 4  ;;  %s136_s17 = sshll.u32 %s128_s14, 4  ;;  %s135_s8 = int_to_ptr.hbm [resolvable:$true] %s134_s8  ;;  %s137_s17 = int_to_ptr.vmem [resolvable:$true] %s136_s17 }
  0x19   : > { %p2931_p9 = pnand %p2650_p5, %p35_p7  ;;  %s125_s19 = scalar_lea.sflag [#allocation4], %s124_s30 }
  0x1a   : > { %s2730_s21 = sshra.s32 %s135_s8, 4  ;;  %s2737_s3 = scalar_lea.hbm %s3194_s0, 128  ;;  %s2731_s21 = int_to_ptr.hbm [resolvable:$true] %s2730_s21 }
  0x1b   : > { %s2732_s22 = scalar_lea.hbm %s2731_s21, 64  ;;  %p2734_p10 = pneg %p2931_p9 }
  0x1c   : > { %p2733_p2 = scmp.ne.s32.totalorder %s2731_s21, %s2732_s22  ;;  %p2738_p0 = scmp.lt.s32.totalorder %s2731_s21, %s3194_s0 }
  0x1d   : > { %p2739_p5 = scmp.lt.s32.totalorder %s2737_s3, %s2732_s22 }
  0x1e   : > { %p2735_p12 = pnand %p2734_p10, %p2733_p2 }
  0x1f   : > { %p2740_p7 = por %p2739_p5, %p2738_p0 }
  0x20   : > { %p2736_p13 = pneg %p2735_p12 }
  0x22   : > { %p2741_p11 = pnand %p2740_p7, %p2736_p13 }
  0x24   : > { %2744 = shalt.err (!%p2741_p11)
}
  0x25   : > { %2644 = dma.hbm_to_vmem [thread:$0]  (!%p2931_p9), %s135_s8, 1024, %s137_s17, %s125_s19, %s2833_s24, %s2833_s24, %s2834_s25  }
  0x26   : > { %148 = sbr.rel (%p2895_p8) target bundleno = 689 (0x2b1), region = 28  ;;  %s2951_s30 = sand.u32 (!%p2895_p8), 1, %s2822_s10  }
  0x27   : > { %s2617_s6 = sshll.u32 (!%p2895_p8), %s2951_s30, 6  ;;  %s151_s7 = scalar_lea.sflag (!%p2895_p8), [#allocation4], %s2951_s30 }
  0x28   : > { %s2955_s14 = scalar_lea.vmem (!%p2895_p8), [#allocation3], %s2617_s6 }
  0x2b   : > { %2805 = dma.done.wait (%p2882_p4), %s151_s7, 1024  }
  0x2c   : > { %2807 = vsyncadd (%p2882_p4), %s151_s7, 4294966272 }
  0x2d   : > { %2809 = dma.done.wait (%p40_p1), [#allocation7], 114688  }
  0x2e   : > { %2811 = vsyncadd (%p40_p1), [#allocation7], 4294852608  ;;  %v409_v0 = vld [vmem:[#allocation6 + $0x4f0] sm:$0xff]  ;;  %v407_v2 = vld [vmem:[#allocation6 + $0x4e0] sm:$0xff]  ;;  %v2835_v46 = vmov 4.0   ;;  %v2836_v49 = vmov 0.0  }
  0x2f   : > { %v473_v1 = vld [vmem:[#allocation6 + $0x6f0] sm:$0xff]  ;;  %532 = vmatpush.msra.mxu0 %v409_v0  ;;  %v471_v4 = vld [vmem:[#allocation6 + $0x6e0] sm:$0xff]  ;;  %2690 = vrcp.f32 %v2835_v46  ;;  %210 = vst [vmem:[#allocation2 + $0x30] sm:$0x7] %v2836_v49  ;;  %v182_v46 = vld [vmem:[%s2955_s14 + $0x8] sm:$0xff]  ;;  %vm515_vm1 = vcmask 1046528  }
  0x30   : > { %572 = vmatpush.msra.mxu2 %v473_v1  ;;  %v441_v3 = vld [vmem:[#allocation6 + $0x5f0] sm:$0xff]  ;;  %v439_v7 = vld [vmem:[#allocation6 + $0x5e0] sm:$0xff]  ;;  %211 = vst [vmem:[#allocation2] sm:$0x7] %v2836_v49  ;;  %v410_v1 = vld [vmem:[#allocation6 + $0x4f8] sm:$0xff]  ;;  %vm997_vm2 = vcmask 1045504  }
  0x31   : > { %v505_v5 = vld [vmem:[#allocation6 + $0x7f0] sm:$0xff]  ;;  %552 = vmatpush.msra.mxu1 %v441_v3  ;;  %533 = vmatpush.msra.mxu0 %v407_v2  ;;  %v503_v9 = vld [vmem:[#allocation6 + $0x7e0] sm:$0xff]  ;;  %212 = vst [vmem:[#allocation2 + $0x18] sm:$0x7] %v2836_v49  ;;  %v474_v2 = vld [vmem:[#allocation6 + $0x6f8] sm:$0xff]  ;;  %vm1321_vm3 = vcmask 1044480  }
  0x32   : > { %592 = vmatpush.msra.mxu3 %v505_v5  ;;  %v405_v6 = vld [vmem:[#allocation6 + $0x4d0] sm:$0xff]  ;;  %573 = vmatpush.msra.mxu2 %v471_v4  ;;  %v403_v11 = vld [vmem:[#allocation6 + $0x4c0] sm:$0xff]  ;;  %213 = vst [vmem:[#allocation2 + $0x10] sm:$0x7] %v2836_v49  ;;  %vm1645_vm4 = vcmask 1043456   ;;  %vm1969_vm5 = vcmask 1042432  }
  0x33   : > { %v469_v8 = vld [vmem:[#allocation6 + $0x6d0] sm:$0xff]  ;;  %553 = vmatpush.msra.mxu1 %v439_v7  ;;  %v467_v12 = vld [vmem:[#allocation6 + $0x6c0] sm:$0xff]  ;;  %534 = vmatpush.msra.mxu0 %v405_v6  ;;  %214 = vst [vmem:[#allocation2 + $0x8] sm:$0x38] %v2836_v49  ;;  %v408_v6 = vld [vmem:[#allocation6 + $0x4e8] sm:$0xff]  ;;  %vm2293_vm6 = vcmask 1041408  }
  0x34   : > { %v437_v10 = vld [vmem:[#allocation6 + $0x5d0] sm:$0xff]  ;;  %593 = vmatpush.msra.mxu3 %v503_v9  ;;  %574 = vmatpush.msra.mxu2 %v469_v8  ;;  %v435_v14 = vld [vmem:[#allocation6 + $0x5c0] sm:$0xff]  ;;  %215 = vst [vmem:[#allocation2 + $0x20] sm:$0x38] %v2836_v49  ;;  %v442_v7 = vld [vmem:[#allocation6 + $0x5f8] sm:$0xff]  ;;  %s2619_s15 = sshll.u32 %s2951_s30, 4 }
  0x35   : > { %v501_v13 = vld [vmem:[#allocation6 + $0x7d0] sm:$0xff]  ;;  %v499_v15 = vld [vmem:[#allocation6 + $0x7c0] sm:$0xff]  ;;  %554 = vmatpush.msra.mxu1 %v437_v10  ;;  %535 = vmatpush.msra.mxu0 %v403_v11  ;;  %v2965_v58 = vpop.eup %2690  ;;  %216 = vst [vmem:[#allocation2 + $0x28] sm:$0x38] %v2836_v49  ;;  %v472_v8 = vld [vmem:[#allocation6 + $0x6e8] sm:$0xff]  ;;  %s180_s20 = scalar_lea.vmem [#allocation8], %s2619_s15 }
  0x36   : > { %594 = vmatpush.msra.mxu3 %v501_v13  ;;  %v401_v16 = vld [vmem:[#allocation6 + $0x4b0] sm:$0xff]  ;;  %575 = vmatpush.msra.mxu2 %v467_v12  ;;  %v399_v20 = vld [vmem:[#allocation6 + $0x4a0] sm:$0xff]  ;;  %217 = vst [vmem:[#allocation2 + $0x38] sm:$0x38] %v2836_v49  ;;  %v196_v3 = vmul.f32 4.0, %v2965_v58  ;;  %v506_v9 = vld [vmem:[#allocation6 + $0x7f8] sm:$0xff]  ;;  %vm200_vm0 = vweird.f32 %v2965_v58 }
  0x37   : > { %v465_v17 = vld [vmem:[#allocation6 + $0x6b0] sm:$0xff]  ;;  %555 = vmatpush.msra.mxu1 %v435_v14  ;;  %v463_v21 = vld [vmem:[#allocation6 + $0x6a0] sm:$0xff]  ;;  %536 = vmatpush.msra.mxu0 %v401_v16  ;;  %v406_v10 = vld [vmem:[#allocation6 + $0x4d8] sm:$0xff]  ;;  %s2628_s24 = sshll.u32 %s2873_s13, 4  ;;  %s2526_s18 = sshll.u32 %s180_s20, 4  ;;  %s2527_s18 = int_to_ptr.vmem [resolvable:$true] %s2526_s18 }
  0x38   : > { %v433_v18 = vld [vmem:[#allocation6 + $0x5b0] sm:$0xff]  ;;  %595 = vmatpush.msra.mxu3 %v499_v15  ;;  %576 = vmatpush.msra.mxu2 %v465_v17  ;;  %v431_v22 = vld [vmem:[#allocation6 + $0x5a0] sm:$0xff]  ;;  %v440_v11 = vld [vmem:[#allocation6 + $0x5e8] sm:$0xff]  ;;  %v197_v12 = vsub.f32 1.0, %v196_v3  ;;  %s2524_s17 = scalar_lea.hbm %s3196_s2, %s2628_s24  ;;  %s2513_s13 = scalar_lea.sflag [#allocation5], %s2951_s30 }
  0x39   : > { %v497_v19 = vld [vmem:[#allocation6 + $0x7b0] sm:$0xff]  ;;  %v495_v23 = vld [vmem:[#allocation6 + $0x7a0] sm:$0xff]  ;;  %556 = vmatpush.msra.mxu1 %v433_v18  ;;  %537 = vmatpush.msra.mxu0 %v399_v20  ;;  %v470_v13 = vld [vmem:[#allocation6 + $0x6d8] sm:$0xff]  ;;  %s2528_s19 = sshll.u32 %s2524_s17, 4  ;;  %s2780_s3 = scalar_lea.hbm %s3196_s2, 32  ;;  %s2529_s19 = int_to_ptr.hbm [resolvable:$true] %s2528_s19 }
  0x3a   : > { %596 = vmatpush.msra.mxu3 %v497_v19  ;;  %v397_v24 = vld [vmem:[#allocation6 + $0x490] sm:$0xff]  ;;  %577 = vmatpush.msra.mxu2 %v463_v21  ;;  %v395_v28 = vld [vmem:[#allocation6 + $0x480] sm:$0xff]  ;;  %v504_v14 = vld [vmem:[#allocation6 + $0x7e8] sm:$0xff]  ;;  %v198_v21 = vmul.f32 %v2965_v58, %v197_v12  ;;  %s2774_s21 = sshra.s32 %s2529_s19, 4  ;;  %s2775_s21 = int_to_ptr.hbm [resolvable:$true] %s2774_s21 }
  0x3b   : > { %v461_v25 = vld [vmem:[#allocation6 + $0x690] sm:$0xff]  ;;  %557 = vmatpush.msra.mxu1 %v431_v22  ;;  %v459_v29 = vld [vmem:[#allocation6 + $0x680] sm:$0xff]  ;;  %538 = vmatpush.msra.mxu0 %v397_v24  ;;  %v404_v15 = vld [vmem:[#allocation6 + $0x4c8] sm:$0xff]  ;;  %s2776_s22 = scalar_lea.hbm %s2775_s21, 16  ;;  %p2781_p11 = scmp.lt.s32.totalorder %s2775_s21, %s3196_s2 }
  0x3c   : > { %v429_v26 = vld [vmem:[#allocation6 + $0x590] sm:$0xff]  ;;  %597 = vmatpush.msra.mxu3 %v495_v23  ;;  %578 = vmatpush.msra.mxu2 %v461_v25  ;;  %v427_v30 = vld [vmem:[#allocation6 + $0x580] sm:$0xff]  ;;  %v438_v16 = vld [vmem:[#allocation6 + $0x5d8] sm:$0xff]  ;;  %p2777_p1 = scmp.ne.s32.totalorder %s2775_s21, %s2776_s22  ;;  %p2782_p9 = scmp.lt.s32.totalorder %s2780_s3, %s2776_s22 }
  0x3d   : > { %v493_v27 = vld [vmem:[#allocation6 + $0x790] sm:$0xff]  ;;  %v491_v31 = vld [vmem:[#allocation6 + $0x780] sm:$0xff]  ;;  %558 = vmatpush.msra.mxu1 %v429_v26  ;;  %539 = vmatpush.msra.mxu0 %v395_v28  ;;  %v468_v17 = vld [vmem:[#allocation6 + $0x6c8] sm:$0xff] }
  0x3e   : > { %598 = vmatpush.msra.mxu3 %v493_v27  ;;  %v393_v32 = vld [vmem:[#allocation6 + $0x470] sm:$0xff]  ;;  %579 = vmatpush.msra.mxu2 %v459_v29  ;;  %v391_v36 = vld [vmem:[#allocation6 + $0x460] sm:$0xff]  ;;  %v502_v18 = vld [vmem:[#allocation6 + $0x7d8] sm:$0xff]  ;;  %p2778_p4 = pnand %p2777_p1, %p2921_p3  ;;  %p2783_p2 = por %p2782_p9, %p2781_p11 }
  0x3f   : > { %v457_v33 = vld [vmem:[#allocation6 + $0x670] sm:$0xff]  ;;  %559 = vmatpush.msra.mxu1 %v427_v30  ;;  %v455_v37 = vld [vmem:[#allocation6 + $0x660] sm:$0xff]  ;;  %540 = vmatpush.msra.mxu0 %v393_v32  ;;  %v402_v19 = vld [vmem:[#allocation6 + $0x4b8] sm:$0xff] }
  0x40   : > { %v425_v34 = vld [vmem:[#allocation6 + $0x570] sm:$0xff]  ;;  %599 = vmatpush.msra.mxu3 %v491_v31  ;;  %580 = vmatpush.msra.mxu2 %v457_v33  ;;  %v423_v38 = vld [vmem:[#allocation6 + $0x560] sm:$0xff]  ;;  %v436_v20 = vld [vmem:[#allocation6 + $0x5c8] sm:$0xff]  ;;  %p2779_p8 = pneg %p2778_p4 }
  0x41   : > { %v489_v35 = vld [vmem:[#allocation6 + $0x770] sm:$0xff]  ;;  %v487_v39 = vld [vmem:[#allocation6 + $0x760] sm:$0xff]  ;;  %560 = vmatpush.msra.mxu1 %v425_v34  ;;  %541 = vmatpush.msra.mxu0 %v391_v36  ;;  %v466_v22 = vld [vmem:[#allocation6 + $0x6b8] sm:$0xff]  ;;  %v199_v34 = vadd.f32 %v2965_v58, %v198_v21 }
  0x42   : > { %600 = vmatpush.msra.mxu3 %v489_v35  ;;  %v389_v40 = vld [vmem:[#allocation6 + $0x450] sm:$0xff]  ;;  %581 = vmatpush.msra.mxu2 %v455_v37  ;;  %v387_v44 = vld [vmem:[#allocation6 + $0x440] sm:$0xff]  ;;  %v500_v23 = vld [vmem:[#allocation6 + $0x7c8] sm:$0xff]  ;;  %p2784_p10 = pnand %p2783_p2, %p2779_p8 }
  0x43   : > { %v453_v41 = vld [vmem:[#allocation6 + $0x650] sm:$0xff]  ;;  %561 = vmatpush.msra.mxu1 %v423_v38  ;;  %v451_v45 = vld [vmem:[#allocation6 + $0x640] sm:$0xff]  ;;  %542 = vmatpush.msra.mxu0 %v389_v40  ;;  %v400_v24 = vld [vmem:[#allocation6 + $0x4a8] sm:$0xff] }
  0x44   : > { %v421_v42 = vld [vmem:[#allocation6 + $0x550] sm:$0xff]  ;;  %601 = vmatpush.msra.mxu3 %v487_v39  ;;  %582 = vmatpush.msra.mxu2 %v453_v41  ;;  %v419_v47 = vld [vmem:[#allocation6 + $0x540] sm:$0xff]  ;;  %v434_v25 = vld [vmem:[#allocation6 + $0x5b8] sm:$0xff] }
  0x45   : > { %v485_v43 = vld [vmem:[#allocation6 + $0x750] sm:$0xff]  ;;  %v483_v48 = vld [vmem:[#allocation6 + $0x740] sm:$0xff]  ;;  %562 = vmatpush.msra.mxu1 %v421_v42  ;;  %543 = vmatpush.msra.mxu0 %v387_v44  ;;  %v464_v26 = vld [vmem:[#allocation6 + $0x6a8] sm:$0xff] }
  0x46   : > { %602 = vmatpush.msra.mxu3 %v485_v43  ;;  %v385_v50 = vld [vmem:[#allocation6 + $0x430] sm:$0xff]  ;;  %583 = vmatpush.msra.mxu2 %v451_v45  ;;  %v383_v54 = vld [vmem:[#allocation6 + $0x420] sm:$0xff]  ;;  %v498_v27 = vld [vmem:[#allocation6 + $0x7b8] sm:$0xff] }
  0x47   : > { %v449_v51 = vld [vmem:[#allocation6 + $0x630] sm:$0xff]  ;;  %563 = vmatpush.msra.mxu1 %v419_v47  ;;  %v447_v55 = vld [vmem:[#allocation6 + $0x620] sm:$0xff]  ;;  %544 = vmatpush.msra.mxu0 %v385_v50  ;;  %v398_v28 = vld [vmem:[#allocation6 + $0x498] sm:$0xff] }
  0x48   : > { %v417_v52 = vld [vmem:[#allocation6 + $0x530] sm:$0xff]  ;;  %603 = vmatpush.msra.mxu3 %v483_v48  ;;  %584 = vmatpush.msra.mxu2 %v449_v51  ;;  %v415_v56 = vld [vmem:[#allocation6 + $0x520] sm:$0xff]  ;;  %v432_v29 = vld [vmem:[#allocation6 + $0x5a8] sm:$0xff]  ;;  %v201_v48 = vsel %vm200_vm0, %v2965_v58, %v199_v34 }
  0x49   : > { %v481_v53 = vld [vmem:[#allocation6 + $0x730] sm:$0xff]  ;;  %v479_v57 = vld [vmem:[#allocation6 + $0x720] sm:$0xff]  ;;  %564 = vmatpush.msra.mxu1 %v417_v52  ;;  %545 = vmatpush.msra.mxu0 %v383_v54  ;;  %v462_v30 = vld [vmem:[#allocation6 + $0x698] sm:$0xff] }
  0x4a   : > { %604 = vmatpush.msra.mxu3 %v481_v53  ;;  %v381_v59 = vld [vmem:[#allocation6 + $0x410] sm:$0xff]  ;;  %585 = vmatpush.msra.mxu2 %v447_v55  ;;  %v379_v63 = vld [vmem:[#allocation6 + $0x400] sm:$0xff]  ;;  %v496_v31 = vld [vmem:[#allocation6 + $0x7a8] sm:$0xff] }
  0x4b   : > { %v445_v60 = vld [vmem:[#allocation6 + $0x610] sm:$0xff]  ;;  %565 = vmatpush.msra.mxu1 %v415_v56  ;;  %v443_v0 = vld [vmem:[#allocation6 + $0x600] sm:$0xff]  ;;  %546 = vmatpush.msra.mxu0 %v381_v59  ;;  %v396_v32 = vld [vmem:[#allocation6 + $0x488] sm:$0xff] }
  0x4c   : > { %v413_v61 = vld [vmem:[#allocation6 + $0x510] sm:$0xff]  ;;  %605 = vmatpush.msra.mxu3 %v479_v57  ;;  %586 = vmatpush.msra.mxu2 %v445_v60  ;;  %v411_v4 = vld [vmem:[#allocation6 + $0x500] sm:$0xff]  ;;  %v430_v33 = vld [vmem:[#allocation6 + $0x598] sm:$0xff] }
  0x4d   : > { %v477_v62 = vld [vmem:[#allocation6 + $0x710] sm:$0xff]  ;;  %566 = vmatpush.msra.mxu1 %v413_v61  ;;  %v475_v5 = vld [vmem:[#allocation6 + $0x700] sm:$0xff]  ;;  %547 = vmatpush.msra.mxu0 %v379_v63  ;;  %v460_v38 = vld [vmem:[#allocation6 + $0x688] sm:$0xff] }
  0x4e   : > { %606 = vmatpush.msra.mxu3 %v477_v62  ;;  %587 = vmatpush.msra.mxu2 %v443_v0  ;;  %v181_v35 = vld [vmem:[%s2955_s14] sm:$0xff]  ;;  %v183_v36 = vld [vmem:[%s2955_s14 + $0x10] sm:$0xff]  ;;  %v494_v39 = vld [vmem:[#allocation6 + $0x798] sm:$0xff] }
  0x4f   : > { %612 = vmatpush.msrb.mxu0 %v410_v1  ;;  %567 = vmatpush.msra.mxu1 %v411_v4  ;;  %v185_v37 = vld [vmem:[%s2955_s14 + $0x20] sm:$0xff]  ;;  %v187_v40 = vld [vmem:[%s2955_s14 + $0x30] sm:$0xff]  ;;  %v189_v41 = vadd.f32 %v183_v36, %v181_v35  ;;  %v394_v43 = vld [vmem:[#allocation6 + $0x478] sm:$0xff] }
  0x50   : > { %652 = vmatpush.msrb.mxu2 %v474_v2  ;;  %607 = vmatpush.msra.mxu3 %v475_v5  ;;  %v204_v42 = vmax.f32 %v181_v35, %v185_v37  ;;  %v428_v44 = vld [vmem:[#allocation6 + $0x588] sm:$0xff]  ;;  %v205_v45 = vmax.f32 %v183_v36, %v187_v40  ;;  %v184_v49 = vld [vmem:[%s2955_s14 + $0x18] sm:$0xff] }
  0x51   : > { %613 = vmatpush.msrb.mxu0 %v408_v6  ;;  %632 = vmatpush.msrb.mxu1 %v442_v7  ;;  %v190_v47 = vadd.f32 %v189_v41, %v185_v37  ;;  %v186_v50 = vld [vmem:[%s2955_s14 + $0x28] sm:$0xff]  ;;  %v188_v51 = vld [vmem:[%s2955_s14 + $0x38] sm:$0xff]  ;;  %v192_v55 = vadd.f32 %v184_v49, %v182_v46 }
  0x52   : > { %653 = vmatpush.msrb.mxu2 %v472_v8  ;;  %672 = vmatpush.msrb.mxu3 %v506_v9  ;;  %v458_v52 = vld [vmem:[#allocation6 + $0x678] sm:$0xff]  ;;  %v492_v53 = vld [vmem:[#allocation6 + $0x788] sm:$0xff]  ;;  %v206_v54 = vmax.f32 %v204_v42, %v205_v45  ;;  %v207_v56 = vmax.f32 %v182_v46, %v186_v50  ;;  %v208_v61 = vmax.f32 %v184_v49, %v188_v51  ;;  %v336_v42 = vld [vmem:[#allocation6 + $0x2f0] sm:$0xff] }
  0x53   : > { %614 = vmatpush.msrb.mxu0 %v406_v10  ;;  %633 = vmatpush.msrb.mxu1 %v440_v11  ;;  %v392_v57 = vld [vmem:[#allocation6 + $0x468] sm:$0xff]  ;;  %v426_v59 = vld [vmem:[#allocation6 + $0x578] sm:$0xff]  ;;  %v191_v60 = vadd.f32 %v190_v47, %v187_v40  ;;  %v193_v0 = vadd.f32 %v192_v55, %v186_v50 }
  0x54   : > { %654 = vmatpush.msrb.mxu2 %v470_v13  ;;  %673 = vmatpush.msrb.mxu3 %v504_v14  ;;  %v456_v62 = vld [vmem:[#allocation6 + $0x668] sm:$0xff]  ;;  %v490_v58 = vld [vmem:[#allocation6 + $0x778] sm:$0xff]  ;;  %v230_v63 = vrot.slane %v206_v54, 5  ;;  %v209_v4 = vmax.f32 %v207_v56, %v208_v61  ;;  %v270_v54 = vld [vmem:[#allocation6 + $0xe0] sm:$0xff] }
  0x55   : > { %615 = vmatpush.msrb.mxu0 %v404_v15  ;;  %634 = vmatpush.msrb.mxu1 %v438_v16  ;;  %v390_v1 = vld [vmem:[#allocation6 + $0x458] sm:$0xff]  ;;  %v424_v2 = vld [vmem:[#allocation6 + $0x568] sm:$0xff]  ;;  %v202_v3 = vmul.f32 %v201_v48, %v191_v60  ;;  %v194_v7 = vadd.f32 %v193_v0, %v188_v51  ;;  %v334_v51 = vld [vmem:[#allocation6 + $0x2e0] sm:$0xff] }
  0x56   : > { %655 = vmatpush.msrb.mxu2 %v468_v17  ;;  %674 = vmatpush.msrb.mxu3 %v502_v18  ;;  %v454_v5 = vld [vmem:[#allocation6 + $0x658] sm:$0xff]  ;;  %v488_v6 = vld [vmem:[#allocation6 + $0x768] sm:$0xff]  ;;  %234 = vst [vmem:[#allocation2 + $0x18] sm:$0xf8] %v230_v63  ;;  %v231_v11 = vrot.slane %v209_v4, 5  ;;  %v304_v56 = vld [vmem:[#allocation6 + $0x1f0] sm:$0xff] }
  0x57   : > { %616 = vmatpush.msrb.mxu0 %v402_v19  ;;  %635 = vmatpush.msrb.mxu1 %v436_v20  ;;  %v388_v8 = vld [vmem:[#allocation6 + $0x448] sm:$0xff]  ;;  %v422_v9 = vld [vmem:[#allocation6 + $0x558] sm:$0xff]  ;;  %v220_v10 = vrot.slane %v202_v3, 5  ;;  %236 = vst [vmem:[#allocation2 + $0x28] sm:$0x7] %v230_v63  ;;  %v203_v14 = vmul.f32 %v201_v48, %v194_v7  ;;  %v268_v60 = vld [vmem:[#allocation6 + $0xd0] sm:$0xff] }
  0x58   : > { %656 = vmatpush.msrb.mxu2 %v466_v22  ;;  %675 = vmatpush.msrb.mxu3 %v500_v23  ;;  %v452_v12 = vld [vmem:[#allocation6 + $0x648] sm:$0xff]  ;;  %v486_v13 = vld [vmem:[#allocation6 + $0x758] sm:$0xff]  ;;  %235 = vst [vmem:[#allocation2 + $0x10] sm:$0xf8] %v231_v11  ;;  %v366_v63 = vld [vmem:[#allocation6 + $0x3e0] sm:$0xff] }
  0x59   : > { %617 = vmatpush.msrb.mxu0 %v400_v24  ;;  %636 = vmatpush.msrb.mxu1 %v434_v25  ;;  %v386_v15 = vld [vmem:[#allocation6 + $0x438] sm:$0xff]  ;;  %v420_v16 = vld [vmem:[#allocation6 + $0x548] sm:$0xff]  ;;  %224 = vst [vmem:[#allocation2 + $0x30] sm:$0xf8] %v220_v10  ;;  %v221_v19 = vrot.slane %v203_v14, 5  ;;  %v266_v0 = vld [vmem:[#allocation6 + $0xc0] sm:$0xff] }
  0x5a   : > { %657 = vmatpush.msrb.mxu2 %v464_v26  ;;  %676 = vmatpush.msrb.mxu3 %v498_v27  ;;  %v450_v17 = vld [vmem:[#allocation6 + $0x638] sm:$0xff]  ;;  %v484_v18 = vld [vmem:[#allocation6 + $0x748] sm:$0xff]  ;;  %226 = vst [vmem:[#allocation2 + $0x8] sm:$0x7] %v220_v10  ;;  %v364_v3 = vld [vmem:[#allocation6 + $0x3d0] sm:$0xff] }
  0x5b   : > { %618 = vmatpush.msrb.mxu0 %v398_v28  ;;  %637 = vmatpush.msrb.mxu1 %v432_v29  ;;  %v384_v20 = vld [vmem:[#allocation6 + $0x428] sm:$0xff]  ;;  %v418_v21 = vld [vmem:[#allocation6 + $0x538] sm:$0xff]  ;;  %225 = vst [vmem:[#allocation2] sm:$0xf8] %v221_v19  ;;  %v264_v4 = vld [vmem:[#allocation6 + $0xb0] sm:$0xff] }
  0x5c   : > { %658 = vmatpush.msrb.mxu2 %v462_v30  ;;  %677 = vmatpush.msrb.mxu3 %v496_v31  ;;  %v448_v22 = vld [vmem:[#allocation6 + $0x628] sm:$0xff]  ;;  %v482_v23 = vld [vmem:[#allocation6 + $0x738] sm:$0xff]  ;;  %227 = vst [vmem:[#allocation2 + $0x20] sm:$0x7] %v221_v19  ;;  %v362_v7 = vld [vmem:[#allocation6 + $0x3c0] sm:$0xff] }
  0x5d   : > { %619 = vmatpush.msrb.mxu0 %v396_v32  ;;  %638 = vmatpush.msrb.mxu1 %v430_v33  ;;  %v382_v24 = vld [vmem:[#allocation6 + $0x418] sm:$0xff]  ;;  %v416_v25 = vld [vmem:[#allocation6 + $0x528] sm:$0xff]  ;;  %237 = vst [vmem:[#allocation2 + $0x38] sm:$0x7] %v231_v11  ;;  %v326_v10 = vld [vmem:[#allocation6 + $0x2a0] sm:$0xff] }
  0x5e   : > { %659 = vmatpush.msrb.mxu2 %v460_v38  ;;  %678 = vmatpush.msrb.mxu3 %v494_v39  ;;  %v446_v26 = vld [vmem:[#allocation6 + $0x618] sm:$0xff]  ;;  %v480_v28 = vld [vmem:[#allocation6 + $0x728] sm:$0xff]  ;;  %v360_v11 = vld [vmem:[#allocation6 + $0x3b0] sm:$0xff] }
  0x5f   : > { %620 = vmatpush.msrb.mxu0 %v394_v43  ;;  %639 = vmatpush.msrb.mxu1 %v428_v44  ;;  %v372_v27 = vld [vmem:[#allocation2 + $0x18] sm:$0xfe]  ;;  %v376_v29 = vld [vmem:[#allocation2 + $0x28] sm:$0x1]  ;;  %v373_v43 = vld [vmem:[#allocation2 + $0x10] sm:$0xfe] }
  0x60   : > { %660 = vmatpush.msrb.mxu2 %v458_v52  ;;  %679 = vmatpush.msrb.mxu3 %v492_v53  ;;  %v522_v30 = vrot.slane %v372_v27, 1  ;;  %v380_v31 = vld [vmem:[#allocation6 + $0x408] sm:$0xff]  ;;  %v414_v32 = vld [vmem:[#allocation6 + $0x518] sm:$0xff]  ;;  %v523_v33 = vrot.slane %v376_v29, 1  ;;  %v370_v36 = vld [vmem:[#allocation2 + $0x30] sm:$0xfe] }
  0x61   : > { %621 = vmatpush.msrb.mxu0 %v392_v57  ;;  %640 = vmatpush.msrb.mxu1 %v426_v59  ;;  %v444_v34 = vld [vmem:[#allocation6 + $0x608] sm:$0xff]  ;;  %v478_v35 = vld [vmem:[#allocation6 + $0x718] sm:$0xff]  ;;  %v516_v38 = vrot.slane %v370_v36, 1  ;;  %v272_v44 = vld [vmem:[#allocation6 + $0xf0] sm:$0xff]  ;;  %v525_v50 = vrot.slane %v373_v43, 1 }
  0x62   : > { %661 = vmatpush.msrb.mxu2 %v456_v62  ;;  %680 = vmatpush.msrb.mxu3 %v490_v58  ;;  %v374_v37 = vld [vmem:[#allocation2 + $0x8] sm:$0x1]  ;;  %v2983_v39 = vsel %vm515_vm1, %v522_v30, %v523_v33  ;;  %v371_v46 = vld [vmem:[#allocation2] sm:$0xfe]  ;;  %v368_v59 = vld [vmem:[#allocation6 + $0x3f0] sm:$0xff] }
  0x63   : > { %622 = vmatpush.msrb.mxu0 %v390_v1  ;;  %641 = vmatpush.msrb.mxu1 %v424_v2  ;;  %v412_v40 = vld [vmem:[#allocation6 + $0x508] sm:$0xff]  ;;  %v517_v41 = vrot.slane %v374_v37, 1  ;;  %v375_v48 = vld [vmem:[#allocation2 + $0x20] sm:$0x1]  ;;  %v519_v49 = vrot.slane %v371_v46, 1  ;;  %v332_v58 = vld [vmem:[#allocation6 + $0x2d0] sm:$0xff] }
  0x64   : > { %662 = vmatpush.msrb.mxu2 %v454_v5  ;;  %681 = vmatpush.msrb.mxu3 %v488_v6  ;;  %v476_v45 = vld [vmem:[#allocation6 + $0x708] sm:$0xff]  ;;  %v520_v52 = vrot.slane %v375_v48, 1  ;;  %v377_v53 = vld [vmem:[#allocation2 + $0x38] sm:$0x1]  ;;  %v302_v62 = vld [vmem:[#allocation6 + $0x1e0] sm:$0xff] }
  0x65   : > { %623 = vmatpush.msrb.mxu0 %v388_v8  ;;  %642 = vmatpush.msrb.mxu1 %v422_v9  ;;  %v2986_v47 = vsel %vm515_vm1, %v516_v38, %v517_v41  ;;  %v526_v55 = vrot.slane %v377_v53, 1  ;;  %v300_v1 = vld [vmem:[#allocation6 + $0x1d0] sm:$0xff]  ;;  %v330_v2 = vld [vmem:[#allocation6 + $0x2c0] sm:$0xff]  ;;  %v3004_v53 = vld [vmem:[#allocation2 + $0x18] sm:$0xff] }
  0x66   : > { %663 = vmatpush.msrb.mxu2 %v452_v12  ;;  %682 = vmatpush.msrb.mxu3 %v486_v13  ;;  %v2991_v57 = vsel %vm515_vm1, %v519_v49, %v520_v52  ;;  %v298_v5 = vld [vmem:[#allocation6 + $0x1c0] sm:$0xff]  ;;  %v328_v6 = vld [vmem:[#allocation6 + $0x2b0] sm:$0xff] }
  0x67   : > { %624 = vmatpush.msrb.mxu0 %v386_v15  ;;  %643 = vmatpush.msrb.mxu1 %v420_v16  ;;  %v2995_v61 = vsel %vm515_vm1, %v525_v50, %v526_v55  ;;  %v262_v8 = vld [vmem:[#allocation6 + $0xa0] sm:$0xff]  ;;  %v296_v9 = vld [vmem:[#allocation6 + $0x1b0] sm:$0xff]  ;;  %v337_v55 = vld [vmem:[#allocation6 + $0x2f8] sm:$0xff] }
  0x68   : > { %664 = vmatpush.msrb.mxu2 %v450_v17  ;;  %683 = vmatpush.msrb.mxu3 %v484_v18  ;;  %v260_v12 = vld [vmem:[#allocation6 + $0x90] sm:$0xff]  ;;  %v294_v13 = vld [vmem:[#allocation6 + $0x1a0] sm:$0xff] }
  0x69   : > { %625 = vmatpush.msrb.mxu0 %v384_v20  ;;  %644 = vmatpush.msrb.mxu1 %v418_v21  ;;  %v324_v14 = vld [vmem:[#allocation6 + $0x290] sm:$0xff]  ;;  %v358_v15 = vld [vmem:[#allocation6 + $0x3a0] sm:$0xff] }
  0x6a   : > { %665 = vmatpush.msrb.mxu2 %v448_v22  ;;  %684 = vmatpush.msrb.mxu3 %v482_v23  ;;  %v258_v16 = vld [vmem:[#allocation6 + $0x80] sm:$0xff]  ;;  %v292_v17 = vld [vmem:[#allocation6 + $0x190] sm:$0xff] }
  0x6b   : > { %626 = vmatpush.msrb.mxu0 %v382_v24  ;;  %645 = vmatpush.msrb.mxu1 %v416_v25  ;;  %v322_v18 = vld [vmem:[#allocation6 + $0x280] sm:$0xff]  ;;  %v356_v19 = vld [vmem:[#allocation6 + $0x390] sm:$0xff] }
  0x6c   : > { %666 = vmatpush.msrb.mxu2 %v446_v26  ;;  %685 = vmatpush.msrb.mxu3 %v480_v28  ;;  %v256_v20 = vld [vmem:[#allocation6 + $0x70] sm:$0xff]  ;;  %v290_v21 = vld [vmem:[#allocation6 + $0x180] sm:$0xff] }
  0x6d   : > { %627 = vmatpush.msrb.mxu0 %v380_v31  ;;  %646 = vmatpush.msrb.mxu1 %v414_v32  ;;  %v320_v22 = vld [vmem:[#allocation6 + $0x270] sm:$0xff]  ;;  %v354_v23 = vld [vmem:[#allocation6 + $0x380] sm:$0xff] }
  0x6e   : > { %667 = vmatpush.msrb.mxu2 %v444_v34  ;;  %686 = vmatpush.msrb.mxu3 %v478_v35  ;;  %v254_v24 = vld [vmem:[#allocation6 + $0x60] sm:$0xff]  ;;  %v288_v25 = vld [vmem:[#allocation6 + $0x170] sm:$0xff] }
  0x6f   : > { %588 = vmatmul.f32.vlgmr.msra.gmra.mxu2 %v2983_v39  ;;  %647 = vmatpush.msrb.mxu1 %v412_v40  ;;  %v318_v26 = vld [vmem:[#allocation6 + $0x260] sm:$0xff]  ;;  %v352_v27 = vld [vmem:[#allocation6 + $0x370] sm:$0xff] }
  0x70   : > { %548 = vmatmul.f32.vlgmr.msra.gmra.mxu0 %v2986_v47  ;;  %732 = vmatpush.msra.mxu2 %v336_v42  ;;  %v252_v28 = vld [vmem:[#allocation6 + $0x50] sm:$0xff]  ;;  %v286_v29 = vld [vmem:[#allocation6 + $0x160] sm:$0xff] }
  0x71   : > { %692 = vmatpush.msra.mxu0 %v272_v44  ;;  %687 = vmatpush.msrb.mxu3 %v476_v45  ;;  %v316_v30 = vld [vmem:[#allocation6 + $0x250] sm:$0xff]  ;;  %v350_v31 = vld [vmem:[#allocation6 + $0x360] sm:$0xff] }
  0x72   : > { %733 = vmatpush.msra.mxu2 %v334_v51  ;;  %568 = vmatmul.f32.vlgmr.msra.gmra.mxu1 %v2991_v57  ;;  %v250_v32 = vld [vmem:[#allocation6 + $0x40] sm:$0xff]  ;;  %v284_v33 = vld [vmem:[#allocation6 + $0x150] sm:$0xff] }
  0x73   : > { %693 = vmatpush.msra.mxu0 %v270_v54  ;;  %608 = vmatmul.f32.vlgmr.msra.gmra.mxu3 %v2995_v61  ;;  %v314_v34 = vld [vmem:[#allocation6 + $0x240] sm:$0xff]  ;;  %v348_v35 = vld [vmem:[#allocation6 + $0x350] sm:$0xff]  ;;  %v273_v54 = vld [vmem:[#allocation6 + $0xf8] sm:$0xff] }
  0x74   : > { %712 = vmatpush.msra.mxu1 %v304_v56  ;;  %752 = vmatpush.msra.mxu3 %v368_v59  ;;  %v248_v36 = vld [vmem:[#allocation6 + $0x30] sm:$0xff]  ;;  %v282_v37 = vld [vmem:[#allocation6 + $0x140] sm:$0xff] }
  0x75   : > { %694 = vmatpush.msra.mxu0 %v268_v60  ;;  %734 = vmatpush.msra.mxu2 %v332_v58  ;;  %v312_v38 = vld [vmem:[#allocation6 + $0x230] sm:$0xff]  ;;  %v346_v40 = vld [vmem:[#allocation6 + $0x340] sm:$0xff]  ;;  %v335_v58 = vld [vmem:[#allocation6 + $0x2e8] sm:$0xff] }
  0x76   : > { %713 = vmatpush.msra.mxu1 %v302_v62  ;;  %753 = vmatpush.msra.mxu3 %v366_v63  ;;  %v246_v41 = vld [vmem:[#allocation6 + $0x20] sm:$0xff]  ;;  %v280_v42 = vld [vmem:[#allocation6 + $0x130] sm:$0xff]  ;;  %v305_v62 = vld [vmem:[#allocation6 + $0x1f8] sm:$0xff] }
  0x77   : > { %695 = vmatpush.msra.mxu0 %v266_v0  ;;  %735 = vmatpush.msra.mxu2 %v330_v2  ;;  %v310_v43 = vld [vmem:[#allocation6 + $0x220] sm:$0xff]  ;;  %v344_v44 = vld [vmem:[#allocation6 + $0x330] sm:$0xff]  ;;  %v369_v63 = vld [vmem:[#allocation6 + $0x3f8] sm:$0xff] }
  0x78   : > { %714 = vmatpush.msra.mxu1 %v300_v1  ;;  %754 = vmatpush.msra.mxu3 %v364_v3  ;;  %v244_v45 = vld [vmem:[#allocation6 + $0x10] sm:$0xff]  ;;  %v278_v46 = vld [vmem:[#allocation6 + $0x120] sm:$0xff]  ;;  %v269_v0 = vld [vmem:[#allocation6 + $0xd8] sm:$0xff] }
  0x79   : > { %696 = vmatpush.msra.mxu0 %v264_v4  ;;  %736 = vmatpush.msra.mxu2 %v328_v6  ;;  %v308_v48 = vld [vmem:[#allocation6 + $0x210] sm:$0xff]  ;;  %v306_v50 = vld [vmem:[#allocation6 + $0x200] sm:$0xff]  ;;  %v303_v1 = vld [vmem:[#allocation6 + $0x1e8] sm:$0xff] }
  0x7a   : > { %715 = vmatpush.msra.mxu1 %v298_v5  ;;  %755 = vmatpush.msra.mxu3 %v362_v7  ;;  %v276_v49 = vld [vmem:[#allocation6 + $0x110] sm:$0xff]  ;;  %v274_v56 = vld [vmem:[#allocation6 + $0x100] sm:$0xff]  ;;  %v333_v2 = vld [vmem:[#allocation6 + $0x2d8] sm:$0xff] }
  0x7b   : > { %697 = vmatpush.msra.mxu0 %v262_v8  ;;  %737 = vmatpush.msra.mxu2 %v326_v10  ;;  %v340_v51 = vld [vmem:[#allocation6 + $0x310] sm:$0xff]  ;;  %v3007_v59 = vld [vmem:[#allocation2] sm:$0xff]  ;;  %v367_v3 = vld [vmem:[#allocation6 + $0x3e8] sm:$0xff] }
  0x7c   : > { %716 = vmatpush.msra.mxu1 %v296_v9  ;;  %756 = vmatpush.msra.mxu3 %v360_v11  ;;  %v3002_v52 = vld [vmem:[#allocation2 + $0x30] sm:$0xff]  ;;  %v267_v4 = vld [vmem:[#allocation6 + $0xc8] sm:$0xff]  ;;  %v301_v5 = vld [vmem:[#allocation6 + $0x1d8] sm:$0xff] }
  0x7d   : > { %698 = vmatpush.msra.mxu0 %v260_v12  ;;  %738 = vmatpush.msra.mxu2 %v324_v14  ;;  %v3010_v60 = vld [vmem:[#allocation2 + $0x10] sm:$0xff]  ;;  %v331_v6 = vld [vmem:[#allocation6 + $0x2c8] sm:$0xff]  ;;  %v365_v7 = vld [vmem:[#allocation6 + $0x3d8] sm:$0xff] }
  0x7e   : > { %717 = vmatpush.msra.mxu1 %v294_v13  ;;  %757 = vmatpush.msra.mxu3 %v358_v15  ;;  %v265_v8 = vld [vmem:[#allocation6 + $0xb8] sm:$0xff]  ;;  %v299_v9 = vld [vmem:[#allocation6 + $0x1c8] sm:$0xff] }
  0x7f   : > { %699 = vmatpush.msra.mxu0 %v258_v16  ;;  %739 = vmatpush.msra.mxu2 %v322_v18  ;;  %v329_v10 = vld [vmem:[#allocation6 + $0x2b8] sm:$0xff]  ;;  %v363_v11 = vld [vmem:[#allocation6 + $0x3c8] sm:$0xff] }
  0x80   : > { %718 = vmatpush.msra.mxu1 %v292_v17  ;;  %758 = vmatpush.msra.mxu3 %v356_v19  ;;  %v263_v12 = vld [vmem:[#allocation6 + $0xa8] sm:$0xff]  ;;  %v297_v13 = vld [vmem:[#allocation6 + $0x1b8] sm:$0xff] }
  0x81   : > { %700 = vmatpush.msra.mxu0 %v256_v20  ;;  %740 = vmatpush.msra.mxu2 %v320_v22  ;;  %v327_v14 = vld [vmem:[#allocation6 + $0x2a8] sm:$0xff]  ;;  %v361_v15 = vld [vmem:[#allocation6 + $0x3b8] sm:$0xff] }
  0x82   : > { %719 = vmatpush.msra.mxu1 %v290_v21  ;;  %759 = vmatpush.msra.mxu3 %v354_v23  ;;  %v261_v16 = vld [vmem:[#allocation6 + $0x98] sm:$0xff]  ;;  %v295_v17 = vld [vmem:[#allocation6 + $0x1a8] sm:$0xff] }
  0x83   : > { %701 = vmatpush.msra.mxu0 %v254_v24  ;;  %741 = vmatpush.msra.mxu2 %v318_v26  ;;  %v325_v18 = vld [vmem:[#allocation6 + $0x298] sm:$0xff]  ;;  %v359_v19 = vld [vmem:[#allocation6 + $0x3a8] sm:$0xff] }
  0x84   : > { %720 = vmatpush.msra.mxu1 %v288_v25  ;;  %760 = vmatpush.msra.mxu3 %v352_v27  ;;  %v259_v20 = vld [vmem:[#allocation6 + $0x88] sm:$0xff]  ;;  %v293_v21 = vld [vmem:[#allocation6 + $0x198] sm:$0xff] }
  0x85   : > { %702 = vmatpush.msra.mxu0 %v252_v28  ;;  %742 = vmatpush.msra.mxu2 %v316_v30  ;;  %v323_v22 = vld [vmem:[#allocation6 + $0x288] sm:$0xff]  ;;  %v357_v23 = vld [vmem:[#allocation6 + $0x398] sm:$0xff] }
  0x86   : > { %721 = vmatpush.msra.mxu1 %v286_v29  ;;  %761 = vmatpush.msra.mxu3 %v350_v31  ;;  %v257_v24 = vld [vmem:[#allocation6 + $0x78] sm:$0xff]  ;;  %v291_v25 = vld [vmem:[#allocation6 + $0x188] sm:$0xff] }
  0x87   : > { %703 = vmatpush.msra.mxu0 %v250_v32  ;;  %743 = vmatpush.msra.mxu2 %v314_v34  ;;  %v321_v26 = vld [vmem:[#allocation6 + $0x278] sm:$0xff]  ;;  %v355_v27 = vld [vmem:[#allocation6 + $0x388] sm:$0xff] }
  0x88   : > { %722 = vmatpush.msra.mxu1 %v284_v33  ;;  %762 = vmatpush.msra.mxu3 %v348_v35  ;;  %v255_v28 = vld [vmem:[#allocation6 + $0x68] sm:$0xff]  ;;  %v289_v29 = vld [vmem:[#allocation6 + $0x178] sm:$0xff] }
  0x89   : > { %628 = vmatmul.f32.vlgmr.msrb.gmra.mxu0 %v2986_v47  ;;  %668 = vmatmul.f32.vlgmr.msrb.gmra.mxu2 %v2983_v39  ;;  %v342_v47 = vld [vmem:[#allocation6 + $0x320] sm:$0xff]  ;;  %v319_v30 = vld [vmem:[#allocation6 + $0x268] sm:$0xff]  ;;  %v353_v31 = vld [vmem:[#allocation6 + $0x378] sm:$0xff] }
  0x8a   : > { %704 = vmatpush.msra.mxu0 %v248_v36  ;;  %723 = vmatpush.msra.mxu1 %v282_v37  ;;  %v242_v39 = vld [vmem:[#allocation6] sm:$0xff]  ;;  %v253_v32 = vld [vmem:[#allocation6 + $0x58] sm:$0xff]  ;;  %v287_v33 = vld [vmem:[#allocation6 + $0x168] sm:$0xff] }
  0x8b   : > { %744 = vmatpush.msra.mxu2 %v312_v38  ;;  %763 = vmatpush.msra.mxu3 %v346_v40  ;;  %v317_v34 = vld [vmem:[#allocation6 + $0x258] sm:$0xff]  ;;  %v351_v35 = vld [vmem:[#allocation6 + $0x368] sm:$0xff] }
  0x8c   : > { %648 = vmatmul.f32.vlgmr.msrb.gmra.mxu1 %v2991_v57  ;;  %688 = vmatmul.f32.vlgmr.msrb.gmra.mxu3 %v2995_v61  ;;  %v338_v57 = vld [vmem:[#allocation6 + $0x300] sm:$0xff]  ;;  %v271_v61 = vld [vmem:[#allocation6 + $0xe8] sm:$0xff]  ;;  %v285_v37 = vld [vmem:[#allocation6 + $0x158] sm:$0xff] }
  0x8d   : > { %705 = vmatpush.msra.mxu0 %v246_v41  ;;  %724 = vmatpush.msra.mxu1 %v280_v42  ;;  %v251_v36 = vld [vmem:[#allocation6 + $0x48] sm:$0xff]  ;;  %v349_v40 = vld [vmem:[#allocation6 + $0x358] sm:$0xff] }
  0x8e   : > { %745 = vmatpush.msra.mxu2 %v310_v43  ;;  %764 = vmatpush.msra.mxu3 %v344_v44  ;;  %v315_v38 = vld [vmem:[#allocation6 + $0x248] sm:$0xff]  ;;  %v249_v41 = vld [vmem:[#allocation6 + $0x38] sm:$0xff] }
  0x8f   : > { %706 = vmatpush.msra.mxu0 %v244_v45  ;;  %725 = vmatpush.msra.mxu1 %v278_v46  ;;  %v283_v42 = vld [vmem:[#allocation6 + $0x148] sm:$0xff]  ;;  %v313_v43 = vld [vmem:[#allocation6 + $0x238] sm:$0xff] }
  0x90   : > { %746 = vmatpush.msra.mxu2 %v308_v48  ;;  %765 = vmatpush.msra.mxu3 %v342_v47  ;;  %v347_v44 = vld [vmem:[#allocation6 + $0x348] sm:$0xff]  ;;  %v281_v46 = vld [vmem:[#allocation6 + $0x138] sm:$0xff] }
  0x91   : > { %707 = vmatpush.msra.mxu0 %v242_v39  ;;  %726 = vmatpush.msra.mxu1 %v276_v49  ;;  %v247_v45 = vld [vmem:[#allocation6 + $0x28] sm:$0xff]  ;;  %v345_v47 = vld [vmem:[#allocation6 + $0x338] sm:$0xff] }
  0x92   : > { %747 = vmatpush.msra.mxu2 %v306_v50  ;;  %766 = vmatpush.msra.mxu3 %v340_v51  ;;  %v311_v48 = vld [vmem:[#allocation6 + $0x228] sm:$0xff]  ;;  %v245_v39 = vld [vmem:[#allocation6 + $0x18] sm:$0xff] }
  0x93   : > { %708 = vmatmul.f32.vlgmr.msra.gmra.mxu0 %v3002_v52  ;;  %748 = vmatmul.f32.vlgmr.msra.gmra.mxu2 %v3004_v53  ;;  %v279_v49 = vld [vmem:[#allocation6 + $0x128] sm:$0xff]  ;;  %v309_v50 = vld [vmem:[#allocation6 + $0x218] sm:$0xff] }
  0x94   : > { %772 = vmatpush.msrb.mxu0 %v273_v54  ;;  %812 = vmatpush.msrb.mxu2 %v337_v55  ;;  %v343_v51 = vld [vmem:[#allocation6 + $0x328] sm:$0xff]  ;;  %v277_v55 = vld [vmem:[#allocation6 + $0x118] sm:$0xff] }
  0x95   : > { %727 = vmatpush.msra.mxu1 %v274_v56  ;;  %767 = vmatpush.msra.mxu3 %v338_v57  ;;  %v243_v54 = vld [vmem:[#allocation6 + $0x8] sm:$0xff]  ;;  %v341_v57 = vld [vmem:[#allocation6 + $0x318] sm:$0xff] }
  0x96   : > { %728 = vmatmul.f32.vlgmr.msra.gmra.mxu1 %v3007_v59  ;;  %768 = vmatmul.f32.vlgmr.msra.gmra.mxu3 %v3010_v60  ;;  %v307_v56 = vld [vmem:[#allocation6 + $0x208] sm:$0xff] }
  0x97   : > { %773 = vmatpush.msrb.mxu0 %v271_v61  ;;  %792 = vmatpush.msrb.mxu1 %v305_v62  ;;  %v275_v61 = vld [vmem:[#allocation6 + $0x108] sm:$0xff]  ;;  %v955_v62 = vld [vmem:[#allocation6 + $0xaf0] sm:$0xff] }
  0x98   : > { %813 = vmatpush.msrb.mxu2 %v335_v58  ;;  %832 = vmatpush.msrb.mxu3 %v369_v63  ;;  %v339_v58 = vld [vmem:[#allocation6 + $0x308] sm:$0xff]  ;;  %v953_v63 = vld [vmem:[#allocation6 + $0xae0] sm:$0xff] }
  0x99   : > { %774 = vmatpush.msrb.mxu0 %v269_v0  ;;  %793 = vmatpush.msrb.mxu1 %v303_v1  ;;  %v987_v0 = vld [vmem:[#allocation6 + $0xbf0] sm:$0xff] }
  0x9a   : > { %814 = vmatpush.msrb.mxu2 %v333_v2  ;;  %833 = vmatpush.msrb.mxu3 %v367_v3  ;;  %v891_v1 = vld [vmem:[#allocation6 + $0x8f0] sm:$0xff] }
  0x9b   : > { %775 = vmatpush.msrb.mxu0 %v267_v4  ;;  %794 = vmatpush.msrb.mxu1 %v301_v5  ;;  %v923_v2 = vld [vmem:[#allocation6 + $0x9f0] sm:$0xff]  ;;  %v985_v4 = vld [vmem:[#allocation6 + $0xbe0] sm:$0xff] }
  0x9c   : > { %815 = vmatpush.msrb.mxu2 %v331_v6  ;;  %834 = vmatpush.msrb.mxu3 %v365_v7  ;;  %v951_v3 = vld [vmem:[#allocation6 + $0xad0] sm:$0xff]  ;;  %v889_v5 = vld [vmem:[#allocation6 + $0x8e0] sm:$0xff] }
  0x9d   : > { %776 = vmatpush.msrb.mxu0 %v265_v8  ;;  %795 = vmatpush.msrb.mxu1 %v299_v9  ;;  %v921_v6 = vld [vmem:[#allocation6 + $0x9e0] sm:$0xff]  ;;  %v887_v7 = vld [vmem:[#allocation6 + $0x8d0] sm:$0xff] }
  0x9e   : > { %816 = vmatpush.msrb.mxu2 %v329_v10  ;;  %835 = vmatpush.msrb.mxu3 %v363_v11  ;;  %v919_v8 = vld [vmem:[#allocation6 + $0x9d0] sm:$0xff]  ;;  %v917_v10 = vld [vmem:[#allocation6 + $0x9c0] sm:$0xff] }
  0x9f   : > { %777 = vmatpush.msrb.mxu0 %v263_v12  ;;  %796 = vmatpush.msrb.mxu1 %v297_v13  ;;  %v947_v9 = vld [vmem:[#allocation6 + $0xab0] sm:$0xff]  ;;  %v945_v11 = vld [vmem:[#allocation6 + $0xaa0] sm:$0xff] }
  0xa0   : > { %817 = vmatpush.msrb.mxu2 %v327_v14  ;;  %836 = vmatpush.msrb.mxu3 %v361_v15  ;;  %v979_v12 = vld [vmem:[#allocation6 + $0xbb0] sm:$0xff] }
  0xa1   : > { %778 = vmatpush.msrb.mxu0 %v261_v16  ;;  %797 = vmatpush.msrb.mxu1 %v295_v17  ;;  %v883_v13 = vld [vmem:[#allocation6 + $0x8b0] sm:$0xff]  ;;  %v977_v16 = vld [vmem:[#allocation6 + $0xba0] sm:$0xff] }
  0xa2   : > { %818 = vmatpush.msrb.mxu2 %v325_v18  ;;  %837 = vmatpush.msrb.mxu3 %v359_v19  ;;  %v915_v14 = vld [vmem:[#allocation6 + $0x9b0] sm:$0xff]  ;;  %v881_v17 = vld [vmem:[#allocation6 + $0x8a0] sm:$0xff] }
  0xa3   : > { %779 = vmatpush.msrb.mxu0 %v259_v20  ;;  %798 = vmatpush.msrb.mxu1 %v293_v21  ;;  %v943_v15 = vld [vmem:[#allocation6 + $0xa90] sm:$0xff]  ;;  %v913_v18 = vld [vmem:[#allocation6 + $0x9a0] sm:$0xff] }
  0xa4   : > { %819 = vmatpush.msrb.mxu2 %v323_v22  ;;  %838 = vmatpush.msrb.mxu3 %v357_v23  ;;  %v941_v19 = vld [vmem:[#allocation6 + $0xa80] sm:$0xff]  ;;  %v975_v20 = vld [vmem:[#allocation6 + $0xb90] sm:$0xff] }
  0xa5   : > { %780 = vmatpush.msrb.mxu0 %v257_v24  ;;  %799 = vmatpush.msrb.mxu1 %v291_v25  ;;  %v879_v21 = vld [vmem:[#allocation6 + $0x890] sm:$0xff]  ;;  %v973_v24 = vld [vmem:[#allocation6 + $0xb80] sm:$0xff] }
  0xa6   : > { %820 = vmatpush.msrb.mxu2 %v321_v26  ;;  %839 = vmatpush.msrb.mxu3 %v355_v27  ;;  %v911_v22 = vld [vmem:[#allocation6 + $0x990] sm:$0xff]  ;;  %v877_v25 = vld [vmem:[#allocation6 + $0x880] sm:$0xff] }
  0xa7   : > { %781 = vmatpush.msrb.mxu0 %v255_v28  ;;  %800 = vmatpush.msrb.mxu1 %v289_v29  ;;  %v939_v23 = vld [vmem:[#allocation6 + $0xa70] sm:$0xff]  ;;  %v909_v26 = vld [vmem:[#allocation6 + $0x980] sm:$0xff] }
  0xa8   : > { %821 = vmatpush.msrb.mxu2 %v319_v30  ;;  %840 = vmatpush.msrb.mxu3 %v353_v31  ;;  %v937_v27 = vld [vmem:[#allocation6 + $0xa60] sm:$0xff]  ;;  %v971_v28 = vld [vmem:[#allocation6 + $0xb70] sm:$0xff] }
  0xa9   : > { %782 = vmatpush.msrb.mxu0 %v253_v32  ;;  %801 = vmatpush.msrb.mxu1 %v287_v33  ;;  %v875_v29 = vld [vmem:[#allocation6 + $0x870] sm:$0xff]  ;;  %v969_v32 = vld [vmem:[#allocation6 + $0xb60] sm:$0xff] }
  0xaa   : > { %822 = vmatpush.msrb.mxu2 %v317_v34  ;;  %841 = vmatpush.msrb.mxu3 %v351_v35  ;;  %v907_v30 = vld [vmem:[#allocation6 + $0x970] sm:$0xff]  ;;  %v873_v33 = vld [vmem:[#allocation6 + $0x860] sm:$0xff] }
  0xab   : > { %783 = vmatpush.msrb.mxu0 %v251_v36  ;;  %802 = vmatpush.msrb.mxu1 %v285_v37  ;;  %v935_v31 = vld [vmem:[#allocation6 + $0xa50] sm:$0xff]  ;;  %v905_v34 = vld [vmem:[#allocation6 + $0x960] sm:$0xff] }
  0xac   : > { %823 = vmatpush.msrb.mxu2 %v315_v38  ;;  %842 = vmatpush.msrb.mxu3 %v349_v40  ;;  %v933_v35 = vld [vmem:[#allocation6 + $0xa40] sm:$0xff]  ;;  %v967_v36 = vld [vmem:[#allocation6 + $0xb50] sm:$0xff] }
  0xad   : > { %784 = vmatpush.msrb.mxu0 %v249_v41  ;;  %803 = vmatpush.msrb.mxu1 %v283_v42  ;;  %v871_v37 = vld [vmem:[#allocation6 + $0x850] sm:$0xff]  ;;  %v965_v41 = vld [vmem:[#allocation6 + $0xb40] sm:$0xff] }
  0xae   : > { %824 = vmatpush.msrb.mxu2 %v313_v43  ;;  %843 = vmatpush.msrb.mxu3 %v347_v44  ;;  %v903_v38 = vld [vmem:[#allocation6 + $0x950] sm:$0xff]  ;;  %v869_v42 = vld [vmem:[#allocation6 + $0x840] sm:$0xff]  ;;  %v854_v44 = vld [vmem:[#allocation2 + $0x18] sm:$0xfc] }
  0xaf   : > { %785 = vmatpush.msrb.mxu0 %v247_v45  ;;  %804 = vmatpush.msrb.mxu1 %v281_v46  ;;  %v931_v40 = vld [vmem:[#allocation6 + $0xa30] sm:$0xff]  ;;  %v901_v43 = vld [vmem:[#allocation6 + $0x940] sm:$0xff]  ;;  %v858_v45 = vld [vmem:[#allocation2 + $0x28] sm:$0x3] }
  0xb0   : > { %825 = vmatpush.msrb.mxu2 %v311_v48  ;;  %844 = vmatpush.msrb.mxu3 %v345_v47  ;;  %v929_v46 = vld [vmem:[#allocation6 + $0xa20] sm:$0xff]  ;;  %v963_v48 = vld [vmem:[#allocation6 + $0xb30] sm:$0xff] }
  0xb1   : > { %786 = vmatpush.msrb.mxu0 %v245_v39  ;;  %805 = vmatpush.msrb.mxu1 %v279_v49  ;;  %v867_v47 = vld [vmem:[#allocation6 + $0x830] sm:$0xff] }
  0xb2   : > { %826 = vmatpush.msrb.mxu2 %v309_v50  ;;  %845 = vmatpush.msrb.mxu3 %v343_v51  ;;  %v899_v39 = vld [vmem:[#allocation6 + $0x930] sm:$0xff]  ;;  %v961_v50 = vld [vmem:[#allocation6 + $0xb20] sm:$0xff]  ;;  %v1004_v51 = vrot.slane %v854_v44, 2  ;;  %v940_v44 = vld [vmem:[#allocation6 + $0xa78] sm:$0xff] }
  0xb3   : > { %787 = vmatpush.msrb.mxu0 %v243_v54  ;;  %806 = vmatpush.msrb.mxu1 %v277_v55  ;;  %v927_v49 = vld [vmem:[#allocation6 + $0xa10] sm:$0xff]  ;;  %v1005_v54 = vrot.slane %v858_v45, 2  ;;  %v974_v45 = vld [vmem:[#allocation6 + $0xb88] sm:$0xff] }
  0xb4   : > { %827 = vmatpush.msrb.mxu2 %v307_v56  ;;  %846 = vmatpush.msrb.mxu3 %v341_v57  ;;  %v855_v55 = vld [vmem:[#allocation2 + $0x10] sm:$0xfc]  ;;  %v859_v56 = vld [vmem:[#allocation2 + $0x38] sm:$0x3]  ;;  %v865_v57 = vld [vmem:[#allocation6 + $0x820] sm:$0xff] }
  0xb5   : > { %788 = vmatmul.f32.vlgmr.msrb.gmra.mxu0 %v3002_v52  ;;  %828 = vmatmul.f32.vlgmr.msrb.gmra.mxu2 %v3004_v53  ;;  %v949_v52 = vld [vmem:[#allocation6 + $0xac0] sm:$0xff]  ;;  %v983_v53 = vld [vmem:[#allocation6 + $0xbd0] sm:$0xff] }
  0xb6   : > { %807 = vmatpush.msrb.mxu1 %v275_v61  ;;  %1054 = vmatpush.msra.mxu2 %v955_v62  ;;  %v897_v61 = vld [vmem:[#allocation6 + $0x920] sm:$0xff]  ;;  %v852_v62 = vld [vmem:[#allocation2 + $0x30] sm:$0xfc] }
  0xb7   : > { %847 = vmatpush.msrb.mxu3 %v339_v58  ;;  %808 = vmatmul.f32.vlgmr.msrb.gmra.mxu1 %v3007_v59  ;;  %v981_v59 = vld [vmem:[#allocation6 + $0xbc0] sm:$0xff]  ;;  %v856_v58 = vld [vmem:[#allocation2 + $0x8] sm:$0x3] }
  0xb8   : > { %848 = vmatmul.f32.vlgmr.msrb.gmra.mxu3 %v3010_v60  ;;  %1055 = vmatpush.msra.mxu2 %v953_v63  ;;  %v885_v60 = vld [vmem:[#allocation6 + $0x8c0] sm:$0xff] }
  0xb9   : > { %1074 = vmatpush.msra.mxu3 %v987_v0  ;;  %1014 = vmatpush.msra.mxu0 %v891_v1  ;;  %v853_v63 = vld [vmem:[#allocation2] sm:$0xfc]  ;;  %v857_v0 = vld [vmem:[#allocation2 + $0x20] sm:$0x3] }
  0xba   : > { %1034 = vmatpush.msra.mxu1 %v923_v2  ;;  %1056 = vmatpush.msra.mxu2 %v951_v3  ;;  %v925_v1 = vld [vmem:[#allocation6 + $0xa00] sm:$0xff]  ;;  %v959_v2 = vld [vmem:[#allocation6 + $0xb10] sm:$0xff]  ;;  %v1007_v3 = vrot.slane %v855_v55, 2  ;;  %v874_v55 = vld [vmem:[#allocation6 + $0x868] sm:$0xff] }
  0xbb   : > { %1075 = vmatpush.msra.mxu3 %v985_v4  ;;  %1015 = vmatpush.msra.mxu0 %v889_v5  ;;  %v1008_v4 = vrot.slane %v859_v56, 2  ;;  %v3019_v5 = vsel %vm997_vm2, %v1004_v51, %v1005_v54  ;;  %v936_v51 = vld [vmem:[#allocation6 + $0xa58] sm:$0xff]  ;;  %v970_v54 = vld [vmem:[#allocation6 + $0xb68] sm:$0xff] }
  0xbc   : > { %1035 = vmatpush.msra.mxu1 %v921_v6  ;;  %1057 = vmatpush.msra.mxu2 %v949_v52  ;;  %v863_v6 = vld [vmem:[#allocation6 + $0x810] sm:$0xff]  ;;  %v956_v52 = vld [vmem:[#allocation6 + $0xaf8] sm:$0xff]  ;;  %v906_v56 = vld [vmem:[#allocation6 + $0x968] sm:$0xff] }
  0xbd   : > { %1076 = vmatpush.msra.mxu3 %v983_v53  ;;  %1016 = vmatpush.msra.mxu0 %v887_v7  ;;  %v895_v53 = vld [vmem:[#allocation6 + $0x910] sm:$0xff]  ;;  %v998_v7 = vrot.slane %v852_v62, 2  ;;  %v872_v62 = vld [vmem:[#allocation6 + $0x858] sm:$0xff] }
  0xbe   : > { %1036 = vmatpush.msra.mxu1 %v919_v8  ;;  %1058 = vmatpush.msra.mxu2 %v947_v9  ;;  %v999_v8 = vrot.slane %v856_v58, 2  ;;  %v1001_v9 = vrot.slane %v853_v63, 2  ;;  %v904_v58 = vld [vmem:[#allocation6 + $0x958] sm:$0xff] }
  0xbf   : > { %1077 = vmatpush.msra.mxu3 %v981_v59  ;;  %1017 = vmatpush.msra.mxu0 %v885_v60  ;;  %v1002_v59 = vrot.slane %v857_v0, 2  ;;  %v957_v60 = vld [vmem:[#allocation6 + $0xb00] sm:$0xff]  ;;  %v932_v63 = vld [vmem:[#allocation6 + $0xa38] sm:$0xff]  ;;  %v966_v0 = vld [vmem:[#allocation6 + $0xb48] sm:$0xff] }
  0xc0   : > { %1037 = vmatpush.msra.mxu1 %v917_v10  ;;  %1059 = vmatpush.msra.mxu2 %v945_v11  ;;  %v861_v10 = vld [vmem:[#allocation6 + $0x800] sm:$0xff]  ;;  %v3023_v11 = vsel %vm997_vm2, %v1007_v3, %v1008_v4  ;;  %v902_v3 = vld [vmem:[#allocation6 + $0x948] sm:$0xff] }
  0xc1   : > { %1078 = vmatpush.msra.mxu3 %v979_v12  ;;  %1018 = vmatpush.msra.mxu0 %v883_v13  ;;  %v954_v12 = vld [vmem:[#allocation6 + $0xae8] sm:$0xff]  ;;  %v988_v13 = vld [vmem:[#allocation6 + $0xbf8] sm:$0xff] }
  0xc2   : > { %1038 = vmatpush.msra.mxu1 %v915_v14  ;;  %1060 = vmatpush.msra.mxu2 %v943_v15  ;;  %v893_v14 = vld [vmem:[#allocation6 + $0x900] sm:$0xff]  ;;  %v3026_v15 = vsel %vm997_vm2, %v998_v7, %v999_v8  ;;  %v930_v4 = vld [vmem:[#allocation6 + $0xa28] sm:$0xff]  ;;  %v900_v7 = vld [vmem:[#allocation6 + $0x938] sm:$0xff] }
  0xc3   : > { %1079 = vmatpush.msra.mxu3 %v977_v16  ;;  %1019 = vmatpush.msra.mxu0 %v881_v17  ;;  %v3029_v16 = vsel %vm997_vm2, %v1001_v9, %v1002_v59  ;;  %v892_v17 = vld [vmem:[#allocation6 + $0x8f8] sm:$0xff]  ;;  %v962_v59 = vld [vmem:[#allocation6 + $0xb28] sm:$0xff] }
  0xc4   : > { %1039 = vmatpush.msra.mxu1 %v913_v18  ;;  %1061 = vmatpush.msra.mxu2 %v941_v19  ;;  %v924_v18 = vld [vmem:[#allocation6 + $0x9f8] sm:$0xff] }
  0xc5   : > { %1080 = vmatpush.msra.mxu3 %v975_v20  ;;  %1020 = vmatpush.msra.mxu0 %v879_v21  ;;  %v952_v19 = vld [vmem:[#allocation6 + $0xad8] sm:$0xff]  ;;  %v986_v20 = vld [vmem:[#allocation6 + $0xbe8] sm:$0xff] }
  0xc6   : > { %1040 = vmatpush.msra.mxu1 %v911_v22  ;;  %1062 = vmatpush.msra.mxu2 %v939_v23  ;;  %v890_v21 = vld [vmem:[#allocation6 + $0x8e8] sm:$0xff]  ;;  %v928_v9 = vld [vmem:[#allocation6 + $0xa18] sm:$0xff] }
  0xc7   : > { %1081 = vmatpush.msra.mxu3 %v973_v24  ;;  %1021 = vmatpush.msra.mxu0 %v877_v25  ;;  %v922_v22 = vld [vmem:[#allocation6 + $0x9e8] sm:$0xff]  ;;  %v984_v24 = vld [vmem:[#allocation6 + $0xbd8] sm:$0xff] }
  0xc8   : > { %1041 = vmatpush.msra.mxu1 %v909_v26  ;;  %1063 = vmatpush.msra.mxu2 %v937_v27  ;;  %v950_v23 = vld [vmem:[#allocation6 + $0xac8] sm:$0xff]  ;;  %v888_v25 = vld [vmem:[#allocation6 + $0x8d8] sm:$0xff] }
  0xc9   : > { %1082 = vmatpush.msra.mxu3 %v971_v28  ;;  %1022 = vmatpush.msra.mxu0 %v875_v29  ;;  %v920_v26 = vld [vmem:[#allocation6 + $0x9d8] sm:$0xff]  ;;  %v982_v28 = vld [vmem:[#allocation6 + $0xbc8] sm:$0xff] }
  0xca   : > { %1042 = vmatpush.msra.mxu1 %v907_v30  ;;  %1064 = vmatpush.msra.mxu2 %v935_v31  ;;  %v948_v27 = vld [vmem:[#allocation6 + $0xab8] sm:$0xff]  ;;  %v886_v29 = vld [vmem:[#allocation6 + $0x8c8] sm:$0xff] }
  0xcb   : > { %1083 = vmatpush.msra.mxu3 %v969_v32  ;;  %1023 = vmatpush.msra.mxu0 %v873_v33  ;;  %v918_v30 = vld [vmem:[#allocation6 + $0x9c8] sm:$0xff]  ;;  %v980_v32 = vld [vmem:[#allocation6 + $0xbb8] sm:$0xff] }
  0xcc   : > { %1043 = vmatpush.msra.mxu1 %v905_v34  ;;  %1065 = vmatpush.msra.mxu2 %v933_v35  ;;  %v946_v31 = vld [vmem:[#allocation6 + $0xaa8] sm:$0xff]  ;;  %v884_v33 = vld [vmem:[#allocation6 + $0x8b8] sm:$0xff] }
  0xcd   : > { %1084 = vmatpush.msra.mxu3 %v967_v36  ;;  %1024 = vmatpush.msra.mxu0 %v871_v37  ;;  %v916_v34 = vld [vmem:[#allocation6 + $0x9b8] sm:$0xff]  ;;  %v978_v36 = vld [vmem:[#allocation6 + $0xba8] sm:$0xff] }
  0xce   : > { %1044 = vmatpush.msra.mxu1 %v903_v38  ;;  %1066 = vmatpush.msra.mxu2 %v931_v40  ;;  %v944_v35 = vld [vmem:[#allocation6 + $0xa98] sm:$0xff]  ;;  %v882_v37 = vld [vmem:[#allocation6 + $0x8a8] sm:$0xff] }
  0xcf   : > { %1085 = vmatpush.msra.mxu3 %v965_v41  ;;  %1025 = vmatpush.msra.mxu0 %v869_v42  ;;  %v914_v38 = vld [vmem:[#allocation6 + $0x9a8] sm:$0xff]  ;;  %v976_v41 = vld [vmem:[#allocation6 + $0xb98] sm:$0xff] }
  0xd0   : > { %1045 = vmatpush.msra.mxu1 %v901_v43  ;;  %1067 = vmatpush.msra.mxu2 %v929_v46  ;;  %v942_v40 = vld [vmem:[#allocation6 + $0xa88] sm:$0xff]  ;;  %v880_v42 = vld [vmem:[#allocation6 + $0x898] sm:$0xff] }
  0xd1   : > { %1086 = vmatpush.msra.mxu3 %v963_v48  ;;  %1026 = vmatpush.msra.mxu0 %v867_v47  ;;  %v912_v43 = vld [vmem:[#allocation6 + $0x998] sm:$0xff]  ;;  %v878_v46 = vld [vmem:[#allocation6 + $0x888] sm:$0xff] }
  0xd2   : > { %1046 = vmatpush.msra.mxu1 %v899_v39  ;;  %1068 = vmatpush.msra.mxu2 %v927_v49  ;;  %v910_v48 = vld [vmem:[#allocation6 + $0x988] sm:$0xff]  ;;  %v972_v39 = vld [vmem:[#allocation6 + $0xb78] sm:$0xff] }
  0xd3   : > { %1087 = vmatpush.msra.mxu3 %v961_v50  ;;  %1027 = vmatpush.msra.mxu0 %v865_v57  ;;  %v938_v47 = vld [vmem:[#allocation6 + $0xa68] sm:$0xff]  ;;  %v876_v49 = vld [vmem:[#allocation6 + $0x878] sm:$0xff] }
  0xd4   : > { %1047 = vmatpush.msra.mxu1 %v897_v61  ;;  %1069 = vmatpush.msra.mxu2 %v925_v1  ;;  %v908_v50 = vld [vmem:[#allocation6 + $0x978] sm:$0xff]  ;;  %v934_v57 = vld [vmem:[#allocation6 + $0xa48] sm:$0xff] }
  0xd5   : > { %1088 = vmatpush.msra.mxu3 %v959_v2  ;;  %1070 = vmatmul.f32.vlgmr.msra.gmra.mxu2 %v3019_v5  ;;  %v968_v61 = vld [vmem:[#allocation6 + $0xb58] sm:$0xff]  ;;  %v870_v2 = vld [vmem:[#allocation6 + $0x848] sm:$0xff] }
  0xd6   : > { %1028 = vmatpush.msra.mxu0 %v863_v6  ;;  %1134 = vmatpush.msrb.mxu2 %v956_v52  ;;  %v964_v6 = vld [vmem:[#allocation6 + $0xb38] sm:$0xff] }
  0xd7   : > { %1048 = vmatpush.msra.mxu1 %v895_v53  ;;  %1089 = vmatpush.msra.mxu3 %v957_v60  ;;  %v868_v53 = vld [vmem:[#allocation6 + $0x838] sm:$0xff] }
  0xd8   : > { %1029 = vmatpush.msra.mxu0 %v861_v10  ;;  %1090 = vmatmul.f32.vlgmr.msra.gmra.mxu3 %v3023_v11  ;;  %v866_v10 = vld [vmem:[#allocation6 + $0x828] sm:$0xff] }
  0xd9   : > { %1135 = vmatpush.msrb.mxu2 %v954_v12  ;;  %1154 = vmatpush.msrb.mxu3 %v988_v13  ;;  %v898_v12 = vld [vmem:[#allocation6 + $0x928] sm:$0xff] }
  0xda   : > { %1049 = vmatpush.msra.mxu1 %v893_v14  ;;  %1030 = vmatmul.f32.vlgmr.msra.gmra.mxu0 %v3026_v15  ;;  %v926_v14 = vld [vmem:[#allocation6 + $0xa08] sm:$0xff] }
  0xdb   : > { %1050 = vmatmul.f32.vlgmr.msra.gmra.mxu1 %v3029_v16  ;;  %1094 = vmatpush.msrb.mxu0 %v892_v17  ;;  %v960_v17 = vld [vmem:[#allocation6 + $0xb18] sm:$0xff] }
  0xdc   : > { %1114 = vmatpush.msrb.mxu1 %v924_v18  ;;  %1136 = vmatpush.msrb.mxu2 %v952_v19  ;;  %v864_v18 = vld [vmem:[#allocation6 + $0x818] sm:$0xff]  ;;  %v1279_v19 = vld [vmem:[#allocation6 + $0xef0] sm:$0xff] }
  0xdd   : > { %1155 = vmatpush.msrb.mxu3 %v986_v20  ;;  %1095 = vmatpush.msrb.mxu0 %v890_v21  ;;  %v896_v20 = vld [vmem:[#allocation6 + $0x918] sm:$0xff]  ;;  %v958_v21 = vld [vmem:[#allocation6 + $0xb08] sm:$0xff] }
  0xde   : > { %1115 = vmatpush.msrb.mxu1 %v922_v22  ;;  %1137 = vmatpush.msrb.mxu2 %v950_v23  ;;  %v862_v22 = vld [vmem:[#allocation6 + $0x808] sm:$0xff] }
  0xdf   : > { %1156 = vmatpush.msrb.mxu3 %v984_v24  ;;  %1096 = vmatpush.msrb.mxu0 %v888_v25  ;;  %v1277_v24 = vld [vmem:[#allocation6 + $0xee0] sm:$0xff] }
  0xe0   : > { %1116 = vmatpush.msrb.mxu1 %v920_v26  ;;  %1138 = vmatpush.msrb.mxu2 %v948_v27  ;;  %v1311_v26 = vld [vmem:[#allocation6 + $0xff0] sm:$0xff]  ;;  %v894_v27 = vld [vmem:[#allocation6 + $0x908] sm:$0xff] }
  0xe1   : > { %1157 = vmatpush.msrb.mxu3 %v982_v28  ;;  %1097 = vmatpush.msrb.mxu0 %v886_v29  ;;  %v1215_v28 = vld [vmem:[#allocation6 + $0xcf0] sm:$0xff] }
  0xe2   : > { %1117 = vmatpush.msrb.mxu1 %v918_v30  ;;  %1139 = vmatpush.msrb.mxu2 %v946_v31  ;;  %v1247_v29 = vld [vmem:[#allocation6 + $0xdf0] sm:$0xff]  ;;  %v1309_v31 = vld [vmem:[#allocation6 + $0xfe0] sm:$0xff] }
  0xe3   : > { %1158 = vmatpush.msrb.mxu3 %v980_v32  ;;  %1098 = vmatpush.msrb.mxu0 %v884_v33  ;;  %v1275_v30 = vld [vmem:[#allocation6 + $0xed0] sm:$0xff]  ;;  %v1245_v32 = vld [vmem:[#allocation6 + $0xde0] sm:$0xff] }
  0xe4   : > { %1118 = vmatpush.msrb.mxu1 %v916_v34  ;;  %1140 = vmatpush.msrb.mxu2 %v944_v35  ;;  %v1273_v33 = vld [vmem:[#allocation6 + $0xec0] sm:$0xff]  ;;  %v1307_v34 = vld [vmem:[#allocation6 + $0xfd0] sm:$0xff] }
  0xe5   : > { %1159 = vmatpush.msrb.mxu3 %v978_v36  ;;  %1099 = vmatpush.msrb.mxu0 %v882_v37  ;;  %v1243_v35 = vld [vmem:[#allocation6 + $0xdd0] sm:$0xff]  ;;  %v1305_v37 = vld [vmem:[#allocation6 + $0xfc0] sm:$0xff] }
  0xe6   : > { %1119 = vmatpush.msrb.mxu1 %v914_v38  ;;  %1141 = vmatpush.msrb.mxu2 %v942_v40  ;;  %v1271_v36 = vld [vmem:[#allocation6 + $0xeb0] sm:$0xff]  ;;  %v1209_v38 = vld [vmem:[#allocation6 + $0xcc0] sm:$0xff] }
  0xe7   : > { %1160 = vmatpush.msrb.mxu3 %v976_v41  ;;  %1100 = vmatpush.msrb.mxu0 %v880_v42  ;;  %v1303_v40 = vld [vmem:[#allocation6 + $0xfb0] sm:$0xff] }
  0xe8   : > { %1120 = vmatpush.msrb.mxu1 %v912_v43  ;;  %1142 = vmatpush.msrb.mxu2 %v940_v44  ;;  %v1207_v41 = vld [vmem:[#allocation6 + $0xcb0] sm:$0xff]  ;;  %v1301_v44 = vld [vmem:[#allocation6 + $0xfa0] sm:$0xff] }
  0xe9   : > { %1161 = vmatpush.msrb.mxu3 %v974_v45  ;;  %1101 = vmatpush.msrb.mxu0 %v878_v46  ;;  %v1239_v42 = vld [vmem:[#allocation6 + $0xdb0] sm:$0xff]  ;;  %v1205_v45 = vld [vmem:[#allocation6 + $0xca0] sm:$0xff] }
  0xea   : > { %1121 = vmatpush.msrb.mxu1 %v910_v48  ;;  %1143 = vmatpush.msrb.mxu2 %v938_v47  ;;  %v1267_v43 = vld [vmem:[#allocation6 + $0xe90] sm:$0xff]  ;;  %v1237_v46 = vld [vmem:[#allocation6 + $0xda0] sm:$0xff] }
  0xeb   : > { %1162 = vmatpush.msrb.mxu3 %v972_v39  ;;  %1102 = vmatpush.msrb.mxu0 %v876_v49  ;;  %v1265_v48 = vld [vmem:[#allocation6 + $0xe80] sm:$0xff]  ;;  %v1299_v47 = vld [vmem:[#allocation6 + $0xf90] sm:$0xff] }
  0xec   : > { %1122 = vmatpush.msrb.mxu1 %v908_v50  ;;  %1144 = vmatpush.msrb.mxu2 %v936_v51  ;;  %v1203_v49 = vld [vmem:[#allocation6 + $0xc90] sm:$0xff] }
  0xed   : > { %1163 = vmatpush.msrb.mxu3 %v970_v54  ;;  %1103 = vmatpush.msrb.mxu0 %v874_v55  ;;  %v549_v1 = vpop.f32.mrf.mxu0  ;;  %v1235_v50 = vld [vmem:[#allocation6 + $0xd90] sm:$0xff]  ;;  %v1297_v54 = vld [vmem:[#allocation6 + $0xf80] sm:$0xff] }
  0xee   : > { %1123 = vmatpush.msrb.mxu1 %v906_v56  ;;  %1145 = vmatpush.msrb.mxu2 %v934_v57  ;;  %v1263_v51 = vld [vmem:[#allocation6 + $0xe70] sm:$0xff]  ;;  %v1201_v55 = vld [vmem:[#allocation6 + $0xc80] sm:$0xff] }
  0xef   : > { %1164 = vmatpush.msrb.mxu3 %v968_v61  ;;  %1104 = vmatpush.msrb.mxu0 %v872_v62  ;;  %v569_v52 = vpop.f32.mrf.mxu1  ;;  %v1233_v56 = vld [vmem:[#allocation6 + $0xd80] sm:$0xff]  ;;  %v1295_v62 = vld [vmem:[#allocation6 + $0xf70] sm:$0xff] }
  0xf0   : > { %1124 = vmatpush.msrb.mxu1 %v904_v58  ;;  %1146 = vmatpush.msrb.mxu2 %v932_v63  ;;  %v570_v8 = vadd.f32 %v569_v52, %v549_v1  ;;  %v1261_v61 = vld [vmem:[#allocation6 + $0xe60] sm:$0xff]  ;;  %v1199_v63 = vld [vmem:[#allocation6 + $0xc70] sm:$0xff] }
  0xf1   : > { %1165 = vmatpush.msrb.mxu3 %v966_v0  ;;  %1105 = vmatpush.msrb.mxu0 %v870_v2  ;;  %v1231_v0 = vld [vmem:[#allocation6 + $0xd70] sm:$0xff]  ;;  %v1293_v2 = vld [vmem:[#allocation6 + $0xf60] sm:$0xff] }
  0xf2   : > { %1125 = vmatpush.msrb.mxu1 %v902_v3  ;;  %v589_v60 = vpop.f32.mrf.mxu2  ;;  %1147 = vmatpush.msrb.mxu2 %v930_v4  ;;  %v1259_v1 = vld [vmem:[#allocation6 + $0xe50] sm:$0xff]  ;;  %v1197_v3 = vld [vmem:[#allocation6 + $0xc60] sm:$0xff] }
  0xf3   : > { %1166 = vmatpush.msrb.mxu3 %v964_v6  ;;  %v590_v13 = vadd.f32 %v589_v60, %v570_v8  ;;  %1106 = vmatpush.msrb.mxu0 %v868_v53  ;;  %v1229_v4 = vld [vmem:[#allocation6 + $0xd60] sm:$0xff]  ;;  %v1291_v53 = vld [vmem:[#allocation6 + $0xf50] sm:$0xff] }
  0xf4   : > { %1126 = vmatpush.msrb.mxu1 %v900_v7  ;;  %1148 = vmatpush.msrb.mxu2 %v928_v9  ;;  %v1257_v6 = vld [vmem:[#allocation6 + $0xe40] sm:$0xff]  ;;  %v1195_v7 = vld [vmem:[#allocation6 + $0xc50] sm:$0xff] }
  0xf5   : > { %1167 = vmatpush.msrb.mxu3 %v962_v59  ;;  %1107 = vmatpush.msrb.mxu0 %v866_v10  ;;  %v1227_v8 = vld [vmem:[#allocation6 + $0xd50] sm:$0xff]  ;;  %v1289_v60 = vld [vmem:[#allocation6 + $0xf40] sm:$0xff] }
  0xf6   : > { %1127 = vmatpush.msrb.mxu1 %v898_v12  ;;  %1149 = vmatpush.msrb.mxu2 %v926_v14  ;;  %v609_v23 = vpop.f32.mrf.mxu3  ;;  %v1255_v59 = vld [vmem:[#allocation6 + $0xe30] sm:$0xff]  ;;  %v1193_v10 = vld [vmem:[#allocation6 + $0xc40] sm:$0xff]  ;;  %v1182_v14 = vld [vmem:[#allocation2 + $0x28] sm:$0x7] }
  0xf7   : > { %1168 = vmatpush.msrb.mxu3 %v960_v17  ;;  %1150 = vmatmul.f32.vlgmr.msrb.gmra.mxu2 %v3019_v5  ;;  %v3035_v25 = vadd.f32 %v609_v23, %v590_v13  ;;  %v1213_v5 = vld [vmem:[#allocation6 + $0xce0] sm:$0xff]  ;;  %v1178_v13 = vld [vmem:[#allocation2 + $0x18] sm:$0xf8] }
  0xf8   : > { %1108 = vmatpush.msrb.mxu0 %v864_v18  ;;  %1378 = vmatpush.msra.mxu2 %v1279_v19  ;;  %v1225_v12 = vld [vmem:[#allocation6 + $0xd40] sm:$0xff] }
  0xf9   : > { %1128 = vmatpush.msrb.mxu1 %v896_v20  ;;  %1169 = vmatpush.msrb.mxu3 %v958_v21  ;;  %v1253_v19 = vld [vmem:[#allocation6 + $0xe20] sm:$0xff]  ;;  %v1287_v20 = vld [vmem:[#allocation6 + $0xf30] sm:$0xff] }
  0xfa   : > { %1109 = vmatpush.msrb.mxu0 %v862_v22  ;;  %1170 = vmatmul.f32.vlgmr.msrb.gmra.mxu3 %v3023_v11  ;;  %v1211_v11 = vld [vmem:[#allocation6 + $0xcd0] sm:$0xff] }
  0xfb   : > { %1379 = vmatpush.msra.mxu2 %v1277_v24  ;;  %1398 = vmatpush.msra.mxu3 %v1311_v26  ;;  %v1191_v21 = vld [vmem:[#allocation6 + $0xc30] sm:$0xff] }
  0xfc   : > { %1129 = vmatpush.msrb.mxu1 %v894_v27  ;;  %1110 = vmatmul.f32.vlgmr.msrb.gmra.mxu0 %v3026_v15  ;;  %v1241_v15 = vld [vmem:[#allocation6 + $0xdc0] sm:$0xff]  ;;  %v1223_v24 = vld [vmem:[#allocation6 + $0xd30] sm:$0xff] }
  0xfd   : > { %1130 = vmatmul.f32.vlgmr.msrb.gmra.mxu1 %v3029_v16  ;;  %1338 = vmatpush.msra.mxu0 %v1215_v28  ;;  %v1269_v16 = vld [vmem:[#allocation6 + $0xea0] sm:$0xff]  ;;  %v1251_v26 = vld [vmem:[#allocation6 + $0xe10] sm:$0xff]  ;;  %v1328_v28 = vrot.slane %v1178_v13, 3  ;;  %v1208_v13 = vld [vmem:[#allocation6 + $0xcb8] sm:$0xff] }
  0xfe   : > { %1358 = vmatpush.msra.mxu1 %v1247_v29  ;;  %1380 = vmatpush.msra.mxu2 %v1275_v30  ;;  %v1285_v27 = vld [vmem:[#allocation6 + $0xf20] sm:$0xff]  ;;  %v1329_v29 = vrot.slane %v1182_v14, 3  ;;  %v1179_v30 = vld [vmem:[#allocation2 + $0x10] sm:$0xf8]  ;;  %v1240_v14 = vld [vmem:[#allocation6 + $0xdb8] sm:$0xff] }
  0xff   : > { %1399 = vmatpush.msra.mxu3 %v1309_v31  ;;  %1339 = vmatpush.msra.mxu0 %v1213_v5  ;;  %v1183_v31 = vld [vmem:[#allocation2 + $0x38] sm:$0x7] }
 0x100   : > { %1359 = vmatpush.msra.mxu1 %v1245_v32  ;;  %1381 = vmatpush.msra.mxu2 %v1273_v33  ;;  %v1189_v32 = vld [vmem:[#allocation6 + $0xc20] sm:$0xff] }
 0x101   : > { %1400 = vmatpush.msra.mxu3 %v1307_v34  ;;  %1340 = vmatpush.msra.mxu0 %v1211_v11  ;;  %v1221_v33 = vld [vmem:[#allocation6 + $0xd20] sm:$0xff]  ;;  %v1176_v11 = vld [vmem:[#allocation2 + $0x30] sm:$0xf8] }
 0x102   : > { %1360 = vmatpush.msra.mxu1 %v1243_v35  ;;  %1382 = vmatpush.msra.mxu2 %v1271_v36  ;;  %v1177_v35 = vld [vmem:[#allocation2] sm:$0xf8]  ;;  %v1181_v36 = vld [vmem:[#allocation2 + $0x20] sm:$0x7] }
 0x103   : > { %1401 = vmatpush.msra.mxu3 %v1305_v37  ;;  %1341 = vmatpush.msra.mxu0 %v1209_v38  ;;  %v1249_v37 = vld [vmem:[#allocation6 + $0xe00] sm:$0xff]  ;;  %v1283_v38 = vld [vmem:[#allocation6 + $0xf10] sm:$0xff] }
 0x104   : > { %1361 = vmatpush.msra.mxu1 %v1241_v15  ;;  %1383 = vmatpush.msra.mxu2 %v1269_v16  ;;  %v1331_v15 = vrot.slane %v1179_v30, 3  ;;  %v1332_v16 = vrot.slane %v1183_v31, 3  ;;  %v1234_v30 = vld [vmem:[#allocation6 + $0xd88] sm:$0xff] }
 0x105   : > { %1402 = vmatpush.msra.mxu3 %v1303_v40  ;;  %1342 = vmatpush.msra.mxu0 %v1207_v41  ;;  %v3044_v40 = vsel %vm1321_vm3, %v1328_v28, %v1329_v29  ;;  %v1187_v41 = vld [vmem:[#allocation6 + $0xc10] sm:$0xff]  ;;  %v1298_v28 = vld [vmem:[#allocation6 + $0xf88] sm:$0xff] }
 0x106   : > { %1362 = vmatpush.msra.mxu1 %v1239_v42  ;;  %v629_v39 = vpop.f32.mrf.mxu0  ;;  %1384 = vmatpush.msra.mxu2 %v1267_v43  ;;  %v1322_v42 = vrot.slane %v1176_v11, 3  ;;  %v1202_v29 = vld [vmem:[#allocation6 + $0xc88] sm:$0xff] }
 0x107   : > { %1403 = vmatpush.msra.mxu3 %v1301_v44  ;;  %1343 = vmatpush.msra.mxu0 %v1205_v45  ;;  %v1280_v44 = vld [vmem:[#allocation6 + $0xef8] sm:$0xff]  ;;  %v1219_v45 = vld [vmem:[#allocation6 + $0xd10] sm:$0xff]  ;;  %v1262_v31 = vld [vmem:[#allocation6 + $0xe68] sm:$0xff] }
 0x108   : > { %1363 = vmatpush.msra.mxu1 %v1237_v46  ;;  %1385 = vmatpush.msra.mxu2 %v1265_v48  ;;  %v1325_v48 = vrot.slane %v1177_v35, 3  ;;  %v1294_v11 = vld [vmem:[#allocation6 + $0xf68] sm:$0xff] }
 0x109   : > { %1404 = vmatpush.msra.mxu3 %v1299_v47  ;;  %v649_v57 = vpop.f32.mrf.mxu1  ;;  %1344 = vmatpush.msra.mxu0 %v1203_v49  ;;  %v1326_v47 = vrot.slane %v1181_v36, 3  ;;  %v1281_v49 = vld [vmem:[#allocation6 + $0xf00] sm:$0xff]  ;;  %v1230_v35 = vld [vmem:[#allocation6 + $0xd68] sm:$0xff] }
 0x10a   : > { %1364 = vmatpush.msra.mxu1 %v1235_v50  ;;  %v650_v58 = vadd.f32 %v649_v57, %v629_v39  ;;  %1386 = vmatpush.msra.mxu2 %v1263_v51  ;;  %v1185_v50 = vld [vmem:[#allocation6 + $0xc00] sm:$0xff]  ;;  %v3048_v51 = vsel %vm1321_vm3, %v1331_v15, %v1332_v16  ;;  %v1258_v36 = vld [vmem:[#allocation6 + $0xe48] sm:$0xff]  ;;  %v1228_v15 = vld [vmem:[#allocation6 + $0xd58] sm:$0xff] }
 0x10b   : > { %1405 = vmatpush.msra.mxu3 %v1297_v54  ;;  %1345 = vmatpush.msra.mxu0 %v1201_v55  ;;  %v1278_v54 = vld [vmem:[#allocation6 + $0xee8] sm:$0xff]  ;;  %v1217_v57 = vld [vmem:[#allocation6 + $0xd00] sm:$0xff]  ;;  %v1256_v16 = vld [vmem:[#allocation6 + $0xe38] sm:$0xff] }
 0x10c   : > { %1365 = vmatpush.msra.mxu1 %v1233_v56  ;;  %1387 = vmatpush.msra.mxu2 %v1261_v61  ;;  %v669_v52 = vpop.f32.mrf.mxu2  ;;  %v1312_v56 = vld [vmem:[#allocation6 + $0xff8] sm:$0xff] }
 0x10d   : > { %1406 = vmatpush.msra.mxu3 %v1295_v62  ;;  %1346 = vmatpush.msra.mxu0 %v1199_v63  ;;  %v670_v9 = vadd.f32 %v669_v52, %v650_v58  ;;  %v3056_v58 = vsel %vm1321_vm3, %v1325_v48, %v1326_v47  ;;  %v1216_v63 = vld [vmem:[#allocation6 + $0xcf8] sm:$0xff] }
 0x10e   : > { %1366 = vmatpush.msra.mxu1 %v1231_v0  ;;  %1388 = vmatpush.msra.mxu2 %v1259_v1  ;;  %v1248_v0 = vld [vmem:[#allocation6 + $0xdf8] sm:$0xff] }
 0x10f   : > { %1407 = vmatpush.msra.mxu3 %v1293_v2  ;;  %1347 = vmatpush.msra.mxu0 %v1197_v3  ;;  %v689_v17 = vpop.f32.mrf.mxu3  ;;  %v1276_v1 = vld [vmem:[#allocation6 + $0xed8] sm:$0xff]  ;;  %v1310_v2 = vld [vmem:[#allocation6 + $0xfe8] sm:$0xff] }
 0x110   : > { %1367 = vmatpush.msra.mxu1 %v1229_v4  ;;  %v709_v18 = vpop.f32.mrf.mxu0  ;;  %1389 = vmatpush.msra.mxu2 %v1257_v6  ;;  %v3040_v22 = vadd.f32 %v689_v17, %v670_v9  ;;  %v1214_v3 = vld [vmem:[#allocation6 + $0xce8] sm:$0xff]  ;;  %v1308_v52 = vld [vmem:[#allocation6 + $0xfd8] sm:$0xff] }
 0x111   : > { %1408 = vmatpush.msra.mxu3 %v1291_v53  ;;  %v710_v23 = vadd.f32 %v709_v18, %v3035_v25  ;;  %1348 = vmatpush.msra.mxu0 %v1195_v7  ;;  %v1180_v25 = vld [vmem:[#allocation2 + $0x8] sm:$0x7]  ;;  %v1212_v53 = vld [vmem:[#allocation6 + $0xcd8] sm:$0xff] }
 0x112   : > { %1368 = vmatpush.msra.mxu1 %v1227_v8  ;;  %1390 = vmatpush.msra.mxu2 %v1255_v59  ;;  %v1323_v46 = vrot.slane %v1180_v25, 3  ;;  %v1246_v4 = vld [vmem:[#allocation6 + $0xde8] sm:$0xff]  ;;  %v1244_v7 = vld [vmem:[#allocation6 + $0xdd8] sm:$0xff] }
 0x113   : > { %1409 = vmatpush.msra.mxu3 %v1289_v60  ;;  %v729_v5 = vpop.f32.mrf.mxu1  ;;  %1349 = vmatpush.msra.mxu0 %v1193_v10  ;;  %v1274_v6 = vld [vmem:[#allocation6 + $0xec8] sm:$0xff]  ;;  %v1272_v8 = vld [vmem:[#allocation6 + $0xeb8] sm:$0xff] }
 0x114   : > { %1369 = vmatpush.msra.mxu1 %v1225_v12  ;;  %v730_v34 = vadd.f32 %v729_v5, %v710_v23  ;;  %1391 = vmatpush.msra.mxu2 %v1253_v19  ;;  %v3053_v62 = vsel %vm1321_vm3, %v1322_v42, %v1323_v46  ;;  %v1306_v9 = vld [vmem:[#allocation6 + $0xfc8] sm:$0xff]  ;;  %v1304_v12 = vld [vmem:[#allocation6 + $0xfb8] sm:$0xff] }
 0x115   : > { %1410 = vmatpush.msra.mxu3 %v1287_v20  ;;  %1350 = vmatpush.msra.mxu0 %v1191_v21  ;;  %v1210_v59 = vld [vmem:[#allocation6 + $0xcc8] sm:$0xff]  ;;  %v1268_v17 = vld [vmem:[#allocation6 + $0xe98] sm:$0xff] }
 0x116   : > { %1370 = vmatpush.msra.mxu1 %v1223_v24  ;;  %1392 = vmatpush.msra.mxu2 %v1251_v26  ;;  %v749_v43 = vpop.f32.mrf.mxu2  ;;  %v1242_v60 = vld [vmem:[#allocation6 + $0xdc8] sm:$0xff]  ;;  %v1300_v23 = vld [vmem:[#allocation6 + $0xf98] sm:$0xff] }
 0x117   : > { %1411 = vmatpush.msra.mxu3 %v1285_v27  ;;  %1351 = vmatpush.msra.mxu0 %v1189_v32  ;;  %v750_v39 = vadd.f32 %v749_v43, %v730_v34  ;;  %v1270_v10 = vld [vmem:[#allocation6 + $0xea8] sm:$0xff]  ;;  %v1204_v24 = vld [vmem:[#allocation6 + $0xc98] sm:$0xff] }
 0x118   : > { %1371 = vmatpush.msra.mxu1 %v1221_v33  ;;  %1393 = vmatpush.msra.mxu2 %v1249_v37  ;;  %v1302_v18 = vld [vmem:[#allocation6 + $0xfa8] sm:$0xff]  ;;  %v1236_v26 = vld [vmem:[#allocation6 + $0xd98] sm:$0xff] }
 0x119   : > { %1412 = vmatpush.msra.mxu3 %v1283_v38  ;;  %1394 = vmatmul.f32.vlgmr.msra.gmra.mxu2 %v3044_v40  ;;  %v769_v55 = vpop.f32.mrf.mxu3  ;;  %v1206_v19 = vld [vmem:[#allocation6 + $0xca8] sm:$0xff]  ;;  %v1264_v27 = vld [vmem:[#allocation6 + $0xe78] sm:$0xff] }
 0x11a   : > { %1352 = vmatpush.msra.mxu0 %v1187_v41  ;;  %1458 = vmatpush.msrb.mxu2 %v1280_v44  ;;  %v3050_v61 = vadd.f32 %v769_v55, %v750_v39  ;;  %v1238_v20 = vld [vmem:[#allocation6 + $0xda8] sm:$0xff]  ;;  %v1296_v5 = vld [vmem:[#allocation6 + $0xf78] sm:$0xff] }
 0x11b   : > { %1372 = vmatpush.msra.mxu1 %v1219_v45  ;;  %1413 = vmatpush.msra.mxu3 %v1281_v49  ;;  %v1266_v21 = vld [vmem:[#allocation6 + $0xe88] sm:$0xff]  ;;  %v1200_v32 = vld [vmem:[#allocation6 + $0xc78] sm:$0xff] }
 0x11c   : > { %1353 = vmatpush.msra.mxu0 %v1185_v50  ;;  %1414 = vmatmul.f32.vlgmr.msra.gmra.mxu3 %v3048_v51  ;;  %v1232_v33 = vld [vmem:[#allocation6 + $0xd78] sm:$0xff]  ;;  %v1198_v25 = vld [vmem:[#allocation6 + $0xc68] sm:$0xff] }
 0x11d   : > { %1459 = vmatpush.msrb.mxu2 %v1278_v54  ;;  %1478 = vmatpush.msrb.mxu3 %v1312_v56  ;;  %v1260_v34 = vld [vmem:[#allocation6 + $0xe58] sm:$0xff]  ;;  %v1290_v41 = vld [vmem:[#allocation6 + $0xf48] sm:$0xff] }
 0x11e   : > { %1373 = vmatpush.msra.mxu1 %v1217_v57  ;;  %1354 = vmatmul.f32.vlgmr.msra.gmra.mxu0 %v3053_v62  ;;  %v1292_v37 = vld [vmem:[#allocation6 + $0xf58] sm:$0xff]  ;;  %v1194_v43 = vld [vmem:[#allocation6 + $0xc48] sm:$0xff] }
 0x11f   : > { %1374 = vmatmul.f32.vlgmr.msra.gmra.mxu1 %v3056_v58  ;;  %1418 = vmatpush.msrb.mxu0 %v1216_v63  ;;  %v1196_v38 = vld [vmem:[#allocation6 + $0xc58] sm:$0xff]  ;;  %v1226_v44 = vld [vmem:[#allocation6 + $0xd48] sm:$0xff] }
 0x120   : > { %1438 = vmatpush.msrb.mxu1 %v1248_v0  ;;  %1460 = vmatpush.msrb.mxu2 %v1276_v1  ;;  %v1254_v46 = vld [vmem:[#allocation6 + $0xe28] sm:$0xff]  ;;  %v1288_v48 = vld [vmem:[#allocation6 + $0xf38] sm:$0xff] }
 0x121   : > { %1479 = vmatpush.msrb.mxu3 %v1310_v2  ;;  %1419 = vmatpush.msrb.mxu0 %v1214_v3  ;;  %v1192_v47 = vld [vmem:[#allocation6 + $0xc38] sm:$0xff]  ;;  %v1286_v54 = vld [vmem:[#allocation6 + $0xf28] sm:$0xff]  ;;  %v1603_v2 = vld [vmem:[#allocation6 + $0x12f0] sm:$0xff] }
 0x122   : > { %1439 = vmatpush.msrb.mxu1 %v1246_v4  ;;  %1461 = vmatpush.msrb.mxu2 %v1274_v6  ;;  %v1224_v39 = vld [vmem:[#allocation6 + $0xd38] sm:$0xff]  ;;  %v1190_v56 = vld [vmem:[#allocation6 + $0xc28] sm:$0xff] }
 0x123   : > { %1480 = vmatpush.msrb.mxu3 %v1308_v52  ;;  %1420 = vmatpush.msrb.mxu0 %v1212_v53  ;;  %v1252_v50 = vld [vmem:[#allocation6 + $0xe18] sm:$0xff]  ;;  %v1222_v57 = vld [vmem:[#allocation6 + $0xd28] sm:$0xff] }
 0x124   : > { %1440 = vmatpush.msrb.mxu1 %v1244_v7  ;;  %1462 = vmatpush.msrb.mxu2 %v1272_v8  ;;  %v1284_v63 = vld [vmem:[#allocation6 + $0xf18] sm:$0xff]  ;;  %v1282_v6 = vld [vmem:[#allocation6 + $0xf08] sm:$0xff]  ;;  %v1601_v7 = vld [vmem:[#allocation6 + $0x12e0] sm:$0xff] }
 0x125   : > { %1481 = vmatpush.msrb.mxu3 %v1306_v9  ;;  %1421 = vmatpush.msrb.mxu0 %v1210_v59  ;;  %v1188_v0 = vld [vmem:[#allocation6 + $0xc18] sm:$0xff]  ;;  %v1186_v52 = vld [vmem:[#allocation6 + $0xc08] sm:$0xff]  ;;  %v1635_v9 = vld [vmem:[#allocation6 + $0x13f0] sm:$0xff] }
 0x126   : > { %1441 = vmatpush.msrb.mxu1 %v1242_v60  ;;  %1463 = vmatpush.msrb.mxu2 %v1270_v10  ;;  %v1220_v3 = vld [vmem:[#allocation6 + $0xd18] sm:$0xff]  ;;  %v1218_v59 = vld [vmem:[#allocation6 + $0xd08] sm:$0xff]  ;;  %v1539_v60 = vld [vmem:[#allocation6 + $0x10f0] sm:$0xff] }
 0x127   : > { %1482 = vmatpush.msrb.mxu3 %v1304_v12  ;;  %1422 = vmatpush.msrb.mxu0 %v1208_v13  ;;  %v1571_v10 = vld [vmem:[#allocation6 + $0x11f0] sm:$0xff]  ;;  %v1633_v13 = vld [vmem:[#allocation6 + $0x13e0] sm:$0xff] }
 0x128   : > { %1442 = vmatpush.msrb.mxu1 %v1240_v14  ;;  %1464 = vmatpush.msrb.mxu2 %v1268_v17  ;;  %v1599_v12 = vld [vmem:[#allocation6 + $0x12d0] sm:$0xff]  ;;  %v1569_v14 = vld [vmem:[#allocation6 + $0x11e0] sm:$0xff] }
 0x129   : > { %1483 = vmatpush.msrb.mxu3 %v1302_v18  ;;  %1423 = vmatpush.msrb.mxu0 %v1206_v19  ;;  %v1597_v17 = vld [vmem:[#allocation6 + $0x12c0] sm:$0xff]  ;;  %v1631_v18 = vld [vmem:[#allocation6 + $0x13d0] sm:$0xff] }
 0x12a   : > { %1443 = vmatpush.msrb.mxu1 %v1238_v20  ;;  %1465 = vmatpush.msrb.mxu2 %v1266_v21  ;;  %v1567_v19 = vld [vmem:[#allocation6 + $0x11d0] sm:$0xff]  ;;  %v1629_v21 = vld [vmem:[#allocation6 + $0x13c0] sm:$0xff] }
 0x12b   : > { %1484 = vmatpush.msrb.mxu3 %v1300_v23  ;;  %1424 = vmatpush.msrb.mxu0 %v1204_v24  ;;  %v1595_v20 = vld [vmem:[#allocation6 + $0x12b0] sm:$0xff]  ;;  %v1533_v23 = vld [vmem:[#allocation6 + $0x10c0] sm:$0xff] }
 0x12c   : > { %1444 = vmatpush.msrb.mxu1 %v1236_v26  ;;  %1466 = vmatpush.msrb.mxu2 %v1264_v27  ;;  %v1627_v24 = vld [vmem:[#allocation6 + $0x13b0] sm:$0xff] }
 0x12d   : > { %1485 = vmatpush.msrb.mxu3 %v1298_v28  ;;  %1425 = vmatpush.msrb.mxu0 %v1202_v29  ;;  %v1531_v26 = vld [vmem:[#allocation6 + $0x10b0] sm:$0xff]  ;;  %v1625_v29 = vld [vmem:[#allocation6 + $0x13a0] sm:$0xff] }
 0x12e   : > { %1445 = vmatpush.msrb.mxu1 %v1234_v30  ;;  %1467 = vmatpush.msrb.mxu2 %v1262_v31  ;;  %v1563_v27 = vld [vmem:[#allocation6 + $0x11b0] sm:$0xff]  ;;  %v1529_v30 = vld [vmem:[#allocation6 + $0x10a0] sm:$0xff] }
 0x12f   : > { %1486 = vmatpush.msrb.mxu3 %v1296_v5  ;;  %1426 = vmatpush.msrb.mxu0 %v1200_v32  ;;  %v1591_v28 = vld [vmem:[#allocation6 + $0x1290] sm:$0xff]  ;;  %v1561_v31 = vld [vmem:[#allocation6 + $0x11a0] sm:$0xff] }
 0x130   : > { %1446 = vmatpush.msrb.mxu1 %v1232_v33  ;;  %1468 = vmatpush.msrb.mxu2 %v1260_v34  ;;  %v1589_v5 = vld [vmem:[#allocation6 + $0x1280] sm:$0xff]  ;;  %v1623_v32 = vld [vmem:[#allocation6 + $0x1390] sm:$0xff] }
 0x131   : > { %1487 = vmatpush.msrb.mxu3 %v1294_v11  ;;  %1427 = vmatpush.msrb.mxu0 %v1198_v25  ;;  %v1527_v33 = vld [vmem:[#allocation6 + $0x1090] sm:$0xff]  ;;  %v1621_v25 = vld [vmem:[#allocation6 + $0x1380] sm:$0xff] }
 0x132   : > { %1447 = vmatpush.msrb.mxu1 %v1230_v35  ;;  %v789_v42 = vpop.f32.mrf.mxu0  ;;  %1469 = vmatpush.msrb.mxu2 %v1258_v36  ;;  %v1559_v34 = vld [vmem:[#allocation6 + $0x1190] sm:$0xff]  ;;  %v1525_v35 = vld [vmem:[#allocation6 + $0x1080] sm:$0xff] }
 0x133   : > { %1488 = vmatpush.msrb.mxu3 %v1292_v37  ;;  %v790_v45 = vadd.f32 %v789_v42, %v3040_v22  ;;  %1428 = vmatpush.msrb.mxu0 %v1196_v38  ;;  %v1250_v22 = vld [vmem:[#allocation6 + $0xe08] sm:$0xff]  ;;  %v1587_v11 = vld [vmem:[#allocation6 + $0x1270] sm:$0xff]  ;;  %v1557_v36 = vld [vmem:[#allocation6 + $0x1180] sm:$0xff] }
 0x134   : > { %1448 = vmatpush.msrb.mxu1 %v1228_v15  ;;  %1470 = vmatpush.msrb.mxu2 %v1256_v16  ;;  %v809_v49 = vpop.f32.mrf.mxu1  ;;  %v1585_v37 = vld [vmem:[#allocation6 + $0x1260] sm:$0xff]  ;;  %v1619_v38 = vld [vmem:[#allocation6 + $0x1370] sm:$0xff] }
 0x135   : > { %1489 = vmatpush.msrb.mxu3 %v1290_v41  ;;  %1429 = vmatpush.msrb.mxu0 %v1194_v43  ;;  %v810_v55 = vadd.f32 %v809_v49, %v790_v45  ;;  %v1523_v15 = vld [vmem:[#allocation6 + $0x1070] sm:$0xff]  ;;  %v1617_v42 = vld [vmem:[#allocation6 + $0x1360] sm:$0xff] }
 0x136   : > { %1449 = vmatpush.msrb.mxu1 %v1226_v44  ;;  %1471 = vmatpush.msrb.mxu2 %v1254_v46  ;;  %v1555_v16 = vld [vmem:[#allocation6 + $0x1170] sm:$0xff]  ;;  %v1521_v43 = vld [vmem:[#allocation6 + $0x1060] sm:$0xff] }
 0x137   : > { %1490 = vmatpush.msrb.mxu3 %v1288_v48  ;;  %1430 = vmatpush.msrb.mxu0 %v1192_v47  ;;  %v1583_v41 = vld [vmem:[#allocation6 + $0x1250] sm:$0xff]  ;;  %v1553_v44 = vld [vmem:[#allocation6 + $0x1160] sm:$0xff] }
 0x138   : > { %1450 = vmatpush.msrb.mxu1 %v1224_v39  ;;  %1472 = vmatpush.msrb.mxu2 %v1252_v50  ;;  %v829_v1 = vpop.f32.mrf.mxu2  ;;  %v1581_v45 = vld [vmem:[#allocation6 + $0x1240] sm:$0xff]  ;;  %v1615_v46 = vld [vmem:[#allocation6 + $0x1350] sm:$0xff] }
 0x139   : > { %1491 = vmatpush.msrb.mxu3 %v1286_v54  ;;  %1431 = vmatpush.msrb.mxu0 %v1190_v56  ;;  %v830_v4 = vadd.f32 %v829_v1, %v810_v55  ;;  %v1519_v48 = vld [vmem:[#allocation6 + $0x1050] sm:$0xff]  ;;  %v1613_v49 = vld [vmem:[#allocation6 + $0x1340] sm:$0xff]  ;;  %v1502_v55 = vld [vmem:[#allocation2 + $0x18] sm:$0xf0] }
 0x13a   : > { %1451 = vmatpush.msrb.mxu1 %v1222_v57  ;;  %1473 = vmatpush.msrb.mxu2 %v1250_v22  ;;  %v1551_v47 = vld [vmem:[#allocation6 + $0x1150] sm:$0xff]  ;;  %v1517_v50 = vld [vmem:[#allocation6 + $0x1040] sm:$0xff]  ;;  %v1506_v56 = vld [vmem:[#allocation2 + $0x28] sm:$0xf] }
 0x13b   : > { %1492 = vmatpush.msrb.mxu3 %v1284_v63  ;;  %v849_v53 = vpop.f32.mrf.mxu3  ;;  %1474 = vmatmul.f32.vlgmr.msrb.gmra.mxu2 %v3044_v40  ;;  %v1537_v40 = vld [vmem:[#allocation6 + $0x10e0] sm:$0xff]  ;;  %v1579_v39 = vld [vmem:[#allocation6 + $0x1230] sm:$0xff] }
 0x13c   : > { %1432 = vmatpush.msrb.mxu0 %v1188_v0  ;;  %v3063_v8 = vadd.f32 %v849_v53, %v830_v4  ;;  %1702 = vmatpush.msra.mxu2 %v1603_v2  ;;  %v1549_v54 = vld [vmem:[#allocation6 + $0x1140] sm:$0xff]  ;;  %v1611_v22 = vld [vmem:[#allocation6 + $0x1330] sm:$0xff]  ;;  %v1653_v4 = vrot.slane %v1506_v56, 4  ;;  %v1560_v56 = vld [vmem:[#allocation6 + $0x1198] sm:$0xff] }
 0x13d   : > { %1452 = vmatpush.msrb.mxu1 %v1220_v3  ;;  %1493 = vmatpush.msrb.mxu3 %v1282_v6  ;;  %v1577_v57 = vld [vmem:[#allocation6 + $0x1220] sm:$0xff]  ;;  %v1515_v63 = vld [vmem:[#allocation6 + $0x1030] sm:$0xff]  ;;  %v1652_v3 = vrot.slane %v1502_v55, 4  ;;  %v1528_v55 = vld [vmem:[#allocation6 + $0x1098] sm:$0xff] }
 0x13e   : > { %1433 = vmatpush.msrb.mxu0 %v1186_v52  ;;  %1494 = vmatmul.f32.vlgmr.msrb.gmra.mxu3 %v3048_v51  ;;  %v1535_v51 = vld [vmem:[#allocation6 + $0x10d0] sm:$0xff]  ;;  %v1609_v2 = vld [vmem:[#allocation6 + $0x1320] sm:$0xff]  ;;  %v1507_v52 = vld [vmem:[#allocation2 + $0x38] sm:$0xf] }
 0x13f   : > { %1703 = vmatpush.msra.mxu2 %v1601_v7  ;;  %1722 = vmatpush.msra.mxu3 %v1635_v9  ;;  %v1547_v0 = vld [vmem:[#allocation6 + $0x1130] sm:$0xff]  ;;  %v1513_v53 = vld [vmem:[#allocation6 + $0x1020] sm:$0xff] }
 0x140   : > { %1453 = vmatpush.msrb.mxu1 %v1218_v59  ;;  %1434 = vmatmul.f32.vlgmr.msrb.gmra.mxu0 %v3053_v62  ;;  %v1565_v62 = vld [vmem:[#allocation6 + $0x11c0] sm:$0xff]  ;;  %v1575_v1 = vld [vmem:[#allocation6 + $0x1210] sm:$0xff]  ;;  %v1504_v59 = vld [vmem:[#allocation2 + $0x8] sm:$0xf] }
 0x141   : > { %1454 = vmatmul.f32.vlgmr.msrb.gmra.mxu1 %v3056_v58  ;;  %1662 = vmatpush.msra.mxu0 %v1539_v60  ;;  %v1593_v58 = vld [vmem:[#allocation6 + $0x12a0] sm:$0xff]  ;;  %v1503_v6 = vld [vmem:[#allocation2 + $0x10] sm:$0xf0] }
 0x142   : > { %1682 = vmatpush.msra.mxu1 %v1571_v10  ;;  %1704 = vmatpush.msra.mxu2 %v1599_v12  ;;  %v1545_v7 = vld [vmem:[#allocation6 + $0x1120] sm:$0xff]  ;;  %v1500_v9 = vld [vmem:[#allocation2 + $0x30] sm:$0xf0] }
 0x143   : > { %1723 = vmatpush.msra.mxu3 %v1633_v13  ;;  %1663 = vmatpush.msra.mxu0 %v1537_v40  ;;  %v1501_v60 = vld [vmem:[#allocation2] sm:$0xf0]  ;;  %v1505_v10 = vld [vmem:[#allocation2 + $0x20] sm:$0xf]  ;;  %v1607_v13 = vld [vmem:[#allocation6 + $0x1310] sm:$0xff]  ;;  %v1655_v40 = vrot.slane %v1503_v6, 4 }
 0x144   : > { %1683 = vmatpush.msra.mxu1 %v1569_v14  ;;  %1705 = vmatpush.msra.mxu2 %v1597_v17  ;;  %v1573_v12 = vld [vmem:[#allocation6 + $0x1200] sm:$0xff]  ;;  %v1656_v14 = vrot.slane %v1507_v52, 4  ;;  %v3069_v17 = vsel %vm1645_vm4, %v1652_v3, %v1653_v4  ;;  %v1524_v3 = vld [vmem:[#allocation6 + $0x1078] sm:$0xff] }
 0x145   : > { %1724 = vmatpush.msra.mxu3 %v1631_v18  ;;  %1664 = vmatpush.msra.mxu0 %v1535_v51  ;;  %v1511_v18 = vld [vmem:[#allocation6 + $0x1010] sm:$0xff]  ;;  %v1604_v51 = vld [vmem:[#allocation6 + $0x12f8] sm:$0xff] }
 0x146   : > { %1684 = vmatpush.msra.mxu1 %v1567_v19  ;;  %1706 = vmatpush.msra.mxu2 %v1595_v20  ;;  %v1543_v19 = vld [vmem:[#allocation6 + $0x1110] sm:$0xff]  ;;  %v1646_v20 = vrot.slane %v1500_v9, 4  ;;  %v1556_v4 = vld [vmem:[#allocation6 + $0x1178] sm:$0xff] }
 0x147   : > { %1725 = vmatpush.msra.mxu3 %v1629_v21  ;;  %1665 = vmatpush.msra.mxu0 %v1533_v23  ;;  %v1647_v21 = vrot.slane %v1504_v59, 4  ;;  %v1649_v23 = vrot.slane %v1501_v60, 4  ;;  %v1522_v59 = vld [vmem:[#allocation6 + $0x1068] sm:$0xff] }
 0x148   : > { %1685 = vmatpush.msra.mxu1 %v1565_v62  ;;  %1707 = vmatpush.msra.mxu2 %v1593_v58  ;;  %v1650_v62 = vrot.slane %v1505_v10, 4  ;;  %v1605_v58 = vld [vmem:[#allocation6 + $0x1300] sm:$0xff]  ;;  %v1554_v60 = vld [vmem:[#allocation6 + $0x1168] sm:$0xff] }
 0x149   : > { %1726 = vmatpush.msra.mxu3 %v1627_v24  ;;  %1666 = vmatpush.msra.mxu0 %v1531_v26  ;;  %v1509_v24 = vld [vmem:[#allocation6 + $0x1000] sm:$0xff]  ;;  %v3073_v26 = vsel %vm1645_vm4, %v1655_v40, %v1656_v14  ;;  %v1582_v10 = vld [vmem:[#allocation6 + $0x1248] sm:$0xff]  ;;  %v1552_v40 = vld [vmem:[#allocation6 + $0x1158] sm:$0xff] }
 0x14a   : > { %1686 = vmatpush.msra.mxu1 %v1563_v27  ;;  %1708 = vmatpush.msra.mxu2 %v1591_v28  ;;  %v1602_v27 = vld [vmem:[#allocation6 + $0x12e8] sm:$0xff]  ;;  %v1636_v28 = vld [vmem:[#allocation6 + $0x13f8] sm:$0xff] }
 0x14b   : > { %1727 = vmatpush.msra.mxu3 %v1625_v29  ;;  %1667 = vmatpush.msra.mxu0 %v1529_v30  ;;  %v1541_v29 = vld [vmem:[#allocation6 + $0x1100] sm:$0xff]  ;;  %v3076_v30 = vsel %vm1645_vm4, %v1646_v20, %v1647_v21  ;;  %v1550_v20 = vld [vmem:[#allocation6 + $0x1148] sm:$0xff] }
 0x14c   : > { %1687 = vmatpush.msra.mxu1 %v1561_v31  ;;  %1709 = vmatpush.msra.mxu2 %v1589_v5  ;;  %v3079_v31 = vsel %vm1645_vm4, %v1649_v23, %v1650_v62  ;;  %v1540_v5 = vld [vmem:[#allocation6 + $0x10f8] sm:$0xff]  ;;  %v1578_v21 = vld [vmem:[#allocation6 + $0x1228] sm:$0xff] }
 0x14d   : > { %1728 = vmatpush.msra.mxu3 %v1623_v32  ;;  %1668 = vmatpush.msra.mxu0 %v1527_v33  ;;  %v1572_v32 = vld [vmem:[#allocation6 + $0x11f8] sm:$0xff] }
 0x14e   : > { %1688 = vmatpush.msra.mxu1 %v1559_v34  ;;  %1710 = vmatpush.msra.mxu2 %v1587_v11  ;;  %v1600_v33 = vld [vmem:[#allocation6 + $0x12d8] sm:$0xff]  ;;  %v1634_v34 = vld [vmem:[#allocation6 + $0x13e8] sm:$0xff] }
 0x14f   : > { %1729 = vmatpush.msra.mxu3 %v1621_v25  ;;  %1669 = vmatpush.msra.mxu0 %v1525_v35  ;;  %v1538_v11 = vld [vmem:[#allocation6 + $0x10e8] sm:$0xff]  ;;  %v1612_v23 = vld [vmem:[#allocation6 + $0x1338] sm:$0xff] }
 0x150   : > { %1689 = vmatpush.msra.mxu1 %v1557_v36  ;;  %1711 = vmatpush.msra.mxu2 %v1585_v37  ;;  %v1570_v25 = vld [vmem:[#allocation6 + $0x11e8] sm:$0xff]  ;;  %v1632_v36 = vld [vmem:[#allocation6 + $0x13d8] sm:$0xff] }
 0x151   : > { %1730 = vmatpush.msra.mxu3 %v1619_v38  ;;  %1670 = vmatpush.msra.mxu0 %v1523_v15  ;;  %v1598_v35 = vld [vmem:[#allocation6 + $0x12c8] sm:$0xff]  ;;  %v1536_v37 = vld [vmem:[#allocation6 + $0x10d8] sm:$0xff] }
 0x152   : > { %1690 = vmatpush.msra.mxu1 %v1555_v16  ;;  %1712 = vmatpush.msra.mxu2 %v1583_v41  ;;  %v1568_v38 = vld [vmem:[#allocation6 + $0x11d8] sm:$0xff]  ;;  %v1630_v16 = vld [vmem:[#allocation6 + $0x13c8] sm:$0xff] }
 0x153   : > { %1731 = vmatpush.msra.mxu3 %v1617_v42  ;;  %1671 = vmatpush.msra.mxu0 %v1521_v43  ;;  %v1596_v15 = vld [vmem:[#allocation6 + $0x12b8] sm:$0xff]  ;;  %v1534_v41 = vld [vmem:[#allocation6 + $0x10c8] sm:$0xff] }
 0x154   : > { %1691 = vmatpush.msra.mxu1 %v1553_v44  ;;  %1713 = vmatpush.msra.mxu2 %v1581_v45  ;;  %v1566_v42 = vld [vmem:[#allocation6 + $0x11c8] sm:$0xff]  ;;  %v1628_v44 = vld [vmem:[#allocation6 + $0x13b8] sm:$0xff] }
 0x155   : > { %1732 = vmatpush.msra.mxu3 %v1615_v46  ;;  %1672 = vmatpush.msra.mxu0 %v1519_v48  ;;  %v1594_v43 = vld [vmem:[#allocation6 + $0x12a8] sm:$0xff]  ;;  %v1532_v45 = vld [vmem:[#allocation6 + $0x10b8] sm:$0xff] }
 0x156   : > { %1692 = vmatpush.msra.mxu1 %v1551_v47  ;;  %1714 = vmatpush.msra.mxu2 %v1579_v39  ;;  %v1564_v46 = vld [vmem:[#allocation6 + $0x11b8] sm:$0xff]  ;;  %v1626_v47 = vld [vmem:[#allocation6 + $0x13a8] sm:$0xff] }
 0x157   : > { %1733 = vmatpush.msra.mxu3 %v1613_v49  ;;  %1673 = vmatpush.msra.mxu0 %v1517_v50  ;;  %v1592_v48 = vld [vmem:[#allocation6 + $0x1298] sm:$0xff]  ;;  %v1530_v39 = vld [vmem:[#allocation6 + $0x10a8] sm:$0xff]  ;;  %v3084_v6 = vpop.f32.mrf.mxu0 }
 0x158   : > { %1693 = vmatpush.msra.mxu1 %v1549_v54  ;;  %1715 = vmatpush.msra.mxu2 %v1577_v57  ;;  %v1562_v49 = vld [vmem:[#allocation6 + $0x11a8] sm:$0xff]  ;;  %v1624_v54 = vld [vmem:[#allocation6 + $0x1398] sm:$0xff]  ;;  %v3086_v52 = vpop.f32.mrf.mxu1  ;;  %v3088_v9 = vpop.f32.mrf.mxu2 }
 0x159   : > { %1734 = vmatpush.msra.mxu3 %v1611_v22  ;;  %1674 = vmatpush.msra.mxu0 %v1515_v63  ;;  %v1590_v50 = vld [vmem:[#allocation6 + $0x1288] sm:$0xff]  ;;  %v1588_v57 = vld [vmem:[#allocation6 + $0x1278] sm:$0xff] }
 0x15a   : > { %1694 = vmatpush.msra.mxu1 %v1547_v0  ;;  %1716 = vmatpush.msra.mxu2 %v1575_v1  ;;  %v1622_v22 = vld [vmem:[#allocation6 + $0x1388] sm:$0xff]  ;;  %v1516_v62 = vld [vmem:[#allocation6 + $0x1038] sm:$0xff] }
 0x15b   : > { %1735 = vmatpush.msra.mxu3 %v1609_v2  ;;  %1675 = vmatpush.msra.mxu0 %v1513_v53  ;;  %v1526_v63 = vld [vmem:[#allocation6 + $0x1088] sm:$0xff]  ;;  %v1620_v2 = vld [vmem:[#allocation6 + $0x1378] sm:$0xff]  ;;  %v3090_v14 = vpop.f32.mrf.mxu3 }
 0x15c   : > { %1695 = vmatpush.msra.mxu1 %v1545_v7  ;;  %1717 = vmatpush.msra.mxu2 %v1573_v12  ;;  %v1558_v0 = vld [vmem:[#allocation6 + $0x1188] sm:$0xff]  ;;  %v1584_v53 = vld [vmem:[#allocation6 + $0x1258] sm:$0xff] }
 0x15d   : > { %1736 = vmatpush.msra.mxu3 %v1607_v13  ;;  %1718 = vmatmul.f32.vlgmr.msra.gmra.mxu2 %v3069_v17  ;;  %v1586_v1 = vld [vmem:[#allocation6 + $0x1268] sm:$0xff]  ;;  %v1616_v12 = vld [vmem:[#allocation6 + $0x1358] sm:$0xff] }
 0x15e   : > { %1676 = vmatpush.msra.mxu0 %v1511_v18  ;;  %1782 = vmatpush.msrb.mxu2 %v1604_v51  ;;  %v1618_v7 = vld [vmem:[#allocation6 + $0x1368] sm:$0xff]  ;;  %v1520_v13 = vld [vmem:[#allocation6 + $0x1058] sm:$0xff] }
 0x15f   : > { %1696 = vmatpush.msra.mxu1 %v1543_v19  ;;  %1737 = vmatpush.msra.mxu3 %v1605_v58  ;;  %v1580_v18 = vld [vmem:[#allocation6 + $0x1238] sm:$0xff]  ;;  %v1614_v51 = vld [vmem:[#allocation6 + $0x1348] sm:$0xff] }
 0x160   : > { %1677 = vmatpush.msra.mxu0 %v1509_v24  ;;  %1738 = vmatmul.f32.vlgmr.msra.gmra.mxu3 %v3073_v26  ;;  %v1518_v19 = vld [vmem:[#allocation6 + $0x1048] sm:$0xff]  ;;  %v1548_v58 = vld [vmem:[#allocation6 + $0x1138] sm:$0xff] }
 0x161   : > { %1783 = vmatpush.msrb.mxu2 %v1602_v27  ;;  %1802 = vmatpush.msrb.mxu3 %v1636_v28  ;;  %v1576_v24 = vld [vmem:[#allocation6 + $0x1218] sm:$0xff]  ;;  %v1610_v27 = vld [vmem:[#allocation6 + $0x1328] sm:$0xff] }
 0x162   : > { %1697 = vmatpush.msra.mxu1 %v1541_v29  ;;  %1678 = vmatmul.f32.vlgmr.msra.gmra.mxu0 %v3076_v30 }
 0x163   : > { %1698 = vmatmul.f32.vlgmr.msra.gmra.mxu1 %v3079_v31  ;;  %1742 = vmatpush.msrb.mxu0 %v1540_v5  ;;  %v1514_v5 = vld [vmem:[#allocation6 + $0x1028] sm:$0xff] }
 0x164   : > { %1762 = vmatpush.msrb.mxu1 %v1572_v32  ;;  %1784 = vmatpush.msrb.mxu2 %v1600_v33  ;;  %v1546_v32 = vld [vmem:[#allocation6 + $0x1128] sm:$0xff] }
 0x165   : > { %1803 = vmatpush.msrb.mxu3 %v1634_v34  ;;  %1743 = vmatpush.msrb.mxu0 %v1538_v11  ;;  %v1574_v11 = vld [vmem:[#allocation6 + $0x1208] sm:$0xff] }
 0x166   : > { %1763 = vmatpush.msrb.mxu1 %v1570_v25  ;;  %1785 = vmatpush.msrb.mxu2 %v1598_v35  ;;  %v1608_v25 = vld [vmem:[#allocation6 + $0x1318] sm:$0xff] }
 0x167   : > { %1804 = vmatpush.msrb.mxu3 %v1632_v36  ;;  %1744 = vmatpush.msrb.mxu0 %v1536_v37  ;;  %v1512_v35 = vld [vmem:[#allocation6 + $0x1018] sm:$0xff]  ;;  %v1927_v37 = vld [vmem:[#allocation6 + $0x16f0] sm:$0xff] }
 0x168   : > { %1764 = vmatpush.msrb.mxu1 %v1568_v38  ;;  %1786 = vmatpush.msrb.mxu2 %v1596_v15  ;;  %v1544_v38 = vld [vmem:[#allocation6 + $0x1118] sm:$0xff] }
 0x169   : > { %1805 = vmatpush.msrb.mxu3 %v1630_v16  ;;  %1745 = vmatpush.msrb.mxu0 %v1534_v41  ;;  %v1606_v16 = vld [vmem:[#allocation6 + $0x1308] sm:$0xff] }
 0x16a   : > { %1765 = vmatpush.msrb.mxu1 %v1566_v42  ;;  %1787 = vmatpush.msrb.mxu2 %v1594_v43  ;;  %v1510_v41 = vld [vmem:[#allocation6 + $0x1008] sm:$0xff]  ;;  %v1925_v43 = vld [vmem:[#allocation6 + $0x16e0] sm:$0xff] }
 0x16b   : > { %1806 = vmatpush.msrb.mxu3 %v1628_v44  ;;  %1746 = vmatpush.msrb.mxu0 %v1532_v45  ;;  %v1959_v44 = vld [vmem:[#allocation6 + $0x17f0] sm:$0xff]  ;;  %v1542_v45 = vld [vmem:[#allocation6 + $0x1108] sm:$0xff] }
 0x16c   : > { %1766 = vmatpush.msrb.mxu1 %v1564_v46  ;;  %1788 = vmatpush.msrb.mxu2 %v1592_v48  ;;  %v1863_v48 = vld [vmem:[#allocation6 + $0x14f0] sm:$0xff] }
 0x16d   : > { %1807 = vmatpush.msrb.mxu3 %v1626_v47  ;;  %1747 = vmatpush.msrb.mxu0 %v1530_v39  ;;  %v1895_v47 = vld [vmem:[#allocation6 + $0x15f0] sm:$0xff] }
 0x16e   : > { %1767 = vmatpush.msrb.mxu1 %v1562_v49  ;;  %1789 = vmatpush.msrb.mxu2 %v1590_v50  ;;  %v1923_v39 = vld [vmem:[#allocation6 + $0x16d0] sm:$0xff]  ;;  %v1861_v49 = vld [vmem:[#allocation6 + $0x14e0] sm:$0xff] }
 0x16f   : > { %1808 = vmatpush.msrb.mxu3 %v1624_v54  ;;  %1748 = vmatpush.msrb.mxu0 %v1528_v55  ;;  %v1893_v50 = vld [vmem:[#allocation6 + $0x15e0] sm:$0xff]  ;;  %v1955_v54 = vld [vmem:[#allocation6 + $0x17d0] sm:$0xff] }
 0x170   : > { %1768 = vmatpush.msrb.mxu1 %v1560_v56  ;;  %1790 = vmatpush.msrb.mxu2 %v1588_v57  ;;  %v1891_v55 = vld [vmem:[#allocation6 + $0x15d0] sm:$0xff]  ;;  %v1953_v57 = vld [vmem:[#allocation6 + $0x17c0] sm:$0xff] }
 0x171   : > { %1809 = vmatpush.msrb.mxu3 %v1622_v22  ;;  %1749 = vmatpush.msrb.mxu0 %v1526_v63  ;;  %v1919_v56 = vld [vmem:[#allocation6 + $0x16b0] sm:$0xff]  ;;  %v1857_v22 = vld [vmem:[#allocation6 + $0x14c0] sm:$0xff] }
 0x172   : > { %1769 = vmatpush.msrb.mxu1 %v1558_v0  ;;  %1791 = vmatpush.msrb.mxu2 %v1586_v1  ;;  %v1951_v63 = vld [vmem:[#allocation6 + $0x17b0] sm:$0xff] }
 0x173   : > { %1810 = vmatpush.msrb.mxu3 %v1620_v2  ;;  %1750 = vmatpush.msrb.mxu0 %v1524_v3  ;;  %v1855_v0 = vld [vmem:[#allocation6 + $0x14b0] sm:$0xff]  ;;  %v1949_v3 = vld [vmem:[#allocation6 + $0x17a0] sm:$0xff] }
 0x174   : > { %1770 = vmatpush.msrb.mxu1 %v1556_v4  ;;  %1792 = vmatpush.msrb.mxu2 %v1584_v53  ;;  %v1887_v1 = vld [vmem:[#allocation6 + $0x15b0] sm:$0xff]  ;;  %v1853_v4 = vld [vmem:[#allocation6 + $0x14a0] sm:$0xff] }
 0x175   : > { %1811 = vmatpush.msrb.mxu3 %v1618_v7  ;;  %1751 = vmatpush.msrb.mxu0 %v1522_v59  ;;  %v1915_v2 = vld [vmem:[#allocation6 + $0x1690] sm:$0xff]  ;;  %v1885_v53 = vld [vmem:[#allocation6 + $0x15a0] sm:$0xff] }
 0x176   : > { %1771 = vmatpush.msrb.mxu1 %v1554_v60  ;;  %1793 = vmatpush.msrb.mxu2 %v1582_v10  ;;  %v1913_v7 = vld [vmem:[#allocation6 + $0x1680] sm:$0xff]  ;;  %v1947_v59 = vld [vmem:[#allocation6 + $0x1790] sm:$0xff] }
 0x177   : > { %1812 = vmatpush.msrb.mxu3 %v1616_v12  ;;  %1752 = vmatpush.msrb.mxu0 %v1520_v13  ;;  %v1851_v60 = vld [vmem:[#allocation6 + $0x1490] sm:$0xff]  ;;  %v1945_v13 = vld [vmem:[#allocation6 + $0x1780] sm:$0xff] }
 0x178   : > { %1772 = vmatpush.msrb.mxu1 %v1552_v40  ;;  %1794 = vmatpush.msrb.mxu2 %v1580_v18  ;;  %v1883_v10 = vld [vmem:[#allocation6 + $0x1590] sm:$0xff]  ;;  %v1849_v40 = vld [vmem:[#allocation6 + $0x1480] sm:$0xff] }
 0x179   : > { %1813 = vmatpush.msrb.mxu3 %v1614_v51  ;;  %1753 = vmatpush.msrb.mxu0 %v1518_v19  ;;  %v1111_v28 = vpop.f32.mrf.mxu0  ;;  %v1911_v12 = vld [vmem:[#allocation6 + $0x1670] sm:$0xff]  ;;  %v1881_v18 = vld [vmem:[#allocation6 + $0x1580] sm:$0xff] }
 0x17a   : > { %1773 = vmatpush.msrb.mxu1 %v1550_v20  ;;  %v1131_v29 = vpop.f32.mrf.mxu1  ;;  %1795 = vmatpush.msrb.mxu2 %v1578_v21  ;;  %v1151_v34 = vpop.f32.mrf.mxu2  ;;  %v1909_v51 = vld [vmem:[#allocation6 + $0x1660] sm:$0xff]  ;;  %v1943_v19 = vld [vmem:[#allocation6 + $0x1770] sm:$0xff] }
 0x17b   : > { %1814 = vmatpush.msrb.mxu3 %v1612_v23  ;;  %v1132_v33 = vadd.f32 %v1131_v29, %v1111_v28  ;;  %1754 = vmatpush.msrb.mxu0 %v1516_v62  ;;  %v1847_v20 = vld [vmem:[#allocation6 + $0x1470] sm:$0xff]  ;;  %v1941_v62 = vld [vmem:[#allocation6 + $0x1760] sm:$0xff] }
 0x17c   : > { %1774 = vmatpush.msrb.mxu1 %v1548_v58  ;;  %1796 = vmatpush.msrb.mxu2 %v1576_v24  ;;  %v1879_v21 = vld [vmem:[#allocation6 + $0x1570] sm:$0xff]  ;;  %v1845_v58 = vld [vmem:[#allocation6 + $0x1460] sm:$0xff] }
 0x17d   : > { %1815 = vmatpush.msrb.mxu3 %v1610_v27  ;;  %v1152_v36 = vadd.f32 %v1151_v34, %v1132_v33  ;;  %1755 = vmatpush.msrb.mxu0 %v1514_v5  ;;  %v1171_v15 = vpop.f32.mrf.mxu3  ;;  %v1907_v23 = vld [vmem:[#allocation6 + $0x1650] sm:$0xff]  ;;  %v1877_v24 = vld [vmem:[#allocation6 + $0x1560] sm:$0xff] }
 0x17e   : > { %1775 = vmatpush.msrb.mxu1 %v1546_v32  ;;  %1797 = vmatpush.msrb.mxu2 %v1574_v11  ;;  %v1905_v27 = vld [vmem:[#allocation6 + $0x1640] sm:$0xff]  ;;  %v1939_v28 = vld [vmem:[#allocation6 + $0x1750] sm:$0xff] }
 0x17f   : > { %1816 = vmatpush.msrb.mxu3 %v1608_v25  ;;  %v1172_v42 = vadd.f32 %v1171_v15, %v1152_v36  ;;  %1798 = vmatmul.f32.vlgmr.msrb.gmra.mxu2 %v3069_v17  ;;  %v1957_v17 = vld [vmem:[#allocation6 + $0x17e0] sm:$0xff]  ;;  %v1843_v29 = vld [vmem:[#allocation6 + $0x1450] sm:$0xff]  ;;  %v1826_v25 = vld [vmem:[#allocation2 + $0x18] sm:$0xe0] }
 0x180   : > { %1756 = vmatpush.msrb.mxu0 %v1512_v35  ;;  %2026 = vmatpush.msra.mxu2 %v1927_v37  ;;  %v1875_v5 = vld [vmem:[#allocation6 + $0x1550] sm:$0xff]  ;;  %v1937_v33 = vld [vmem:[#allocation6 + $0x1740] sm:$0xff]  ;;  %v1830_v35 = vld [vmem:[#allocation2 + $0x28] sm:$0x1f] }
 0x181   : > { %1776 = vmatpush.msrb.mxu1 %v1544_v38  ;;  %v3094_v46 = vadd.f32 %v1172_v42, %v3063_v8  ;;  %1817 = vmatpush.msrb.mxu3 %v1606_v16  ;;  %v1921_v8 = vld [vmem:[#allocation6 + $0x16c0] sm:$0xff]  ;;  %v1903_v32 = vld [vmem:[#allocation6 + $0x1630] sm:$0xff]  ;;  %v1976_v42 = vrot.slane %v1826_v25, 5  ;;  %v1854_v25 = vld [vmem:[#allocation6 + $0x14a8] sm:$0xff] }
 0x182   : > { %1757 = vmatpush.msrb.mxu0 %v1510_v41  ;;  %1818 = vmatmul.f32.vlgmr.msrb.gmra.mxu3 %v3073_v26  ;;  %v1859_v26 = vld [vmem:[#allocation6 + $0x14d0] sm:$0xff]  ;;  %v1841_v34 = vld [vmem:[#allocation6 + $0x1440] sm:$0xff] }
 0x183   : > { %2027 = vmatpush.msra.mxu2 %v1925_v43  ;;  %2046 = vmatpush.msra.mxu3 %v1959_v44  ;;  %v1873_v11 = vld [vmem:[#allocation6 + $0x1540] sm:$0xff]  ;;  %v1935_v37 = vld [vmem:[#allocation6 + $0x1730] sm:$0xff]  ;;  %v1977_v43 = vrot.slane %v1830_v35, 5  ;;  %v1886_v35 = vld [vmem:[#allocation6 + $0x15a8] sm:$0xff] }
 0x184   : > { %1777 = vmatpush.msrb.mxu1 %v1542_v45  ;;  %1758 = vmatmul.f32.vlgmr.msrb.gmra.mxu0 %v3076_v30  ;;  %v1889_v30 = vld [vmem:[#allocation6 + $0x15c0] sm:$0xff]  ;;  %v1839_v38 = vld [vmem:[#allocation6 + $0x1430] sm:$0xff]  ;;  %v1831_v45 = vld [vmem:[#allocation2 + $0x38] sm:$0x1f] }
 0x185   : > { %1778 = vmatmul.f32.vlgmr.msrb.gmra.mxu1 %v3079_v31  ;;  %1986 = vmatpush.msra.mxu0 %v1863_v48  ;;  %v1917_v31 = vld [vmem:[#allocation6 + $0x16a0] sm:$0xff]  ;;  %v1871_v15 = vld [vmem:[#allocation6 + $0x1530] sm:$0xff] }
 0x186   : > { %2006 = vmatpush.msra.mxu1 %v1895_v47  ;;  %2028 = vmatpush.msra.mxu2 %v1923_v39  ;;  %v1901_v36 = vld [vmem:[#allocation6 + $0x1620] sm:$0xff]  ;;  %v1899_v16 = vld [vmem:[#allocation6 + $0x1610] sm:$0xff] }
 0x187   : > { %2047 = vmatpush.msra.mxu3 %v1957_v17  ;;  %1987 = vmatpush.msra.mxu0 %v1861_v49  ;;  %v1933_v41 = vld [vmem:[#allocation6 + $0x1720] sm:$0xff]  ;;  %v1827_v44 = vld [vmem:[#allocation2 + $0x10] sm:$0xe0]  ;;  %v1828_v17 = vld [vmem:[#allocation2 + $0x8] sm:$0x1f] }
 0x188   : > { %2007 = vmatpush.msra.mxu1 %v1893_v50  ;;  %2029 = vmatpush.msra.mxu2 %v1921_v8  ;;  %v1837_v48 = vld [vmem:[#allocation6 + $0x1420] sm:$0xff]  ;;  %v1824_v39 = vld [vmem:[#allocation2 + $0x30] sm:$0xe0] }
 0x189   : > { %2048 = vmatpush.msra.mxu3 %v1955_v54  ;;  %1988 = vmatpush.msra.mxu0 %v1859_v26  ;;  %v1869_v47 = vld [vmem:[#allocation6 + $0x1520] sm:$0xff]  ;;  %v1931_v54 = vld [vmem:[#allocation6 + $0x1710] sm:$0xff]  ;;  %v1979_v26 = vrot.slane %v1827_v44, 5  ;;  %v1910_v44 = vld [vmem:[#allocation6 + $0x1668] sm:$0xff] }
 0x18a   : > { %2008 = vmatpush.msra.mxu1 %v1891_v55  ;;  %2030 = vmatpush.msra.mxu2 %v1919_v56  ;;  %v1825_v49 = vld [vmem:[#allocation2] sm:$0xe0]  ;;  %v1829_v50 = vld [vmem:[#allocation2 + $0x20] sm:$0x1f]  ;;  %v1980_v55 = vrot.slane %v1831_v45, 5  ;;  %v3100_v56 = vsel %vm1969_vm5, %v1976_v42, %v1977_v43  ;;  %v1850_v42 = vld [vmem:[#allocation6 + $0x1488] sm:$0xff] }
 0x18b   : > { %2049 = vmatpush.msra.mxu3 %v1953_v57  ;;  %1989 = vmatpush.msra.mxu0 %v1857_v22  ;;  %v1897_v8 = vld [vmem:[#allocation6 + $0x1600] sm:$0xff]  ;;  %v1835_v57 = vld [vmem:[#allocation6 + $0x1410] sm:$0xff]  ;;  %v1928_v22 = vld [vmem:[#allocation6 + $0x16f8] sm:$0xff] }
 0x18c   : > { %2009 = vmatpush.msra.mxu1 %v1889_v30  ;;  %2031 = vmatpush.msra.mxu2 %v1917_v31  ;;  %v1867_v30 = vld [vmem:[#allocation6 + $0x1510] sm:$0xff]  ;;  %v1970_v31 = vrot.slane %v1824_v39, 5  ;;  %v1882_v43 = vld [vmem:[#allocation6 + $0x1588] sm:$0xff]  ;;  %v1944_v45 = vld [vmem:[#allocation6 + $0x1778] sm:$0xff] }
 0x18d   : > { %2050 = vmatpush.msra.mxu3 %v1951_v63  ;;  %1990 = vmatpush.msra.mxu0 %v1855_v0  ;;  %v1971_v63 = vrot.slane %v1828_v17, 5  ;;  %v1973_v0 = vrot.slane %v1825_v49, 5  ;;  %v1908_v49 = vld [vmem:[#allocation6 + $0x1658] sm:$0xff] }
 0x18e   : > { %2010 = vmatpush.msra.mxu1 %v1887_v1  ;;  %2032 = vmatpush.msra.mxu2 %v1915_v2  ;;  %v1974_v1 = vrot.slane %v1829_v50, 5  ;;  %v1929_v2 = vld [vmem:[#allocation6 + $0x1700] sm:$0xff]  ;;  %v1942_v50 = vld [vmem:[#allocation6 + $0x1768] sm:$0xff] }
 0x18f   : > { %2051 = vmatpush.msra.mxu3 %v1949_v3  ;;  %1991 = vmatpush.msra.mxu0 %v1853_v4  ;;  %v1833_v3 = vld [vmem:[#allocation6 + $0x1400] sm:$0xff]  ;;  %v3104_v4 = vsel %vm1969_vm5, %v1979_v26, %v1980_v55  ;;  %v1878_v26 = vld [vmem:[#allocation6 + $0x1568] sm:$0xff] }
 0x190   : > { %2011 = vmatpush.msra.mxu1 %v1885_v53  ;;  %2033 = vmatpush.msra.mxu2 %v1913_v7  ;;  %v1926_v53 = vld [vmem:[#allocation6 + $0x16e8] sm:$0xff]  ;;  %v1960_v7 = vld [vmem:[#allocation6 + $0x17f8] sm:$0xff] }
 0x191   : > { %2052 = vmatpush.msra.mxu3 %v1947_v59  ;;  %1992 = vmatpush.msra.mxu0 %v1851_v60  ;;  %v1865_v59 = vld [vmem:[#allocation6 + $0x1500] sm:$0xff]  ;;  %v3107_v60 = vsel %vm1969_vm5, %v1970_v31, %v1971_v63  ;;  %v1906_v55 = vld [vmem:[#allocation6 + $0x1648] sm:$0xff]  ;;  %v1904_v63 = vld [vmem:[#allocation6 + $0x1638] sm:$0xff] }
 0x192   : > { %2012 = vmatpush.msra.mxu1 %v1883_v10  ;;  %2034 = vmatpush.msra.mxu2 %v1911_v12  ;;  %v3110_v10 = vsel %vm1969_vm5, %v1973_v0, %v1974_v1  ;;  %v1864_v12 = vld [vmem:[#allocation6 + $0x14f8] sm:$0xff]  ;;  %v1938_v0 = vld [vmem:[#allocation6 + $0x1748] sm:$0xff] }
 0x193   : > { %2053 = vmatpush.msra.mxu3 %v1945_v13  ;;  %1993 = vmatpush.msra.mxu0 %v1849_v40  ;;  %v1896_v13 = vld [vmem:[#allocation6 + $0x15f8] sm:$0xff]  ;;  %v1842_v1 = vld [vmem:[#allocation6 + $0x1448] sm:$0xff] }
 0x194   : > { %2013 = vmatpush.msra.mxu1 %v1881_v18  ;;  %2035 = vmatpush.msra.mxu2 %v1909_v51  ;;  %v1924_v40 = vld [vmem:[#allocation6 + $0x16d8] sm:$0xff]  ;;  %v1958_v18 = vld [vmem:[#allocation6 + $0x17e8] sm:$0xff] }
 0x195   : > { %2054 = vmatpush.msra.mxu3 %v1943_v19  ;;  %1994 = vmatpush.msra.mxu0 %v1847_v20  ;;  %v1862_v51 = vld [vmem:[#allocation6 + $0x14e8] sm:$0xff] }
 0x196   : > { %2014 = vmatpush.msra.mxu1 %v1879_v21  ;;  %2036 = vmatpush.msra.mxu2 %v1907_v23  ;;  %v1894_v19 = vld [vmem:[#allocation6 + $0x15e8] sm:$0xff]  ;;  %v1956_v21 = vld [vmem:[#allocation6 + $0x17d8] sm:$0xff] }
 0x197   : > { %2055 = vmatpush.msra.mxu3 %v1941_v62  ;;  %1995 = vmatpush.msra.mxu0 %v1845_v58  ;;  %v1922_v20 = vld [vmem:[#allocation6 + $0x16c8] sm:$0xff]  ;;  %v1860_v23 = vld [vmem:[#allocation6 + $0x14d8] sm:$0xff] }
 0x198   : > { %2015 = vmatpush.msra.mxu1 %v1877_v24  ;;  %2037 = vmatpush.msra.mxu2 %v1905_v27  ;;  %v1892_v62 = vld [vmem:[#allocation6 + $0x15d8] sm:$0xff]  ;;  %v1954_v24 = vld [vmem:[#allocation6 + $0x17c8] sm:$0xff] }
 0x199   : > { %2056 = vmatpush.msra.mxu3 %v1939_v28  ;;  %1996 = vmatpush.msra.mxu0 %v1843_v29  ;;  %v1920_v58 = vld [vmem:[#allocation6 + $0x16b8] sm:$0xff]  ;;  %v1858_v27 = vld [vmem:[#allocation6 + $0x14c8] sm:$0xff] }
 0x19a   : > { %2016 = vmatpush.msra.mxu1 %v1875_v5  ;;  %2038 = vmatpush.msra.mxu2 %v1903_v32  ;;  %v1890_v28 = vld [vmem:[#allocation6 + $0x15c8] sm:$0xff]  ;;  %v1952_v5 = vld [vmem:[#allocation6 + $0x17b8] sm:$0xff] }
 0x19b   : > { %2057 = vmatpush.msra.mxu3 %v1937_v33  ;;  %1997 = vmatpush.msra.mxu0 %v1841_v34  ;;  %v1918_v29 = vld [vmem:[#allocation6 + $0x16a8] sm:$0xff]  ;;  %v1856_v32 = vld [vmem:[#allocation6 + $0x14b8] sm:$0xff]  ;;  %v3115_v39 = vpop.f32.mrf.mxu0 }
 0x19c   : > { %2017 = vmatpush.msra.mxu1 %v1873_v11  ;;  %2039 = vmatpush.msra.mxu2 %v1901_v36  ;;  %v1888_v33 = vld [vmem:[#allocation6 + $0x15b8] sm:$0xff]  ;;  %v1950_v11 = vld [vmem:[#allocation6 + $0x17a8] sm:$0xff]  ;;  %v3117_v17 = vpop.f32.mrf.mxu1 }
 0x19d   : > { %2058 = vmatpush.msra.mxu3 %v1935_v37  ;;  %1998 = vmatpush.msra.mxu0 %v1839_v38  ;;  %v1916_v34 = vld [vmem:[#allocation6 + $0x1698] sm:$0xff]  ;;  %v1914_v36 = vld [vmem:[#allocation6 + $0x1688] sm:$0xff] }
 0x19e   : > { %2018 = vmatpush.msra.mxu1 %v1871_v15  ;;  %2040 = vmatpush.msra.mxu2 %v1899_v16  ;;  %v1948_v37 = vld [vmem:[#allocation6 + $0x1798] sm:$0xff] }
 0x19f   : > { %2059 = vmatpush.msra.mxu3 %v1933_v41  ;;  %1999 = vmatpush.msra.mxu0 %v1837_v48  ;;  %v1852_v38 = vld [vmem:[#allocation6 + $0x1498] sm:$0xff]  ;;  %v1946_v41 = vld [vmem:[#allocation6 + $0x1788] sm:$0xff]  ;;  %v3121_v31 = vpop.f32.mrf.mxu3 }
 0x1a0   : > { %2019 = vmatpush.msra.mxu1 %v1869_v47  ;;  %2041 = vmatpush.msra.mxu2 %v1897_v8  ;;  %v1884_v15 = vld [vmem:[#allocation6 + $0x1598] sm:$0xff]  ;;  %v3119_v8 = vpop.f32.mrf.mxu2 }
 0x1a1   : > { %2060 = vmatpush.msra.mxu3 %v1931_v54  ;;  %2042 = vmatmul.f32.vlgmr.msra.gmra.mxu2 %v3100_v56  ;;  %v1912_v16 = vld [vmem:[#allocation6 + $0x1678] sm:$0xff]  ;;  %v1846_v54 = vld [vmem:[#allocation6 + $0x1468] sm:$0xff] }
 0x1a2   : > { %2000 = vmatpush.msra.mxu0 %v1835_v57  ;;  %2106 = vmatpush.msrb.mxu2 %v1928_v22  ;;  %v1848_v48 = vld [vmem:[#allocation6 + $0x1478] sm:$0xff] }
 0x1a3   : > { %2020 = vmatpush.msra.mxu1 %v1867_v30  ;;  %2061 = vmatpush.msra.mxu3 %v1929_v2  ;;  %v1880_v47 = vld [vmem:[#allocation6 + $0x1578] sm:$0xff]  ;;  %v1874_v2 = vld [vmem:[#allocation6 + $0x1548] sm:$0xff] }
 0x1a4   : > { %2001 = vmatpush.msra.mxu0 %v1833_v3  ;;  %2062 = vmatmul.f32.vlgmr.msra.gmra.mxu3 %v3104_v4  ;;  %v1940_v57 = vld [vmem:[#allocation6 + $0x1758] sm:$0xff]  ;;  %v1902_v3 = vld [vmem:[#allocation6 + $0x1628] sm:$0xff] }
 0x1a5   : > { %2107 = vmatpush.msrb.mxu2 %v1926_v53  ;;  %2126 = vmatpush.msrb.mxu3 %v1960_v7  ;;  %v1844_v22 = vld [vmem:[#allocation6 + $0x1458] sm:$0xff] }
 0x1a6   : > { %2021 = vmatpush.msra.mxu1 %v1865_v59  ;;  %2002 = vmatmul.f32.vlgmr.msra.gmra.mxu0 %v3107_v60  ;;  %v1876_v30 = vld [vmem:[#allocation6 + $0x1558] sm:$0xff] }
 0x1a7   : > { %2022 = vmatmul.f32.vlgmr.msra.gmra.mxu1 %v3110_v10  ;;  %2066 = vmatpush.msrb.mxu0 %v1864_v12  ;;  %v1936_v53 = vld [vmem:[#allocation6 + $0x1738] sm:$0xff] }
 0x1a8   : > { %2086 = vmatpush.msrb.mxu1 %v1896_v13  ;;  %2108 = vmatpush.msrb.mxu2 %v1924_v40  ;;  %v1840_v7 = vld [vmem:[#allocation6 + $0x1438] sm:$0xff]  ;;  %v1934_v13 = vld [vmem:[#allocation6 + $0x1728] sm:$0xff] }
 0x1a9   : > { %2127 = vmatpush.msrb.mxu3 %v1958_v18  ;;  %2067 = vmatpush.msrb.mxu0 %v1862_v51  ;;  %v1872_v59 = vld [vmem:[#allocation6 + $0x1538] sm:$0xff]  ;;  %v1838_v51 = vld [vmem:[#allocation6 + $0x1428] sm:$0xff] }
 0x1aa   : > { %2087 = vmatpush.msrb.mxu1 %v1894_v19  ;;  %2109 = vmatpush.msrb.mxu2 %v1922_v20  ;;  %v1900_v12 = vld [vmem:[#allocation6 + $0x1618] sm:$0xff]  ;;  %v1870_v19 = vld [vmem:[#allocation6 + $0x1528] sm:$0xff] }
 0x1ab   : > { %2128 = vmatpush.msrb.mxu3 %v1956_v21  ;;  %2068 = vmatpush.msrb.mxu0 %v1860_v23  ;;  %v1898_v23 = vld [vmem:[#allocation6 + $0x1608] sm:$0xff] }
 0x1ac   : > { %2088 = vmatpush.msrb.mxu1 %v1892_v62  ;;  %2110 = vmatpush.msrb.mxu2 %v1920_v58  ;;  %v1932_v62 = vld [vmem:[#allocation6 + $0x1718] sm:$0xff] }
 0x1ad   : > { %2129 = vmatpush.msrb.mxu3 %v1954_v24  ;;  %2069 = vmatpush.msrb.mxu0 %v1858_v27  ;;  %v1836_v58 = vld [vmem:[#allocation6 + $0x1418] sm:$0xff]  ;;  %v2251_v27 = vld [vmem:[#allocation6 + $0x1af0] sm:$0xff] }
 0x1ae   : > { %2089 = vmatpush.msrb.mxu1 %v1890_v28  ;;  %2111 = vmatpush.msrb.mxu2 %v1918_v29  ;;  %v1868_v28 = vld [vmem:[#allocation6 + $0x1518] sm:$0xff] }
 0x1af   : > { %2130 = vmatpush.msrb.mxu3 %v1952_v5  ;;  %2070 = vmatpush.msrb.mxu0 %v1856_v32  ;;  %v1930_v5 = vld [vmem:[#allocation6 + $0x1708] sm:$0xff] }
 0x1b0   : > { %2090 = vmatpush.msrb.mxu1 %v1888_v33  ;;  %2112 = vmatpush.msrb.mxu2 %v1916_v34  ;;  %v1834_v32 = vld [vmem:[#allocation6 + $0x1408] sm:$0xff]  ;;  %v2249_v34 = vld [vmem:[#allocation6 + $0x1ae0] sm:$0xff] }
 0x1b1   : > { %2131 = vmatpush.msrb.mxu3 %v1950_v11  ;;  %2071 = vmatpush.msrb.mxu0 %v1854_v25  ;;  %v2283_v11 = vld [vmem:[#allocation6 + $0x1bf0] sm:$0xff]  ;;  %v1866_v25 = vld [vmem:[#allocation6 + $0x1508] sm:$0xff] }
 0x1b2   : > { %2091 = vmatpush.msrb.mxu1 %v1886_v35  ;;  %2113 = vmatpush.msrb.mxu2 %v1914_v36  ;;  %v2187_v36 = vld [vmem:[#allocation6 + $0x18f0] sm:$0xff] }
 0x1b3   : > { %2132 = vmatpush.msrb.mxu3 %v1948_v37  ;;  %2072 = vmatpush.msrb.mxu0 %v1852_v38  ;;  %v2219_v37 = vld [vmem:[#allocation6 + $0x19f0] sm:$0xff] }
 0x1b4   : > { %2092 = vmatpush.msrb.mxu1 %v1884_v15  ;;  %2114 = vmatpush.msrb.mxu2 %v1912_v16  ;;  %v2247_v38 = vld [vmem:[#allocation6 + $0x1ad0] sm:$0xff]  ;;  %v2185_v15 = vld [vmem:[#allocation6 + $0x18e0] sm:$0xff] }
 0x1b5   : > { %2133 = vmatpush.msrb.mxu3 %v1946_v41  ;;  %2073 = vmatpush.msrb.mxu0 %v1850_v42  ;;  %v2217_v16 = vld [vmem:[#allocation6 + $0x19e0] sm:$0xff]  ;;  %v2279_v41 = vld [vmem:[#allocation6 + $0x1bd0] sm:$0xff] }
 0x1b6   : > { %2093 = vmatpush.msrb.mxu1 %v1882_v43  ;;  %2115 = vmatpush.msrb.mxu2 %v1910_v44  ;;  %v2215_v42 = vld [vmem:[#allocation6 + $0x19d0] sm:$0xff]  ;;  %v2277_v44 = vld [vmem:[#allocation6 + $0x1bc0] sm:$0xff] }
 0x1b7   : > { %2134 = vmatpush.msrb.mxu3 %v1944_v45  ;;  %2074 = vmatpush.msrb.mxu0 %v1848_v48  ;;  %v2243_v43 = vld [vmem:[#allocation6 + $0x1ab0] sm:$0xff]  ;;  %v2181_v45 = vld [vmem:[#allocation6 + $0x18c0] sm:$0xff] }
 0x1b8   : > { %2094 = vmatpush.msrb.mxu1 %v1880_v47  ;;  %2116 = vmatpush.msrb.mxu2 %v1908_v49  ;;  %v2275_v48 = vld [vmem:[#allocation6 + $0x1bb0] sm:$0xff] }
 0x1b9   : > { %2135 = vmatpush.msrb.mxu3 %v1942_v50  ;;  %2075 = vmatpush.msrb.mxu0 %v1846_v54  ;;  %v2179_v47 = vld [vmem:[#allocation6 + $0x18b0] sm:$0xff]  ;;  %v2273_v54 = vld [vmem:[#allocation6 + $0x1ba0] sm:$0xff] }
 0x1ba   : > { %2095 = vmatpush.msrb.mxu1 %v1878_v26  ;;  %2117 = vmatpush.msrb.mxu2 %v1906_v55  ;;  %v2211_v49 = vld [vmem:[#allocation6 + $0x19b0] sm:$0xff]  ;;  %v2177_v26 = vld [vmem:[#allocation6 + $0x18a0] sm:$0xff] }
 0x1bb   : > { %2136 = vmatpush.msrb.mxu3 %v1940_v57  ;;  %2076 = vmatpush.msrb.mxu0 %v1844_v22  ;;  %v2239_v50 = vld [vmem:[#allocation6 + $0x1a90] sm:$0xff]  ;;  %v2209_v55 = vld [vmem:[#allocation6 + $0x19a0] sm:$0xff] }
 0x1bc   : > { %2096 = vmatpush.msrb.mxu1 %v1876_v30  ;;  %2118 = vmatpush.msrb.mxu2 %v1904_v63  ;;  %v2237_v57 = vld [vmem:[#allocation6 + $0x1a80] sm:$0xff]  ;;  %v2271_v22 = vld [vmem:[#allocation6 + $0x1b90] sm:$0xff] }
 0x1bd   : > { %2137 = vmatpush.msrb.mxu3 %v1938_v0  ;;  %2077 = vmatpush.msrb.mxu0 %v1842_v1  ;;  %v1435_v40 = vpop.f32.mrf.mxu0  ;;  %v2175_v30 = vld [vmem:[#allocation6 + $0x1890] sm:$0xff]  ;;  %v2269_v1 = vld [vmem:[#allocation6 + $0x1b80] sm:$0xff] }
 0x1be   : > { %2097 = vmatpush.msrb.mxu1 %v1874_v2  ;;  %v1455_v18 = vpop.f32.mrf.mxu1  ;;  %2119 = vmatpush.msrb.mxu2 %v1902_v3  ;;  %v1475_v21 = vpop.f32.mrf.mxu2  ;;  %v2207_v63 = vld [vmem:[#allocation6 + $0x1990] sm:$0xff]  ;;  %v2173_v2 = vld [vmem:[#allocation6 + $0x1880] sm:$0xff] }
 0x1bf   : > { %2138 = vmatpush.msrb.mxu3 %v1936_v53  ;;  %v1456_v20 = vadd.f32 %v1455_v18, %v1435_v40  ;;  %2078 = vmatpush.msrb.mxu0 %v1840_v7  ;;  %v2235_v0 = vld [vmem:[#allocation6 + $0x1a70] sm:$0xff]  ;;  %v2205_v3 = vld [vmem:[#allocation6 + $0x1980] sm:$0xff] }
 0x1c0   : > { %2098 = vmatpush.msrb.mxu1 %v1872_v59  ;;  %2120 = vmatpush.msrb.mxu2 %v1900_v12  ;;  %v2233_v53 = vld [vmem:[#allocation6 + $0x1a60] sm:$0xff]  ;;  %v2267_v7 = vld [vmem:[#allocation6 + $0x1b70] sm:$0xff] }
 0x1c1   : > { %2139 = vmatpush.msrb.mxu3 %v1934_v13  ;;  %v1476_v24 = vadd.f32 %v1475_v21, %v1456_v20  ;;  %2079 = vmatpush.msrb.mxu0 %v1838_v51  ;;  %v1495_v29 = vpop.f32.mrf.mxu3  ;;  %v2171_v59 = vld [vmem:[#allocation6 + $0x1870] sm:$0xff]  ;;  %v2265_v40 = vld [vmem:[#allocation6 + $0x1b60] sm:$0xff] }
 0x1c2   : > { %2099 = vmatpush.msrb.mxu1 %v1870_v19  ;;  %2121 = vmatpush.msrb.mxu2 %v1898_v23  ;;  %v2203_v12 = vld [vmem:[#allocation6 + $0x1970] sm:$0xff]  ;;  %v2169_v18 = vld [vmem:[#allocation6 + $0x1860] sm:$0xff] }
 0x1c3   : > { %2140 = vmatpush.msrb.mxu3 %v1932_v62  ;;  %v1496_v33 = vadd.f32 %v1495_v29, %v1476_v24  ;;  %2122 = vmatmul.f32.vlgmr.msrb.gmra.mxu2 %v3100_v56  ;;  %v2281_v56 = vld [vmem:[#allocation6 + $0x1be0] sm:$0xff]  ;;  %v2231_v13 = vld [vmem:[#allocation6 + $0x1a50] sm:$0xff]  ;;  %v2154_v29 = vld [vmem:[#allocation2 + $0x28] sm:$0x3f] }
 0x1c4   : > { %2080 = vmatpush.msrb.mxu0 %v1836_v58  ;;  %2350 = vmatpush.msra.mxu2 %v2251_v27  ;;  %v2201_v51 = vld [vmem:[#allocation6 + $0x1960] sm:$0xff]  ;;  %v2263_v20 = vld [vmem:[#allocation6 + $0x1b50] sm:$0xff] }
 0x1c5   : > { %2100 = vmatpush.msrb.mxu1 %v1868_v28  ;;  %v3125_v35 = vadd.f32 %v1496_v33, %v3094_v46  ;;  %2141 = vmatpush.msrb.mxu3 %v1930_v5  ;;  %v2245_v46 = vld [vmem:[#allocation6 + $0x1ac0] sm:$0xff]  ;;  %v2167_v21 = vld [vmem:[#allocation6 + $0x1850] sm:$0xff]  ;;  %v2150_v28 = vld [vmem:[#allocation2 + $0x18] sm:$0xc0] }
 0x1c6   : > { %2081 = vmatpush.msrb.mxu0 %v1834_v32  ;;  %2142 = vmatmul.f32.vlgmr.msrb.gmra.mxu3 %v3104_v4  ;;  %v2183_v4 = vld [vmem:[#allocation6 + $0x18d0] sm:$0xff]  ;;  %v2229_v19 = vld [vmem:[#allocation6 + $0x1a40] sm:$0xff] }
 0x1c7   : > { %2351 = vmatpush.msra.mxu2 %v2249_v34  ;;  %2370 = vmatpush.msra.mxu3 %v2283_v11  ;;  %v2199_v23 = vld [vmem:[#allocation6 + $0x1950] sm:$0xff]  ;;  %v2261_v58 = vld [vmem:[#allocation6 + $0x1b40] sm:$0xff] }
 0x1c8   : > { %2101 = vmatpush.msrb.mxu1 %v1866_v25  ;;  %2082 = vmatmul.f32.vlgmr.msrb.gmra.mxu0 %v3107_v60  ;;  %v2213_v60 = vld [vmem:[#allocation6 + $0x19c0] sm:$0xff]  ;;  %v2227_v62 = vld [vmem:[#allocation6 + $0x1a30] sm:$0xff] }
 0x1c9   : > { %2102 = vmatmul.f32.vlgmr.msrb.gmra.mxu1 %v3110_v10  ;;  %2310 = vmatpush.msra.mxu0 %v2187_v36  ;;  %v2241_v10 = vld [vmem:[#allocation6 + $0x1aa0] sm:$0xff]  ;;  %v2259_v32 = vld [vmem:[#allocation6 + $0x1b30] sm:$0xff]  ;;  %v2300_v36 = vrot.slane %v2150_v28, 6  ;;  %v2180_v28 = vld [vmem:[#allocation6 + $0x18b8] sm:$0xff] }
 0x1ca   : > { %2330 = vmatpush.msra.mxu1 %v2219_v37  ;;  %2352 = vmatpush.msra.mxu2 %v2247_v38  ;;  %v2165_v24 = vld [vmem:[#allocation6 + $0x1840] sm:$0xff]  ;;  %v2163_v33 = vld [vmem:[#allocation6 + $0x1830] sm:$0xff]  ;;  %v2301_v37 = vrot.slane %v2154_v29, 6  ;;  %v2212_v29 = vld [vmem:[#allocation6 + $0x19b8] sm:$0xff] }
 0x1cb   : > { %2371 = vmatpush.msra.mxu3 %v2281_v56  ;;  %2311 = vmatpush.msra.mxu0 %v2185_v15  ;;  %v2197_v27 = vld [vmem:[#allocation6 + $0x1940] sm:$0xff]  ;;  %v2195_v34 = vld [vmem:[#allocation6 + $0x1930] sm:$0xff]  ;;  %v2155_v56 = vld [vmem:[#allocation2 + $0x38] sm:$0x3f] }
 0x1cc   : > { %2331 = vmatpush.msra.mxu1 %v2217_v16  ;;  %2353 = vmatpush.msra.mxu2 %v2245_v46  ;;  %v2225_v5 = vld [vmem:[#allocation6 + $0x1a20] sm:$0xff]  ;;  %v2223_v11 = vld [vmem:[#allocation6 + $0x1a10] sm:$0xff] }
 0x1cd   : > { %2372 = vmatpush.msra.mxu3 %v2279_v41  ;;  %2312 = vmatpush.msra.mxu0 %v2183_v4  ;;  %v2257_v25 = vld [vmem:[#allocation6 + $0x1b20] sm:$0xff]  ;;  %v2151_v38 = vld [vmem:[#allocation2 + $0x10] sm:$0xc0]  ;;  %v2152_v41 = vld [vmem:[#allocation2 + $0x8] sm:$0x3f] }
 0x1ce   : > { %2332 = vmatpush.msra.mxu1 %v2215_v42  ;;  %2354 = vmatpush.msra.mxu2 %v2243_v43  ;;  %v2161_v15 = vld [vmem:[#allocation6 + $0x1820] sm:$0xff]  ;;  %v2148_v46 = vld [vmem:[#allocation2 + $0x30] sm:$0xc0] }
 0x1cf   : > { %2373 = vmatpush.msra.mxu3 %v2277_v44  ;;  %2313 = vmatpush.msra.mxu0 %v2181_v45  ;;  %v2193_v16 = vld [vmem:[#allocation6 + $0x1920] sm:$0xff]  ;;  %v2255_v44 = vld [vmem:[#allocation6 + $0x1b10] sm:$0xff]  ;;  %v2303_v45 = vrot.slane %v2151_v38, 6  ;;  %v2236_v38 = vld [vmem:[#allocation6 + $0x1a78] sm:$0xff] }
 0x1d0   : > { %2333 = vmatpush.msra.mxu1 %v2213_v60  ;;  %2355 = vmatpush.msra.mxu2 %v2241_v10  ;;  %v2149_v4 = vld [vmem:[#allocation2] sm:$0xc0]  ;;  %v2153_v42 = vld [vmem:[#allocation2 + $0x20] sm:$0x3f]  ;;  %v2304_v60 = vrot.slane %v2155_v56, 6  ;;  %v3131_v10 = vsel %vm2293_vm6, %v2300_v36, %v2301_v37  ;;  %v2176_v36 = vld [vmem:[#allocation6 + $0x1898] sm:$0xff] }
 0x1d1   : > { %2374 = vmatpush.msra.mxu3 %v2275_v48  ;;  %2314 = vmatpush.msra.mxu0 %v2179_v47  ;;  %v2221_v43 = vld [vmem:[#allocation6 + $0x1a00] sm:$0xff]  ;;  %v2159_v48 = vld [vmem:[#allocation6 + $0x1810] sm:$0xff]  ;;  %v2252_v47 = vld [vmem:[#allocation6 + $0x1af8] sm:$0xff] }
 0x1d2   : > { %2334 = vmatpush.msra.mxu1 %v2211_v49  ;;  %2356 = vmatpush.msra.mxu2 %v2239_v50  ;;  %v2191_v49 = vld [vmem:[#allocation6 + $0x1910] sm:$0xff]  ;;  %v2294_v50 = vrot.slane %v2148_v46, 6  ;;  %v2208_v37 = vld [vmem:[#allocation6 + $0x1998] sm:$0xff]  ;;  %v2270_v56 = vld [vmem:[#allocation6 + $0x1b88] sm:$0xff] }
 0x1d3   : > { %2375 = vmatpush.msra.mxu3 %v2273_v54  ;;  %2315 = vmatpush.msra.mxu0 %v2177_v26  ;;  %v2295_v54 = vrot.slane %v2152_v41, 6  ;;  %v2297_v26 = vrot.slane %v2149_v4, 6  ;;  %v2234_v46 = vld [vmem:[#allocation6 + $0x1a68] sm:$0xff]  ;;  %v2268_v41 = vld [vmem:[#allocation6 + $0x1b78] sm:$0xff] }
 0x1d4   : > { %2335 = vmatpush.msra.mxu1 %v2209_v55  ;;  %2357 = vmatpush.msra.mxu2 %v2237_v57  ;;  %v2298_v55 = vrot.slane %v2153_v42, 6  ;;  %v2253_v57 = vld [vmem:[#allocation6 + $0x1b00] sm:$0xff]  ;;  %v2172_v4 = vld [vmem:[#allocation6 + $0x1878] sm:$0xff] }
 0x1d5   : > { %2376 = vmatpush.msra.mxu3 %v2271_v22  ;;  %2316 = vmatpush.msra.mxu0 %v2175_v30  ;;  %v2157_v22 = vld [vmem:[#allocation6 + $0x1800] sm:$0xff]  ;;  %v3135_v30 = vsel %vm2293_vm6, %v2303_v45, %v2304_v60  ;;  %v2204_v42 = vld [vmem:[#allocation6 + $0x1978] sm:$0xff]  ;;  %v2170_v45 = vld [vmem:[#allocation6 + $0x1868] sm:$0xff] }
 0x1d6   : > { %2336 = vmatpush.msra.mxu1 %v2207_v63  ;;  %2358 = vmatpush.msra.mxu2 %v2235_v0  ;;  %v2250_v63 = vld [vmem:[#allocation6 + $0x1ae8] sm:$0xff]  ;;  %v2284_v0 = vld [vmem:[#allocation6 + $0x1bf8] sm:$0xff] }
 0x1d7   : > { %2377 = vmatpush.msra.mxu3 %v2269_v1  ;;  %2317 = vmatpush.msra.mxu0 %v2173_v2  ;;  %v2189_v1 = vld [vmem:[#allocation6 + $0x1900] sm:$0xff]  ;;  %v3138_v2 = vsel %vm2293_vm6, %v2294_v50, %v2295_v54  ;;  %v2202_v60 = vld [vmem:[#allocation6 + $0x1968] sm:$0xff]  ;;  %v2200_v50 = vld [vmem:[#allocation6 + $0x1958] sm:$0xff] }
 0x1d8   : > { %2337 = vmatpush.msra.mxu1 %v2205_v3  ;;  %2359 = vmatpush.msra.mxu2 %v2233_v53  ;;  %v3141_v3 = vsel %vm2293_vm6, %v2297_v26, %v2298_v55  ;;  %v2188_v53 = vld [vmem:[#allocation6 + $0x18f8] sm:$0xff]  ;;  %v2262_v26 = vld [vmem:[#allocation6 + $0x1b48] sm:$0xff] }
 0x1d9   : > { %2378 = vmatpush.msra.mxu3 %v2267_v7  ;;  %2318 = vmatpush.msra.mxu0 %v2171_v59  ;;  %v2220_v7 = vld [vmem:[#allocation6 + $0x19f8] sm:$0xff]  ;;  %v2166_v55 = vld [vmem:[#allocation6 + $0x1848] sm:$0xff] }
 0x1da   : > { %2338 = vmatpush.msra.mxu1 %v2203_v12  ;;  %2360 = vmatpush.msra.mxu2 %v2231_v13  ;;  %v2248_v59 = vld [vmem:[#allocation6 + $0x1ad8] sm:$0xff]  ;;  %v2282_v12 = vld [vmem:[#allocation6 + $0x1be8] sm:$0xff] }
 0x1db   : > { %2379 = vmatpush.msra.mxu3 %v2265_v40  ;;  %2319 = vmatpush.msra.mxu0 %v2169_v18  ;;  %v2186_v13 = vld [vmem:[#allocation6 + $0x18e8] sm:$0xff]  ;;  %v2228_v54 = vld [vmem:[#allocation6 + $0x1a38] sm:$0xff] }
 0x1dc   : > { %2339 = vmatpush.msra.mxu1 %v2201_v51  ;;  %2361 = vmatpush.msra.mxu2 %v2229_v19  ;;  %v2218_v40 = vld [vmem:[#allocation6 + $0x19e8] sm:$0xff]  ;;  %v2280_v51 = vld [vmem:[#allocation6 + $0x1bd8] sm:$0xff] }
 0x1dd   : > { %2380 = vmatpush.msra.mxu3 %v2263_v20  ;;  %2320 = vmatpush.msra.mxu0 %v2167_v21  ;;  %v2246_v18 = vld [vmem:[#allocation6 + $0x1ac8] sm:$0xff]  ;;  %v2184_v19 = vld [vmem:[#allocation6 + $0x18d8] sm:$0xff] }
 0x1de   : > { %2340 = vmatpush.msra.mxu1 %v2199_v23  ;;  %2362 = vmatpush.msra.mxu2 %v2227_v62  ;;  %v2216_v20 = vld [vmem:[#allocation6 + $0x19d8] sm:$0xff]  ;;  %v2278_v23 = vld [vmem:[#allocation6 + $0x1bc8] sm:$0xff] }
 0x1df   : > { %2381 = vmatpush.msra.mxu3 %v2261_v58  ;;  %2321 = vmatpush.msra.mxu0 %v2165_v24  ;;  %v2244_v21 = vld [vmem:[#allocation6 + $0x1ab8] sm:$0xff]  ;;  %v2182_v62 = vld [vmem:[#allocation6 + $0x18c8] sm:$0xff] }
 0x1e0   : > { %2341 = vmatpush.msra.mxu1 %v2197_v27  ;;  %2363 = vmatpush.msra.mxu2 %v2225_v5  ;;  %v2214_v58 = vld [vmem:[#allocation6 + $0x19c8] sm:$0xff]  ;;  %v2276_v27 = vld [vmem:[#allocation6 + $0x1bb8] sm:$0xff] }
 0x1e1   : > { %2382 = vmatpush.msra.mxu3 %v2259_v32  ;;  %2322 = vmatpush.msra.mxu0 %v2163_v33  ;;  %v2242_v24 = vld [vmem:[#allocation6 + $0x1aa8] sm:$0xff]  ;;  %v2240_v5 = vld [vmem:[#allocation6 + $0x1a98] sm:$0xff] }
 0x1e2   : > { %2342 = vmatpush.msra.mxu1 %v2195_v34  ;;  %2364 = vmatpush.msra.mxu2 %v2223_v11  ;;  %v2274_v32 = vld [vmem:[#allocation6 + $0x1ba8] sm:$0xff] }
 0x1e3   : > { %2383 = vmatpush.msra.mxu3 %v2257_v25  ;;  %2323 = vmatpush.msra.mxu0 %v2161_v15  ;;  %v2178_v33 = vld [vmem:[#allocation6 + $0x18a8] sm:$0xff]  ;;  %v2272_v25 = vld [vmem:[#allocation6 + $0x1b98] sm:$0xff] }
 0x1e4   : > { %2343 = vmatpush.msra.mxu1 %v2193_v16  ;;  %2365 = vmatpush.msra.mxu2 %v2221_v43  ;;  %v2210_v34 = vld [vmem:[#allocation6 + $0x19a8] sm:$0xff]  ;;  %v2232_v43 = vld [vmem:[#allocation6 + $0x1a58] sm:$0xff] }
 0x1e5   : > { %2384 = vmatpush.msra.mxu3 %v2255_v44  ;;  %2366 = vmatmul.f32.vlgmr.msra.gmra.mxu2 %v3131_v10  ;;  %v2238_v11 = vld [vmem:[#allocation6 + $0x1a88] sm:$0xff] }
 0x1e6   : > { %2324 = vmatpush.msra.mxu0 %v2159_v48  ;;  %2430 = vmatpush.msrb.mxu2 %v2252_v47  ;;  %v2174_v15 = vld [vmem:[#allocation6 + $0x1888] sm:$0xff]  ;;  %v2264_v47 = vld [vmem:[#allocation6 + $0x1b58] sm:$0xff] }
 0x1e7   : > { %2344 = vmatpush.msra.mxu1 %v2191_v49  ;;  %2385 = vmatpush.msra.mxu3 %v2253_v57  ;;  %v2206_v16 = vld [vmem:[#allocation6 + $0x1988] sm:$0xff]  ;;  %v2168_v49 = vld [vmem:[#allocation6 + $0x1858] sm:$0xff] }
 0x1e8   : > { %2325 = vmatpush.msra.mxu0 %v2157_v22  ;;  %2386 = vmatmul.f32.vlgmr.msra.gmra.mxu3 %v3135_v30  ;;  %v2266_v44 = vld [vmem:[#allocation6 + $0x1b68] sm:$0xff] }
 0x1e9   : > { %2431 = vmatpush.msrb.mxu2 %v2250_v63  ;;  %2450 = vmatpush.msrb.mxu3 %v2284_v0  ;;  %v2230_v48 = vld [vmem:[#allocation6 + $0x1a48] sm:$0xff]  ;;  %v2260_v63 = vld [vmem:[#allocation6 + $0x1b38] sm:$0xff] }
 0x1ea   : > { %2345 = vmatpush.msra.mxu1 %v2189_v1  ;;  %2326 = vmatmul.f32.vlgmr.msra.gmra.mxu0 %v3138_v2  ;;  %v2198_v57 = vld [vmem:[#allocation6 + $0x1948] sm:$0xff]  ;;  %v2164_v0 = vld [vmem:[#allocation6 + $0x1838] sm:$0xff] }
 0x1eb   : > { %2346 = vmatmul.f32.vlgmr.msra.gmra.mxu1 %v3141_v3  ;;  %2390 = vmatpush.msrb.mxu0 %v2188_v53  ;;  %v2226_v22 = vld [vmem:[#allocation6 + $0x1a28] sm:$0xff]  ;;  %v2196_v1 = vld [vmem:[#allocation6 + $0x1938] sm:$0xff] }
 0x1ec   : > { %2410 = vmatpush.msrb.mxu1 %v2220_v7  ;;  %2432 = vmatpush.msrb.mxu2 %v2248_v59  ;;  %v2224_v53 = vld [vmem:[#allocation6 + $0x1a18] sm:$0xff]  ;;  %v2258_v7 = vld [vmem:[#allocation6 + $0x1b28] sm:$0xff] }
 0x1ed   : > { %2451 = vmatpush.msrb.mxu3 %v2282_v12  ;;  %2391 = vmatpush.msrb.mxu0 %v2186_v13  ;;  %v2162_v59 = vld [vmem:[#allocation6 + $0x1828] sm:$0xff] }
 0x1ee   : > { %2411 = vmatpush.msrb.mxu1 %v2218_v40  ;;  %2433 = vmatpush.msrb.mxu2 %v2246_v18  ;;  %v2194_v12 = vld [vmem:[#allocation6 + $0x1928] sm:$0xff]  ;;  %v2256_v40 = vld [vmem:[#allocation6 + $0x1b18] sm:$0xff] }
 0x1ef   : > { %2452 = vmatpush.msrb.mxu3 %v2280_v51  ;;  %2392 = vmatpush.msrb.mxu0 %v2184_v19  ;;  %v2222_v13 = vld [vmem:[#allocation6 + $0x1a08] sm:$0xff]  ;;  %v2160_v18 = vld [vmem:[#allocation6 + $0x1818] sm:$0xff] }
 0x1f0   : > { %2412 = vmatpush.msrb.mxu1 %v2216_v20  ;;  %2434 = vmatpush.msrb.mxu2 %v2244_v21  ;;  %v2192_v51 = vld [vmem:[#allocation6 + $0x1918] sm:$0xff]  ;;  %v2254_v19 = vld [vmem:[#allocation6 + $0x1b08] sm:$0xff] }
 0x1f1   : > { %2453 = vmatpush.msrb.mxu3 %v2278_v23  ;;  %2393 = vmatpush.msrb.mxu0 %v2182_v62  ;;  %v2158_v20 = vld [vmem:[#allocation6 + $0x1808] sm:$0xff]  ;;  %v1679_v23 = vpop.f32.mrf.mxu0  ;;  %v1699_v62 = vpop.f32.mrf.mxu1 }
 0x1f2   : > { %2413 = vmatpush.msrb.mxu1 %v2214_v58  ;;  %2435 = vmatpush.msrb.mxu2 %v2242_v24  ;;  %v2190_v21 = vld [vmem:[#allocation6 + $0x1908] sm:$0xff]  ;;  %v1719_v58 = vpop.f32.mrf.mxu2  ;;  %v1739_v24 = vpop.f32.mrf.mxu3 }
 0x1f3   : > { %2454 = vmatpush.msrb.mxu3 %v2276_v27  ;;  %2394 = vmatpush.msrb.mxu0 %v2180_v28 }
 0x1f4   : > { %2414 = vmatpush.msrb.mxu1 %v2212_v29  ;;  %2436 = vmatpush.msrb.mxu2 %v2240_v5 }
 0x1f5   : > { %2455 = vmatpush.msrb.mxu3 %v2274_v32  ;;  %2395 = vmatpush.msrb.mxu0 %v2178_v33 }
 0x1f6   : > { %2415 = vmatpush.msrb.mxu1 %v2210_v34  ;;  %2437 = vmatpush.msrb.mxu2 %v2238_v11  ;;  %v1700_v11 = vadd.f32 %v1699_v62, %v1679_v23 }
 0x1f7   : > { %2456 = vmatpush.msrb.mxu3 %v2272_v25  ;;  %2396 = vmatpush.msrb.mxu0 %v2176_v36 }
 0x1f8   : > { %2416 = vmatpush.msrb.mxu1 %v2208_v37  ;;  %2438 = vmatpush.msrb.mxu2 %v2236_v38 }
 0x1f9   : > { %2457 = vmatpush.msrb.mxu3 %v2270_v56  ;;  %2397 = vmatpush.msrb.mxu0 %v2174_v15 }
 0x1fa   : > { %2417 = vmatpush.msrb.mxu1 %v2206_v16  ;;  %2439 = vmatpush.msrb.mxu2 %v2234_v46  ;;  %v1720_v16 = vadd.f32 %v1719_v58, %v1700_v11 }
 0x1fb   : > { %2458 = vmatpush.msrb.mxu3 %v2268_v41  ;;  %2398 = vmatpush.msrb.mxu0 %v2172_v4 }
 0x1fc   : > { %2418 = vmatpush.msrb.mxu1 %v2204_v42  ;;  %2440 = vmatpush.msrb.mxu2 %v2232_v43  ;;  %v1740_v4 = vadd.f32 %v1739_v24, %v1720_v16 }
 0x1fd   : > { %2459 = vmatpush.msrb.mxu3 %v2266_v44  ;;  %2399 = vmatpush.msrb.mxu0 %v2170_v45 }
 0x1fe   : > { %2419 = vmatpush.msrb.mxu1 %v2202_v60  ;;  %2441 = vmatpush.msrb.mxu2 %v2230_v48 }
 0x1ff   : > { %2460 = vmatpush.msrb.mxu3 %v2264_v47  ;;  %2400 = vmatpush.msrb.mxu0 %v2168_v49 }
 0x200   : > { %2420 = vmatpush.msrb.mxu1 %v2200_v50  ;;  %2442 = vmatpush.msrb.mxu2 %v2228_v54 }
 0x201   : > { %2461 = vmatpush.msrb.mxu3 %v2262_v26  ;;  %2401 = vmatpush.msrb.mxu0 %v2166_v55  ;;  %v1759_v27 = vpop.f32.mrf.mxu0 }
 0x202   : > { %2421 = vmatpush.msrb.mxu1 %v2198_v57  ;;  %2443 = vmatpush.msrb.mxu2 %v2226_v22  ;;  %v1779_v28 = vpop.f32.mrf.mxu1  ;;  %v1799_v29 = vpop.f32.mrf.mxu2 }
 0x203   : > { %2462 = vmatpush.msrb.mxu3 %v2260_v63  ;;  %2402 = vmatpush.msrb.mxu0 %v2164_v0 }
 0x204   : > { %2422 = vmatpush.msrb.mxu1 %v2196_v1  ;;  %2444 = vmatpush.msrb.mxu2 %v2224_v53 }
 0x205   : > { %2463 = vmatpush.msrb.mxu3 %v2258_v7  ;;  %2403 = vmatpush.msrb.mxu0 %v2162_v59 }
 0x206   : > { %2423 = vmatpush.msrb.mxu1 %v2194_v12  ;;  %2445 = vmatpush.msrb.mxu2 %v2222_v13 }
 0x207   : > { %2464 = vmatpush.msrb.mxu3 %v2256_v40  ;;  %2446 = vmatmul.f32.vlgmr.msrb.gmra.mxu2 %v3131_v10  ;;  %v1819_v10 = vpop.f32.mrf.mxu3 }
 0x208   : > { %2404 = vmatpush.msrb.mxu0 %v2160_v18  ;;  %2424 = vmatpush.msrb.mxu1 %v2192_v51 }
 0x209   : > { %2465 = vmatpush.msrb.mxu3 %v2254_v19 }
 0x20a   : > { %2466 = vmatmul.f32.vlgmr.msrb.gmra.mxu3 %v3135_v30  ;;  %2405 = vmatpush.msrb.mxu0 %v2158_v20  ;;  %v1052_v30 = vadd.f32 %v3086_v52, %v3084_v6 }
 0x20b   : > { %2425 = vmatpush.msrb.mxu1 %v2190_v21  ;;  %2406 = vmatmul.f32.vlgmr.msrb.gmra.mxu0 %v3138_v2  ;;  %v1376_v2 = vadd.f32 %v3117_v17, %v3115_v39 }
 0x20c   : > { %2426 = vmatmul.f32.vlgmr.msrb.gmra.mxu1 %v3141_v3  ;;  %v1072_v3 = vadd.f32 %v3088_v9, %v1052_v30 }
 0x20d   : > { %v1396_v37 = vadd.f32 %v3119_v8, %v1376_v2 }
 0x20e   : > { %v1092_v15 = vadd.f32 %v3090_v14, %v1072_v3 }
 0x20f   : > { %v1416_v41 = vadd.f32 %v3121_v31, %v1396_v37 }
 0x210   : > { %v1174_v52 = vadd.f32 %v1092_v15, %v3050_v61  ;;  %v1780_v61 = vadd.f32 %v1779_v28, %v1759_v27 }
 0x212   : > { %v1498_v9 = vadd.f32 %v1416_v41, %v1174_v52  ;;  %v1800_v57 = vadd.f32 %v1799_v29, %v1780_v61 }
 0x214   : > { %v1822_v45 = vadd.f32 %v1740_v4, %v1498_v9  ;;  %v1820_v7 = vadd.f32 %v1819_v10, %v1800_v57 }
 0x216   : > { %v1823_v21 = vadd.f32 %v1820_v7, %v3125_v35 }
 0x223   : > { %v2003_v5 = vpop.f32.mrf.mxu0 }
 0x224   : > { %v2023_v32 = vpop.f32.mrf.mxu1  ;;  %v2043_v33 = vpop.f32.mrf.mxu2 }
 0x225   : > { %v2024_v38 = vadd.f32 %v2023_v32, %v2003_v5 }
 0x227   : > { %v2063_v34 = vpop.f32.mrf.mxu3  ;;  %v2044_v6 = vadd.f32 %v2043_v33, %v2024_v38 }
 0x229   : > { %v2064_v42 = vadd.f32 %v2063_v34, %v2044_v6 }
 0x22b   : > { %v2146_v48 = vadd.f32 %v2064_v42, %v1822_v45 }
 0x245   : > { %v2083_v25 = vpop.f32.mrf.mxu0 }
 0x246   : > { %v2103_v36 = vpop.f32.mrf.mxu1  ;;  %v2123_v56 = vpop.f32.mrf.mxu2 }
 0x247   : > { %v2104_v26 = vadd.f32 %v2103_v36, %v2083_v25 }
 0x249   : > { %v2143_v46 = vpop.f32.mrf.mxu3  ;;  %v2124_v63 = vadd.f32 %v2123_v56, %v2104_v26 }
 0x24b   : > { %v2144_v40 = vadd.f32 %v2143_v46, %v2124_v63 }
 0x24d   : > { %v2147_v24 = vadd.f32 %v2144_v40, %v1823_v21 }
 0x267   : > { %v2327_v39 = vpop.f32.mrf.mxu0 }
 0x268   : > { %v2347_v17 = vpop.f32.mrf.mxu1  ;;  %v2367_v44 = vpop.f32.mrf.mxu2 }
 0x269   : > { %v2348_v43 = vadd.f32 %v2347_v17, %v2327_v39 }
 0x26b   : > { %v2368_v8 = vadd.f32 %v2367_v44, %v2348_v43  ;;  %v2387_v60 = vpop.f32.mrf.mxu3 }
 0x26d   : > { %v2388_v14 = vadd.f32 %v2387_v60, %v2368_v8 }
 0x26f   : > { %v2470_v47 = vadd.f32 %v2388_v14, %v2146_v48 }
 0x271   : > { %v2620_v49 = vmul.f32 -1.442695, %v2470_v47 }
 0x273   : > { %2692 = vpow2.f32 %v2620_v49 }
 0x279   : > { %v2693_v31 = vpop.eup %2692 }
 0x27a   : > { %v2478_v50 = vadd.f32 1.0, %v2693_v31 }
 0x27c   : > { %2694 = vrcp.f32 %v2478_v50  ;;  %v2491_v0 = vand.u32 2147483648, %v2478_v50  ;;  %v2489_v53 = vand.u32 2147483647, %v2478_v50  ;;  %vm2485_vm8 = vweird.f32 %v2478_v50 }
 0x27e   : > { %v2492_v51 = vor.u32 1.1754944e-38, %v2491_v0  ;;  %vm2490_vm10 = vcmp.eq.f32.partialorder %v2489_v53, 8.507059e+37 }
 0x282   : > { %v2695_v54 = vpop.eup %2694 }
 0x283   : > { %v2481_v55 = vmul.f32 %v2695_v54, %v2478_v50  ;;  %vm2486_vm7 = vweird.f32 %v2695_v54 }
 0x284   : > { %vm2487_vm9 = vmor %vm2485_vm8, %vm2486_vm7 }
 0x285   : > { %v2482_v22 = vsub.f32 1.0, %v2481_v55 }
 0x287   : > { %v2483_v1 = vmul.f32 %v2695_v54, %v2482_v22 }
 0x288   : > { %v2407_v59 = vpop.f32.mrf.mxu0 }
 0x289   : > { %v2427_v12 = vpop.f32.mrf.mxu1  ;;  %v2484_v13 = vadd.f32 %v2695_v54, %v2483_v1 }
 0x28a   : > { %v2428_v18 = vadd.f32 %v2427_v12, %v2407_v59  ;;  %v2447_v19 = vpop.f32.mrf.mxu2 }
 0x28b   : > { %v2488_v20 = vsel %vm2487_vm9, %v2695_v54, %v2484_v13 }
 0x28c   : > { %v2448_v23 = vadd.f32 %v2447_v19, %v2428_v18  ;;  %v2493_v62 = vsel %vm2490_vm10, %v2492_v51, %v2488_v20 }
 0x28d   : > { %v2467_v58 = vpop.f32.mrf.mxu3  ;;  %2510 = vst [vmem:[%s180_s20] sm:$0xff] %v2493_v62 }
 0x28e   : > { %v2468_v27 = vadd.f32 %v2467_v58, %v2448_v23 }
 0x290   : > { %v2471_v28 = vadd.f32 %v2468_v27, %v2147_v24 }
 0x292   : > { %v2621_v29 = vmul.f32 -1.442695, %v2471_v28 }
 0x294   : > { %2696 = vpow2.f32 %v2621_v29 }
 0x29a   : > { %v2697_v10 = vpop.eup %2696 }
 0x29b   : > { %v2479_v5 = vadd.f32 1.0, %v2697_v10 }
 0x29d   : > { %2698 = vrcp.f32 %v2479_v5  ;;  %v2506_v35 = vand.u32 2147483648, %v2479_v5  ;;  %v2504_v2 = vand.u32 2147483647, %v2479_v5  ;;  %vm2500_vm12 = vweird.f32 %v2479_v5 }
 0x29f   : > { %v2507_v11 = vor.u32 1.1754944e-38, %v2506_v35  ;;  %vm2505_vm14 = vcmp.eq.f32.partialorder %v2504_v2, 8.507059e+37 }
 0x2a3   : > { %v2699_v32 = vpop.eup %2698 }
 0x2a4   : > { %v2496_v33 = vmul.f32 %v2699_v32, %v2479_v5  ;;  %vm2501_vm11 = vweird.f32 %v2699_v32 }
 0x2a5   : > { %vm2502_vm13 = vmor %vm2500_vm12, %vm2501_vm11 }
 0x2a6   : > { %v2497_v30 = vsub.f32 1.0, %v2496_v33 }
 0x2a8   : > { %v2498_v34 = vmul.f32 %v2699_v32, %v2497_v30 }
 0x2aa   : > { %v2499_v3 = vadd.f32 %v2699_v32, %v2498_v34 }
 0x2ac   : > { %v2503_v25 = vsel %vm2502_vm13, %v2699_v32, %v2499_v3 }
 0x2ad   : > { %v2508_v36 = vsel %vm2505_vm14, %v2507_v11, %v2503_v25 }
 0x2ae   : > { %2511 = vst [vmem:[%s180_s20 + $0x8] sm:$0xff] %v2508_v36 }
 0x2af   : > { %2787 = shalt.err (!%p2784_p10)
}
 0x2b0   : > { %2635 = dma.vmem_to_hbm [thread:$0]  (%p2921_p3), %s2527_s18, 256, %s2529_s19, %s2513_s13  }
 0x2b1 PF: > { %s2540_s30 = sand.u32 1, %s2818_s9   ;;  %p3202_p12 = scmp.ge.s32.totalorder %s2830_s12, 2 }
 0x2b2   : > { %s2541_s6 = scalar_lea.sflag [#allocation5], %s2540_s30 }
 0x2b3   : > { %p2646_p13 = pnand %p3202_p12, %p2887_p6 }
 0x2b5   : > { %p2647_p0 = pneg %p2646_p13 }
 0x2b7   : > { %2813 = dma.done.wait (%p2647_p0), %s2541_s6, 256  }
 0x2b8   : > { %2815 = vsyncadd (%p2647_p0), %s2541_s6, 4294967040  ;;  %p16_p5 = scmp.ge.s32.totalorder %s2905_s23, 4   ;;  %s3203_s9 = smov %s2822_s10 }
 0x2b9   : > { %s3204_s10 = smov %s2826_s11  ;;  %s3205_s11 = smov %s2917_s28 }
 0x2ba   : > { %s3206_s12 = smov %s2905_s23  ;;  %18 = sbr.rel (!%p16_p5) target bundleno = 6 (0x6), region = 83 }
 0x2bf   :  { %2547 = vsyncpa [#allocation4], 1 }
 0x2c0   :  { %2549 = vsyncpa [#allocation4 + $0x1], 1 }
 0x2c1   :  { %2550 = vsyncpa [#allocation7], 1 }
 0x2c2   :  { %2551 = vsyncpa [#allocation5], 1 }
 0x2c3   :  { %2553 = vsyncpa [#allocation5 + $0x1], 1 }

</bundles_post_ra>
